<compile_context>
chip_gen: v6e
topology: v6e:2x2x1
jax: 0.10.0
libtpu: 0.0.40
codegen_flags: <defaults>
</compile_context>

<pallas_src>
import functools

import jax
import jax.numpy as jnp
from jax.experimental import pallas as pl
from jax.experimental.pallas import tpu as pltpu

# Logical (PyTorch) layer sizes.
DIMS = [(4, 200), (200, 2000), (2000, 200), (200, 3)]
# Lane-aligned padded sizes (K=4 input left as-is: full-extent block dim).
D_IN, D1, D2, D3, D_OUT = 4, 256, 2048, 256, 128


def _round_up(x, m):
    return (x + m - 1) // m * m


def mlp_kernel(x_ref,
               w1_ref, b1_ref,
               w2_ref, b2_ref,
               w3_ref, b3_ref,
               w4_ref, b4_ref,
               o_ref):
    # bf16 operands into the MXU, f32 accumulate.  Hidden-layer epilogues
    # (bias + ReLU) run in bf16 on the VPU; final layer stays f32.
    x = x_ref[...].astype(jnp.bfloat16)

    h1 = jnp.dot(x, w1_ref[...], preferred_element_type=jnp.float32)
    h1 = jnp.maximum(h1.astype(jnp.bfloat16) + b1_ref[...], 0)

    h2 = jnp.dot(h1, w2_ref[...], preferred_element_type=jnp.float32)
    h2 = jnp.maximum(h2.astype(jnp.bfloat16) + b2_ref[...], 0)

    h3 = jnp.dot(h2, w3_ref[...], preferred_element_type=jnp.float32)
    h3 = jnp.maximum(h3.astype(jnp.bfloat16) + b3_ref[...], 0)

    h4 = jnp.dot(h3, w4_ref[...], preferred_element_type=jnp.float32) + b4_ref[...]
    o_ref[...] = h4.astype(o_ref.dtype)


def init_params(key):
    """PyTorch nn.Linear default init: U(-1/sqrt(fan_in), +1/sqrt(fan_in)).
    Master copy in float32, weights stored as (in, out)."""
    params = []
    for (fan_in, fan_out) in DIMS:
        key, kw, kb = jax.random.split(key, 3)
        bound = 1.0 / (fan_in ** 0.5)
        w = jax.random.uniform(kw, (fan_in, fan_out), jnp.float32,
                               minval=-bound, maxval=bound)
        b = jax.random.uniform(kb, (fan_out,), jnp.float32,
                               minval=-bound, maxval=bound)
        params.append((w, b))
    return params


def pack_params(params):
    """Zero-pad to lane-aligned shapes.  Weights -> bf16; hidden biases -> bf16
    (they feed the bf16 epilogue); final bias stays f32."""
    padded = [(D_IN, D1), (D1, D2), (D2, D3), (D3, D_OUT)]
    packed = []
    last = len(params) - 1
    for layer, ((w, b), (pin, pout)) in enumerate(zip(params, padded)):
        fin, fout = w.shape
        wp = jnp.zeros((pin, pout), jnp.float32).at[:fin, :fout].set(w)
        bp = jnp.zeros((1, pout), jnp.float32).at[0, :fout].set(b)
        b_dtype = jnp.float32 if layer == last else jnp.bfloat16
        packed.append((wp.astype(jnp.bfloat16), bp.astype(b_dtype)))
    return packed


def _choose_tile(batch):
    if batch <= 256:
        # Latency-bound small batch: single 16-row-aligned tile (bf16 (16,128)
        # tiles -> no packed-sublane relayout before the MXU push).
        return _round_up(max(batch, 1), 16)
    # Large batch: big tiles amortize per-grid-step overhead, but keep >= 2
    # grid steps (v7x megacore) and cap at 1024 rows (v7x 64 MiB VMEM).
    return min(1024, _round_up((batch + 1) // 2, 256))


def _forward_impl(x, packed_params, *, use_buffered):
    (w1, b1), (w2, b2), (w3, b3), (w4, b4) = packed_params
    B = x.shape[0]

    TB = _choose_tile(B)
    B_pad = _round_up(B, TB)
    if B_pad != B:
        x = jnp.pad(x, ((0, B_pad - B), (0, 0)))
    grid = (B_pad // TB,)

    const = lambda i: (0, 0)   # weights/biases: fetched once, VMEM-resident
    if use_buffered:
        def resident(shape):
            return pl.BlockSpec(shape, const, pipeline_mode=pl.Buffered(1))
    else:
        def resident(shape):
            return pl.BlockSpec(shape, const)

    flops = 2 * B_pad * (D_IN * D1 + D1 * D2 + D2 * D3 + D3 * D_OUT)
    bytes_accessed = (
        B_pad * D_IN * 4                                           # x
        + sum(int(w.size) * 2 + int(b.size) * b.dtype.itemsize     # weights+biases
              for w, b in packed_params)
        + B_pad * D_OUT * 4)                                       # output slab

    out = pl.pallas_call(
        mlp_kernel,
        out_shape=jax.ShapeDtypeStruct((B_pad, D_OUT), jnp.float32),
        grid_spec=pltpu.PrefetchScalarGridSpec(
            num_scalar_prefetch=0,
            grid=grid,
            in_specs=[
                pl.BlockSpec((TB, D_IN), lambda i: (i, 0)),   # x tile (streams)
                resident((D_IN, D1)), resident((1, D1)),
                resident((D1, D2)), resident((1, D2)),
                resident((D2, D3)), resident((1, D3)),
                resident((D3, D_OUT)), resident((1, D_OUT)),
            ],
            out_specs=pl.BlockSpec((TB, D_OUT), lambda i: (i, 0)),
        ),
        compiler_params=pltpu.CompilerParams(
            dimension_semantics=("parallel",),
            vmem_limit_bytes=48 * 1024 * 1024),
        cost_estimate=pl.CostEstimate(
            flops=flops, transcendentals=0, bytes_accessed=bytes_accessed),
    )(x, w1, b1, w2, b2, w3, b3, w4, b4)
    return out[:B, :3]


_forward_buffered = jax.jit(functools.partial(_forward_impl, use_buffered=True))
_forward_plain = jax.jit(functools.partial(_forward_impl, use_buffered=False))
_BUFFERED_OK = None


def neural_network_forward(x, packed_params):
    """Forward pass.  Prefers single-buffered resident weights (pl.Buffered(1));
    falls back to default double-buffering if this JAX build rejects the hint."""
    global _BUFFERED_OK
    if _BUFFERED_OK is not False:
        try:
            out = _forward_buffered(x, packed_params)
            _BUFFERED_OK = True
            return out
        except Exception:
            _BUFFERED_OK = False
    return _forward_plain(x, packed_params)


def reference_forward_bf16(x, packed_params):
    """Pure-JAX reference with the same bf16/f32 numerics as the kernel."""
    h = x.astype(jnp.bfloat16)
    last = len(packed_params) - 1
    acc = None
    for i, (w, b) in enumerate(packed_params):
        acc = jnp.dot(h, w, preferred_element_type=jnp.float32)
        if i < last:
            h = jnp.maximum(acc.astype(jnp.bfloat16) + b, 0)
        else:
            acc = acc + b
    return acc[:, :3]


def reference_forward_f32(x, params):
    """Full-f32 PyTorch-semantics reference (master weights)."""
    h = x
    for i, (w, b) in enumerate(params):
        h = h @ w + b[None, :]
        if i < len(params) - 1:
            h = jnp.maximum(h, 0.0)
    return h


if __name__ == "__main__":
    key = jax.random.PRNGKey(0)
    key_params, key_x = jax.random.split(key)

    params = init_params(key_params)
    packed = pack_params(params)

    B = 8
    x = jax.random.normal(key_x, (B, 4), dtype=jnp.float32)

    out = jax.block_until_ready(neural_network_forward(x, packed))
    assert out.shape == (B, 3), out.shape

    # Tight check against a reference with identical bf16/f32 numerics.
    ref_bf16 = reference_forward_bf16(x, packed)
    assert jnp.allclose(out, ref_bf16, atol=2e-3, rtol=2e-2), \
        float(jnp.max(jnp.abs(out - ref_bf16)))

    # Looser sanity check against the exact f32 module semantics
    # (weights/activations are bf16-rounded, so tolerances are loosened).
    ref_f32 = reference_forward_f32(x, params)
    assert jnp.allclose(out, ref_f32, atol=5e-2, rtol=5e-2), \
        float(jnp.max(jnp.abs(out - ref_f32)))

    print("KERNEL_OK")
</pallas_src>

<mosaic_0001>
module attributes {stable_mosaic.version = 11 : i64} {
  func.func @mlp_kernel(%arg0: i32, %arg1: memref<16x4xf32, #tpu.memory_space<vmem>>, %arg2: memref<4x256xbf16, #tpu.memory_space<vmem>>, %arg3: memref<1x256xbf16, #tpu.memory_space<vmem>>, %arg4: memref<256x2048xbf16, #tpu.memory_space<vmem>>, %arg5: memref<1x2048xbf16, #tpu.memory_space<vmem>>, %arg6: memref<2048x256xbf16, #tpu.memory_space<vmem>>, %arg7: memref<1x256xbf16, #tpu.memory_space<vmem>>, %arg8: memref<256x128xbf16, #tpu.memory_space<vmem>>, %arg9: memref<1x128xf32, #tpu.memory_space<vmem>>, %arg10: memref<16x128xf32, #tpu.memory_space<vmem>>) attributes {dimension_semantics = [#tpu.dimension_semantics<parallel>], iteration_bounds = array<i64: 1>, scalar_prefetch = 0 : i64, scratch_operands = 0 : i64, tpu.core_type = #tpu.core_type<tc>, window_params = [{transform_indices = @transform_0, window_bounds = array<i64: 16, 4>}, {pipeline_mode = #tpu.pipeline_mode<synchronous>, transform_indices = @transform_1, window_bounds = array<i64: 4, 256>}, {pipeline_mode = #tpu.pipeline_mode<synchronous>, transform_indices = @transform_2, window_bounds = array<i64: 1, 256>}, {pipeline_mode = #tpu.pipeline_mode<synchronous>, transform_indices = @transform_3, window_bounds = array<i64: 256, 2048>}, {pipeline_mode = #tpu.pipeline_mode<synchronous>, transform_indices = @transform_4, window_bounds = array<i64: 1, 2048>}, {pipeline_mode = #tpu.pipeline_mode<synchronous>, transform_indices = @transform_5, window_bounds = array<i64: 2048, 256>}, {pipeline_mode = #tpu.pipeline_mode<synchronous>, transform_indices = @transform_6, window_bounds = array<i64: 1, 256>}, {pipeline_mode = #tpu.pipeline_mode<synchronous>, transform_indices = @transform_7, window_bounds = array<i64: 256, 128>}, {pipeline_mode = #tpu.pipeline_mode<synchronous>, transform_indices = @transform_8, window_bounds = array<i64: 1, 128>}, {transform_indices = @transform_9, window_bounds = array<i64: 16, 128>}]} {
    %c0 = arith.constant 0 : index
    %c0_0 = arith.constant 0 : index
    %0 = vector.load %arg1[%c0, %c0_0] : memref<16x4xf32, #tpu.memory_space<vmem>>, vector<16x4xf32>
    %1 = arith.truncf %0 : vector<16x4xf32> to vector<16x4xbf16>
    %c0_1 = arith.constant 0 : index
    %c0_2 = arith.constant 0 : index
    %2 = vector.load %arg2[%c0_1, %c0_2] : memref<4x256xbf16, #tpu.memory_space<vmem>>, vector<4x256xbf16>
    %cst = arith.constant dense<0.000000e+00> : vector<16x256xf32>
    %3 = tpu.matmul %1, %2, %cst {dimension_numbers = #tpu.dot_dimension_numbers<[1], [0], [0], [1], [0, 0, 1, 1], [], []>} : vector<16x4xbf16>, vector<4x256xbf16>, vector<16x256xf32> -> vector<16x256xf32>
    %4 = arith.truncf %3 : vector<16x256xf32> to vector<16x256xbf16>
    %c0_3 = arith.constant 0 : index
    %c0_4 = arith.constant 0 : index
    %5 = vector.load %arg3[%c0_3, %c0_4] : memref<1x256xbf16, #tpu.memory_space<vmem>>, vector<1x256xbf16>
    %6 = vector.broadcast %5 : vector<1x256xbf16> to vector<16x256xbf16>
    %7 = arith.addf %4, %6 : vector<16x256xbf16>
    %cst_5 = arith.constant 0.000000e+00 : bf16
    %8 = vector.broadcast %cst_5 : bf16 to vector<16x256xbf16>
    %9 = arith.maximumf %7, %8 : vector<16x256xbf16>
    %c0_6 = arith.constant 0 : index
    %c0_7 = arith.constant 0 : index
    %10 = vector.load %arg4[%c0_6, %c0_7] : memref<256x2048xbf16, #tpu.memory_space<vmem>>, vector<256x2048xbf16>
    %cst_8 = arith.constant dense<0.000000e+00> : vector<16x2048xf32>
    %11 = tpu.matmul %9, %10, %cst_8 {dimension_numbers = #tpu.dot_dimension_numbers<[1], [0], [0], [1], [0, 0, 1, 1], [], []>} : vector<16x256xbf16>, vector<256x2048xbf16>, vector<16x2048xf32> -> vector<16x2048xf32>
    %12 = arith.truncf %11 : vector<16x2048xf32> to vector<16x2048xbf16>
    %c0_9 = arith.constant 0 : index
    %c0_10 = arith.constant 0 : index
    %13 = vector.load %arg5[%c0_9, %c0_10] : memref<1x2048xbf16, #tpu.memory_space<vmem>>, vector<1x2048xbf16>
    %14 = vector.broadcast %13 : vector<1x2048xbf16> to vector<16x2048xbf16>
    %15 = arith.addf %12, %14 : vector<16x2048xbf16>
    %cst_11 = arith.constant 0.000000e+00 : bf16
    %16 = vector.broadcast %cst_11 : bf16 to vector<16x2048xbf16>
    %17 = arith.maximumf %15, %16 : vector<16x2048xbf16>
    %c0_12 = arith.constant 0 : index
    %c0_13 = arith.constant 0 : index
    %18 = vector.load %arg6[%c0_12, %c0_13] : memref<2048x256xbf16, #tpu.memory_space<vmem>>, vector<2048x256xbf16>
    %cst_14 = arith.constant dense<0.000000e+00> : vector<16x256xf32>
    %19 = tpu.matmul %17, %18, %cst_14 {dimension_numbers = #tpu.dot_dimension_numbers<[1], [0], [0], [1], [0, 0, 1, 1], [], []>} : vector<16x2048xbf16>, vector<2048x256xbf16>, vector<16x256xf32> -> vector<16x256xf32>
    %20 = arith.truncf %19 : vector<16x256xf32> to vector<16x256xbf16>
    %c0_15 = arith.constant 0 : index
    %c0_16 = arith.constant 0 : index
    %21 = vector.load %arg7[%c0_15, %c0_16] : memref<1x256xbf16, #tpu.memory_space<vmem>>, vector<1x256xbf16>
    %22 = vector.broadcast %21 : vector<1x256xbf16> to vector<16x256xbf16>
    %23 = arith.addf %20, %22 : vector<16x256xbf16>
    %cst_17 = arith.constant 0.000000e+00 : bf16
    %24 = vector.broadcast %cst_17 : bf16 to vector<16x256xbf16>
    %25 = arith.maximumf %23, %24 : vector<16x256xbf16>
    %c0_18 = arith.constant 0 : index
    %c0_19 = arith.constant 0 : index
    %26 = vector.load %arg8[%c0_18, %c0_19] : memref<256x128xbf16, #tpu.memory_space<vmem>>, vector<256x128xbf16>
    %cst_20 = arith.constant dense<0.000000e+00> : vector<16x128xf32>
    %27 = tpu.matmul %25, %26, %cst_20 {dimension_numbers = #tpu.dot_dimension_numbers<[1], [0], [0], [1], [0, 0, 1, 1], [], []>} : vector<16x256xbf16>, vector<256x128xbf16>, vector<16x128xf32> -> vector<16x128xf32>
    %c0_21 = arith.constant 0 : index
    %c0_22 = arith.constant 0 : index
    %28 = vector.load %arg9[%c0_21, %c0_22] : memref<1x128xf32, #tpu.memory_space<vmem>>, vector<1x128xf32>
    %29 = vector.broadcast %28 : vector<1x128xf32> to vector<16x128xf32>
    %30 = arith.addf %27, %29 : vector<16x128xf32>
    %c0_23 = arith.constant 0 : index
    %c0_24 = arith.constant 0 : index
    %31 = vector.load %arg10[%c0_23, %c0_24] : memref<16x128xf32, #tpu.memory_space<vmem>>, vector<16x128xf32>
    tpu.vector_store %arg10[%c0_23, %c0_24], %30 {strides = array<i32>} : memref<16x128xf32, #tpu.memory_space<vmem>>, vector<16x128xf32>,
    return
  }
  func.func @transform_0(%arg0: i32) -> (i32, i32) {
    %c0_i32 = arith.constant 0 : i32
    %c0_i32_0 = arith.constant 0 : i32
    return %arg0, %c0_i32 : i32, i32
  }
  func.func @transform_1(%arg0: i32) -> (i32, i32) {
    %c0_i32 = arith.constant 0 : i32
    %c0_i32_0 = arith.constant 0 : i32
    %c0_i32_1 = arith.constant 0 : i32
    return %c0_i32, %c0_i32_0 : i32, i32
  }
  func.func @transform_2(%arg0: i32) -> (i32, i32) {
    %c0_i32 = arith.constant 0 : i32
    %c0_i32_0 = arith.constant 0 : i32
    %c0_i32_1 = arith.constant 0 : i32
    return %c0_i32, %c0_i32_0 : i32, i32
  }
  func.func @transform_3(%arg0: i32) -> (i32, i32) {
    %c0_i32 = arith.constant 0 : i32
    %c0_i32_0 = arith.constant 0 : i32
    %c0_i32_1 = arith.constant 0 : i32
    return %c0_i32, %c0_i32_0 : i32, i32
  }
  func.func @transform_4(%arg0: i32) -> (i32, i32) {
    %c0_i32 = arith.constant 0 : i32
    %c0_i32_0 = arith.constant 0 : i32
    %c0_i32_1 = arith.constant 0 : i32
    return %c0_i32, %c0_i32_0 : i32, i32
  }
  func.func @transform_5(%arg0: i32) -> (i32, i32) {
    %c0_i32 = arith.constant 0 : i32
    %c0_i32_0 = arith.constant 0 : i32
    %c0_i32_1 = arith.constant 0 : i32
    return %c0_i32, %c0_i32_0 : i32, i32
  }
  func.func @transform_6(%arg0: i32) -> (i32, i32) {
    %c0_i32 = arith.constant 0 : i32
    %c0_i32_0 = arith.constant 0 : i32
    %c0_i32_1 = arith.constant 0 : i32
    return %c0_i32, %c0_i32_0 : i32, i32
  }
  func.func @transform_7(%arg0: i32) -> (i32, i32) {
    %c0_i32 = arith.constant 0 : i32
    %c0_i32_0 = arith.constant 0 : i32
    %c0_i32_1 = arith.constant 0 : i32
    return %c0_i32, %c0_i32_0 : i32, i32
  }
  func.func @transform_8(%arg0: i32) -> (i32, i32) {
    %c0_i32 = arith.constant 0 : i32
    %c0_i32_0 = arith.constant 0 : i32
    %c0_i32_1 = arith.constant 0 : i32
    return %c0_i32, %c0_i32_0 : i32, i32
  }
  func.func @transform_9(%arg0: i32) -> (i32, i32) {
    %c0_i32 = arith.constant 0 : i32
    %c0_i32_0 = arith.constant 0 : i32
    return %arg0, %c0_i32 : i32, i32
  }
}

module attributes {stable_mosaic.version = 11 : i64} {
  func.func @mlp_kernel(%arg0: i32, %arg1: memref<16x4xf32, #tpu.memory_space<vmem>>, %arg2: memref<4x256xbf16, #tpu.memory_space<vmem>>, %arg3: memref<1x256xbf16, #tpu.memory_space<vmem>>, %arg4: memref<256x2048xbf16, #tpu.memory_space<vmem>>, %arg5: memref<1x2048xbf16, #tpu.memory_space<vmem>>, %arg6: memref<2048x256xbf16, #tpu.memory_space<vmem>>, %arg7: memref<1x256xbf16, #tpu.memory_space<vmem>>, %arg8: memref<256x128xbf16, #tpu.memory_space<vmem>>, %arg9: memref<1x128xf32, #tpu.memory_space<vmem>>, %arg10: memref<16x128xf32, #tpu.memory_space<vmem>>) attributes {dimension_semantics = [#tpu.dimension_semantics<parallel>], iteration_bounds = array<i64: 1>, scalar_prefetch = 0 : i64, scratch_operands = 0 : i64, tpu.core_type = #tpu.core_type<tc>, window_params = [{transform_indices = @transform_0, window_bounds = array<i64: 16, 4>}, {pipeline_mode = #tpu.pipeline_mode<synchronous>, transform_indices = @transform_1, window_bounds = array<i64: 4, 256>}, {pipeline_mode = #tpu.pipeline_mode<synchronous>, transform_indices = @transform_2, window_bounds = array<i64: 1, 256>}, {pipeline_mode = #tpu.pipeline_mode<synchronous>, transform_indices = @transform_3, window_bounds = array<i64: 256, 2048>}, {pipeline_mode = #tpu.pipeline_mode<synchronous>, transform_indices = @transform_4, window_bounds = array<i64: 1, 2048>}, {pipeline_mode = #tpu.pipeline_mode<synchronous>, transform_indices = @transform_5, window_bounds = array<i64: 2048, 256>}, {pipeline_mode = #tpu.pipeline_mode<synchronous>, transform_indices = @transform_6, window_bounds = array<i64: 1, 256>}, {pipeline_mode = #tpu.pipeline_mode<synchronous>, transform_indices = @transform_7, window_bounds = array<i64: 256, 128>}, {pipeline_mode = #tpu.pipeline_mode<synchronous>, transform_indices = @transform_8, window_bounds = array<i64: 1, 128>}, {transform_indices = @transform_9, window_bounds = array<i64: 16, 128>}]} {
    %c0 = arith.constant 0 : index
    %c0_0 = arith.constant 0 : index
    %0 = vector.load %arg1[%c0, %c0_0] : memref<16x4xf32, #tpu.memory_space<vmem>>, vector<16x4xf32>
    %1 = arith.truncf %0 : vector<16x4xf32> to vector<16x4xbf16>
    %c0_1 = arith.constant 0 : index
    %c0_2 = arith.constant 0 : index
    %2 = vector.load %arg2[%c0_1, %c0_2] : memref<4x256xbf16, #tpu.memory_space<vmem>>, vector<4x256xbf16>
    %cst = arith.constant dense<0.000000e+00> : vector<16x256xf32>
    %3 = tpu.matmul %1, %2, %cst {dimension_numbers = #tpu.dot_dimension_numbers<[1], [0], [0], [1], [0, 0, 1, 1], [], []>} : vector<16x4xbf16>, vector<4x256xbf16>, vector<16x256xf32> -> vector<16x256xf32>
    %4 = arith.truncf %3 : vector<16x256xf32> to vector<16x256xbf16>
    %c0_3 = arith.constant 0 : index
    %c0_4 = arith.constant 0 : index
    %5 = vector.load %arg3[%c0_3, %c0_4] : memref<1x256xbf16, #tpu.memory_space<vmem>>, vector<1x256xbf16>
    %6 = vector.broadcast %5 : vector<1x256xbf16> to vector<16x256xbf16>
    %7 = arith.addf %4, %6 : vector<16x256xbf16>
    %cst_5 = arith.constant 0.000000e+00 : bf16
    %8 = vector.broadcast %cst_5 : bf16 to vector<16x256xbf16>
    %9 = arith.maximumf %7, %8 : vector<16x256xbf16>
    %c0_6 = arith.constant 0 : index
    %c0_7 = arith.constant 0 : index
    %10 = vector.load %arg4[%c0_6, %c0_7] : memref<256x2048xbf16, #tpu.memory_space<vmem>>, vector<256x2048xbf16>
    %cst_8 = arith.constant dense<0.000000e+00> : vector<16x2048xf32>
    %11 = tpu.matmul %9, %10, %cst_8 {dimension_numbers = #tpu.dot_dimension_numbers<[1], [0], [0], [1], [0, 0, 1, 1], [], []>} : vector<16x256xbf16>, vector<256x2048xbf16>, vector<16x2048xf32> -> vector<16x2048xf32>
    %12 = arith.truncf %11 : vector<16x2048xf32> to vector<16x2048xbf16>
    %c0_9 = arith.constant 0 : index
    %c0_10 = arith.constant 0 : index
    %13 = vector.load %arg5[%c0_9, %c0_10] : memref<1x2048xbf16, #tpu.memory_space<vmem>>, vector<1x2048xbf16>
    %14 = vector.broadcast %13 : vector<1x2048xbf16> to vector<16x2048xbf16>
    %15 = arith.addf %12, %14 : vector<16x2048xbf16>
    %cst_11 = arith.constant 0.000000e+00 : bf16
    %16 = vector.broadcast %cst_11 : bf16 to vector<16x2048xbf16>
    %17 = arith.maximumf %15, %16 : vector<16x2048xbf16>
    %c0_12 = arith.constant 0 : index
    %c0_13 = arith.constant 0 : index
    %18 = vector.load %arg6[%c0_12, %c0_13] : memref<2048x256xbf16, #tpu.memory_space<vmem>>, vector<2048x256xbf16>
    %cst_14 = arith.constant dense<0.000000e+00> : vector<16x256xf32>
    %19 = tpu.matmul %17, %18, %cst_14 {dimension_numbers = #tpu.dot_dimension_numbers<[1], [0], [0], [1], [0, 0, 1, 1], [], []>} : vector<16x2048xbf16>, vector<2048x256xbf16>, vector<16x256xf32> -> vector<16x256xf32>
    %20 = arith.truncf %19 : vector<16x256xf32> to vector<16x256xbf16>
    %c0_15 = arith.constant 0 : index
    %c0_16 = arith.constant 0 : index
    %21 = vector.load %arg7[%c0_15, %c0_16] : memref<1x256xbf16, #tpu.memory_space<vmem>>, vector<1x256xbf16>
    %22 = vector.broadcast %21 : vector<1x256xbf16> to vector<16x256xbf16>
    %23 = arith.addf %20, %22 : vector<16x256xbf16>
    %cst_17 = arith.constant 0.000000e+00 : bf16
    %24 = vector.broadcast %cst_17 : bf16 to vector<16x256xbf16>
    %25 = arith.maximumf %23, %24 : vector<16x256xbf16>
    %c0_18 = arith.constant 0 : index
    %c0_19 = arith.constant 0 : index
    %26 = vector.load %arg8[%c0_18, %c0_19] : memref<256x128xbf16, #tpu.memory_space<vmem>>, vector<256x128xbf16>
    %cst_20 = arith.constant dense<0.000000e+00> : vector<16x128xf32>
    %27 = tpu.matmul %25, %26, %cst_20 {dimension_numbers = #tpu.dot_dimension_numbers<[1], [0], [0], [1], [0, 0, 1, 1], [], []>} : vector<16x256xbf16>, vector<256x128xbf16>, vector<16x128xf32> -> vector<16x128xf32>
    %c0_21 = arith.constant 0 : index
    %c0_22 = arith.constant 0 : index
    %28 = vector.load %arg9[%c0_21, %c0_22] : memref<1x128xf32, #tpu.memory_space<vmem>>, vector<1x128xf32>
    %29 = vector.broadcast %28 : vector<1x128xf32> to vector<16x128xf32>
    %30 = arith.addf %27, %29 : vector<16x128xf32>
    %c0_23 = arith.constant 0 : index
    %c0_24 = arith.constant 0 : index
    %31 = vector.load %arg10[%c0_23, %c0_24] : memref<16x128xf32, #tpu.memory_space<vmem>>, vector<16x128xf32>
    tpu.vector_store %arg10[%c0_23, %c0_24], %30 {strides = array<i32>} : memref<16x128xf32, #tpu.memory_space<vmem>>, vector<16x128xf32>,
    return
  }
  func.func @transform_0(%arg0: i32) -> (i32, i32) {
    %c0_i32 = arith.constant 0 : i32
    %c0_i32_0 = arith.constant 0 : i32
    return %arg0, %c0_i32 : i32, i32
  }
  func.func @transform_1(%arg0: i32) -> (i32, i32) {
    %c0_i32 = arith.constant 0 : i32
    %c0_i32_0 = arith.constant 0 : i32
    %c0_i32_1 = arith.constant 0 : i32
    return %c0_i32, %c0_i32_0 : i32, i32
  }
  func.func @transform_2(%arg0: i32) -> (i32, i32) {
    %c0_i32 = arith.constant 0 : i32
    %c0_i32_0 = arith.constant 0 : i32
    %c0_i32_1 = arith.constant 0 : i32
    return %c0_i32, %c0_i32_0 : i32, i32
  }
  func.func @transform_3(%arg0: i32) -> (i32, i32) {
    %c0_i32 = arith.constant 0 : i32
    %c0_i32_0 = arith.constant 0 : i32
    %c0_i32_1 = arith.constant 0 : i32
    return %c0_i32, %c0_i32_0 : i32, i32
  }
  func.func @transform_4(%arg0: i32) -> (i32, i32) {
    %c0_i32 = arith.constant 0 : i32
    %c0_i32_0 = arith.constant 0 : i32
    %c0_i32_1 = arith.constant 0 : i32
    return %c0_i32, %c0_i32_0 : i32, i32
  }
  func.func @transform_5(%arg0: i32) -> (i32, i32) {
    %c0_i32 = arith.constant 0 : i32
    %c0_i32_0 = arith.constant 0 : i32
    %c0_i32_1 = arith.constant 0 : i32
    return %c0_i32, %c0_i32_0 : i32, i32
  }
  func.func @transform_6(%arg0: i32) -> (i32, i32) {
    %c0_i32 = arith.constant 0 : i32
    %c0_i32_0 = arith.constant 0 : i32
    %c0_i32_1 = arith.constant 0 : i32
    return %c0_i32, %c0_i32_0 : i32, i32
  }
  func.func @transform_7(%arg0: i32) -> (i32, i32) {
    %c0_i32 = arith.constant 0 : i32
    %c0_i32_0 = arith.constant 0 : i32
    %c0_i32_1 = arith.constant 0 : i32
    return %c0_i32, %c0_i32_0 : i32, i32
  }
  func.func @transform_8(%arg0: i32) -> (i32, i32) {
    %c0_i32 = arith.constant 0 : i32
    %c0_i32_0 = arith.constant 0 : i32
    %c0_i32_1 = arith.constant 0 : i32
    return %c0_i32, %c0_i32_0 : i32, i32
  }
  func.func @transform_9(%arg0: i32) -> (i32, i32) {
    %c0_i32 = arith.constant 0 : i32
    %c0_i32_0 = arith.constant 0 : i32
    return %arg0, %c0_i32 : i32, i32
  }
}

</mosaic_0001>

<bundles_post_ra>
// kernel: _forward_impl.1
= control target key start
LH: loop header
LB: loop body
LE: loop exit
PB: predicated region body
PF: predicated region fallthrough
CT: control target
= control target key end

     0   :  { %14 = vsyncpa [#allocation3], 0  ;;  %s5725_s0 = inlined_call_operand.vmem [shape: f32[16,4], index: 0, kind: input, shape index: {}]   ;;  %s5726_s1 = inlined_call_operand.vmem [shape: bf16[4,256], index: 1, kind: input, shape index: {}]   ;;  %s5727_s2 = inlined_call_operand.vmem [shape: bf16[1,256], index: 2, kind: input, shape index: {}]   ;;  %s5728_s3 = inlined_call_operand.hbm [shape: bf16[256,2048], index: 3, kind: input, shape index: {}]   ;;  %s5729_s4 = inlined_call_operand.vmem [shape: bf16[1,2048], index: 4, kind: input, shape index: {}]   ;;  %s5730_s5 = inlined_call_operand.hbm [shape: bf16[2048,256], index: 5, kind: input, shape index: {}]   ;;  %s5731_s6 = inlined_call_operand.vmem [shape: bf16[1,256], index: 6, kind: input, shape index: {}]   ;;  %s5732_s7 = inlined_call_operand.hbm [shape: bf16[256,128], index: 7, kind: input, shape index: {}]   ;;  %s5733_s8 = inlined_call_operand.vmem [shape: f32[1,128], index: 8, kind: input, shape index: {}]   ;;  %s5734_s9 = inlined_call_operand.vmem [shape: f32[16,128], index: 9, kind: output, shape index: {}]  }
   0x1   :  { %15 = vsyncpa [#allocation5], 0  ;;  %s5467_s30 = smov [#allocation4]  }
   0x2   :  { %s41_s10 = sshll.u32 %s5467_s30, 4  ;;  %s42_s10 = int_to_ptr.vmem [resolvable:$true] %s41_s10 }
   0x3   :  { %s5411_s11 = scalar_lea.vmem %s42_s10, 32768  ;;  %p5416_p1 = scmp.lt.s32.totalorder %s42_s10, %s42_s10 }
   0x4   :  { %p5412_p0 = scmp.ne.s32.totalorder %s42_s10, %s5411_s11  ;;  %p5417_p2 = scmp.lt.s32.totalorder %s5411_s11, %s5411_s11 }
   0x6   :  { %p5418_p3 = por %p5417_p2, %p5416_p1 }
   0x8   :  { %p5419_p4 = pnand %p5418_p3, %p5412_p0 }
   0xa   :  { %5422 = shalt.err (!%p5419_p4)
}
   0xb   :  { %s5468_s12 = smov 128   ;;  %s5469_s13 = smov 8  }
   0xc   :  { %47 = dma.hbm_to_vmem [thread:$0]  %s5730_s5, 32768, %s42_s10, [#allocation5], %s5468_s12, %s5468_s12, %s5469_s13  }
   0xd   :  { %s5470_s16 = smov [#allocation2]  }
   0xe   :  { %s27_s17 = sshll.u32 %s5470_s16, 4  ;;  %s28_s17 = int_to_ptr.vmem [resolvable:$true] %s27_s17 }
   0xf   :  { %s5431_s18 = scalar_lea.vmem %s28_s17, 32768  ;;  %p5436_p6 = scmp.lt.s32.totalorder %s28_s17, %s28_s17 }
  0x10   :  { %p5432_p5 = scmp.ne.s32.totalorder %s28_s17, %s5431_s18  ;;  %p5437_p7 = scmp.lt.s32.totalorder %s5431_s18, %s5431_s18 }
  0x12   :  { %p5438_p8 = por %p5437_p7, %p5436_p6 }
  0x14   :  { %p5439_p9 = pnand %p5438_p8, %p5432_p5 }
  0x16   :  { %5442 = shalt.err (!%p5439_p9)
}
  0x17   :  { %s5471_s19 = smov 1024   ;;  %s5472_s20 = smov 64  }
  0x18   :  { %33 = dma.hbm_to_vmem [thread:$0]  %s5728_s3, 32768, %s28_s17, [#allocation3], %s5471_s19, %s5471_s19, %s5472_s20  }
  0x19   :  { %s5473_s23 = smov [#allocation6]  }
  0x1a   :  { %s55_s24 = sshll.u32 %s5473_s23, 4  ;;  %s56_s24 = int_to_ptr.vmem [resolvable:$true] %s55_s24 }
  0x1b   :  { %s5451_s5 = scalar_lea.vmem %s56_s24, 2048  ;;  %p5456_p11 = scmp.lt.s32.totalorder %s56_s24, %s56_s24 }
  0x1c   :  { %p5452_p10 = scmp.ne.s32.totalorder %s56_s24, %s5451_s5  ;;  %p5457_p12 = scmp.lt.s32.totalorder %s5451_s5, %s5451_s5 }
  0x1e   :  { %p5458_p13 = por %p5457_p12, %p5456_p11 }
  0x20   :  { %p5459_p0 = pnand %p5458_p13, %p5452_p10 }
  0x22   :  { %5462 = shalt.err (!%p5459_p0)
}
  0x23   :  { %s5474_s25 = smov 4  }
  0x24   :  { %61 = dma.hbm_to_vmem [thread:$0]  %s5732_s7, 2048, %s56_s24, [#allocation5], %s5472_s20, %s5472_s20, %s5474_s25  }
  0x25   :  { %5463 = dma.done.wait [#allocation3], 32768  }
  0x26   :  { %5464 = vsyncadd [#allocation3], 4294934528 }
  0x27   :  { %5465 = dma.done.wait [#allocation5], 34816  }
  0x28   :  { %5466 = vsyncadd [#allocation5], 4294932480  ;;  %v5475_v0 = vmov 0   ;;  %vm91_vm0 = vcmask 1041408   ;;  %v74_v2 = vld [vmem:[%s5725_s0] sm:$0xff]  ;;  %v75_v3 = vld [vmem:[%s5725_s0 + $0x8] sm:$0xff] }
  0x29   :  { %130 = vmatprep.mubr.bf16.mxu0 %v5475_v0  ;;  %v4435_v1 = vld.sshfl [vmem:[%s5726_s1] sm:$0x33 pattern:$0x76325410]  ;;  %v298_v8 = vld [vmem:[#allocation2 + $0x388] sm:$0xff]  ;;  %v76_v14 = vpack.c.bf16 %v75_v3, %v74_v2  ;;  %vm87_vm1 = vcmask 31744  }
  0x2a   :  { %v86_v4 = vcombine.high %v4435_v1, %v4435_v1  ;;  %v93_v5 = vsel %vm91_vm0, %v4435_v1, 0  ;;  %v297_v6 = vld [vmem:[#allocation2 + $0x380] sm:$0xff]  ;;  %v306_v10 = vld [vmem:[#allocation2 + $0x3c8] sm:$0xff] }
  0x2b   :  { %v305_v7 = vld [vmem:[#allocation2 + $0x3c0] sm:$0xff]  ;;  %v4554_v15 = vcombine.high %v298_v8, %v306_v10  ;;  %v282_v17 = vld [vmem:[#allocation2 + $0x308] sm:$0xff]  ;;  %v4553_v20 = vcombine.low %v298_v8, %v306_v10 }
  0x2c   :  { %v4552_v9 = vcombine.high %v297_v6, %v305_v7  ;;  %v4551_v11 = vcombine.low %v297_v6, %v305_v7  ;;  %v281_v12 = vld [vmem:[#allocation2 + $0x300] sm:$0xff]  ;;  %4436 = vmatprep.subr.msk.bf16.mxu0 %vm91_vm0, %v86_v4  ;;  %v290_v18 = vld [vmem:[#allocation2 + $0x348] sm:$0xff] }
  0x2d   :  { %v289_v13 = vld [vmem:[#allocation2 + $0x340] sm:$0xff]  ;;  %113 = vmatpush1.bf16.msra.mxu0 %v93_v5  ;;  %v4538_v22 = vcombine.high %v282_v17, %v290_v18  ;;  %v266_v25 = vld [vmem:[#allocation2 + $0x288] sm:$0xff]  ;;  %v4537_v29 = vcombine.low %v282_v17, %v290_v18 }
  0x2e   :  { %v4536_v16 = vcombine.high %v281_v12, %v289_v13  ;;  %v265_v19 = vld [vmem:[#allocation2 + $0x280] sm:$0xff]  ;;  %1721 = vmatprep.subr.bf16.mxu1 %v4552_v9  ;;  %1764 = vmatprep.subr.bf16.mxu0 %v4554_v15  ;;  %v4535_v23 = vcombine.low %v281_v12, %v289_v13  ;;  %v274_v26 = vld [vmem:[#allocation2 + $0x2c8] sm:$0xff] }
  0x2f   :  { %v273_v21 = vld [vmem:[#allocation2 + $0x2c0] sm:$0xff]  ;;  %1722 = vmatpush1.bf16.msra.mxu1 %v4551_v11  ;;  %v4522_v30 = vcombine.high %v266_v25, %v274_v26  ;;  %v250_v33 = vld [vmem:[#allocation2 + $0x208] sm:$0xff]  ;;  %v4521_v37 = vcombine.low %v266_v25, %v274_v26 }
  0x30   :  { %1723 = vmatprep.subr.bf16.mxu1 %v4536_v16  ;;  %v4520_v24 = vcombine.high %v265_v19, %v273_v21  ;;  %4437 = vmatmul.mubr.msk.bf16.vlgmr.msra.gmra.mxu0 %vm87_vm1, %v76_v14  ;;  %v249_v27 = vld [vmem:[#allocation2 + $0x200] sm:$0xff]  ;;  %v4519_v31 = vcombine.low %v265_v19, %v273_v21  ;;  %v258_v34 = vld [vmem:[#allocation2 + $0x248] sm:$0xff] }
  0x31   :  { %v257_v28 = vld [vmem:[#allocation2 + $0x240] sm:$0xff]  ;;  %1765 = vmatpush1.bf16.msra.mxu0 %v4553_v20  ;;  %v4506_v38 = vcombine.high %v250_v33, %v258_v34  ;;  %v234_v41 = vld [vmem:[#allocation2 + $0x188] sm:$0xff]  ;;  %v4505_v45 = vcombine.low %v250_v33, %v258_v34 }
  0x32   :  { %1766 = vmatprep.subr.bf16.mxu0 %v4538_v22  ;;  %v4504_v32 = vcombine.high %v249_v27, %v257_v28  ;;  %v233_v35 = vld [vmem:[#allocation2 + $0x180] sm:$0xff]  ;;  %v4503_v39 = vcombine.low %v249_v27, %v257_v28  ;;  %v242_v42 = vld [vmem:[#allocation2 + $0x1c8] sm:$0xff] }
  0x33   :  { %1724 = vmatpush1.bf16.msra.mxu1 %v4535_v23  ;;  %v241_v36 = vld [vmem:[#allocation2 + $0x1c0] sm:$0xff]  ;;  %v4490_v46 = vcombine.high %v234_v41, %v242_v42  ;;  %v218_v48 = vld [vmem:[#allocation2 + $0x108] sm:$0xff]  ;;  %v4489_v53 = vcombine.low %v234_v41, %v242_v42 }
  0x34   :  { %1725 = vmatprep.subr.bf16.mxu1 %v4520_v24  ;;  %v4488_v40 = vcombine.high %v233_v35, %v241_v36  ;;  %v217_v43 = vld [vmem:[#allocation2 + $0x100] sm:$0xff]  ;;  %v4487_v47 = vcombine.low %v233_v35, %v241_v36  ;;  %v226_v49 = vld [vmem:[#allocation2 + $0x148] sm:$0xff] }
  0x35   :  { %1767 = vmatpush1.bf16.msra.mxu0 %v4537_v29  ;;  %v225_v44 = vld [vmem:[#allocation2 + $0x140] sm:$0xff]  ;;  %v202_v54 = vld [vmem:[#allocation2 + $0x88] sm:$0xff]  ;;  %v4474_v56 = vcombine.high %v218_v48, %v226_v49  ;;  %v4473_v61 = vcombine.low %v218_v48, %v226_v49 }
  0x36   :  { %1768 = vmatprep.subr.bf16.mxu0 %v4522_v30  ;;  %v201_v50 = vld [vmem:[#allocation2 + $0x80] sm:$0xff]  ;;  %v4472_v51 = vcombine.high %v217_v43, %v225_v44  ;;  %v210_v55 = vld [vmem:[#allocation2 + $0xc8] sm:$0xff]  ;;  %v4471_v57 = vcombine.low %v217_v43, %v225_v44 }
  0x37   :  { %1726 = vmatpush1.bf16.msra.mxu1 %v4519_v31  ;;  %v209_v52 = vld [vmem:[#allocation2 + $0xc0] sm:$0xff]  ;;  %v186_v62 = vld [vmem:[#allocation2 + $0x8] sm:$0xff]  ;;  %v4458_v1 = vcombine.high %v202_v54, %v210_v55  ;;  %v4457_v6 = vcombine.low %v202_v54, %v210_v55 }
  0x38   :  { %1727 = vmatprep.subr.bf16.mxu1 %v4504_v32  ;;  %v185_v58 = vld [vmem:[#allocation2] sm:$0xff]  ;;  %v4456_v60 = vcombine.high %v201_v50, %v209_v52  ;;  %v194_v63 = vld [vmem:[#allocation2 + $0x48] sm:$0xff]  ;;  %v4455_v2 = vcombine.low %v201_v50, %v209_v52 }
  0x39   :  { %1769 = vmatpush1.bf16.msra.mxu0 %v4521_v37  ;;  %v193_v59 = vld [vmem:[#allocation2 + $0x40] sm:$0xff]  ;;  %v426_v7 = vld [vmem:[#allocation2 + $0x788] sm:$0xff]  ;;  %v4442_v9 = vcombine.high %v186_v62, %v194_v63  ;;  %v4441_v14 = vcombine.low %v186_v62, %v194_v63 }
  0x3a   :  { %1770 = vmatprep.subr.bf16.mxu0 %v4506_v38  ;;  %v425_v3 = vld [vmem:[#allocation2 + $0x780] sm:$0xff]  ;;  %v4440_v5 = vcombine.high %v185_v58, %v193_v59  ;;  %v434_v8 = vld [vmem:[#allocation2 + $0x7c8] sm:$0xff]  ;;  %v4439_v10 = vcombine.low %v185_v58, %v193_v59 }
  0x3b   :  { %1728 = vmatpush1.bf16.msra.mxu1 %v4503_v39  ;;  %v433_v4 = vld [vmem:[#allocation2 + $0x7c0] sm:$0xff]  ;;  %v410_v15 = vld [vmem:[#allocation2 + $0x708] sm:$0xff]  ;;  %v4682_v17 = vcombine.high %v426_v7, %v434_v8  ;;  %v4681_v22 = vcombine.low %v426_v7, %v434_v8 }
  0x3c   :  { %1729 = vmatprep.subr.bf16.mxu1 %v4488_v40  ;;  %v409_v11 = vld [vmem:[#allocation2 + $0x700] sm:$0xff]  ;;  %v4680_v13 = vcombine.high %v425_v3, %v433_v4  ;;  %v418_v16 = vld [vmem:[#allocation2 + $0x748] sm:$0xff]  ;;  %v4679_v18 = vcombine.low %v425_v3, %v433_v4 }
  0x3d   :  { %1771 = vmatpush1.bf16.msra.mxu0 %v4505_v45  ;;  %v417_v12 = vld [vmem:[#allocation2 + $0x740] sm:$0xff]  ;;  %v394_v23 = vld [vmem:[#allocation2 + $0x688] sm:$0xff]  ;;  %v4666_v25 = vcombine.high %v410_v15, %v418_v16  ;;  %v4665_v30 = vcombine.low %v410_v15, %v418_v16 }
  0x3e   :  { %1772 = vmatprep.subr.bf16.mxu0 %v4490_v46  ;;  %v393_v19 = vld [vmem:[#allocation2 + $0x680] sm:$0xff]  ;;  %v4664_v21 = vcombine.high %v409_v11, %v417_v12  ;;  %v402_v24 = vld [vmem:[#allocation2 + $0x6c8] sm:$0xff]  ;;  %v4663_v26 = vcombine.low %v409_v11, %v417_v12  ;;  %v300_v11 = vld [vmem:[#allocation2 + $0x398] sm:$0xff] }
  0x3f   :  { %1730 = vmatpush1.bf16.msra.mxu1 %v4487_v47  ;;  %v401_v20 = vld [vmem:[#allocation2 + $0x6c0] sm:$0xff]  ;;  %v378_v31 = vld [vmem:[#allocation2 + $0x608] sm:$0xff]  ;;  %v4650_v33 = vcombine.high %v394_v23, %v402_v24  ;;  %v4649_v38 = vcombine.low %v394_v23, %v402_v24 }
  0x40   :  { %1731 = vmatprep.subr.bf16.mxu1 %v4472_v51  ;;  %v377_v27 = vld [vmem:[#allocation2 + $0x600] sm:$0xff]  ;;  %v4648_v29 = vcombine.high %v393_v19, %v401_v20  ;;  %v386_v32 = vld [vmem:[#allocation2 + $0x648] sm:$0xff]  ;;  %v4647_v34 = vcombine.low %v393_v19, %v401_v20  ;;  %v156_v19 = vlaneseq }
  0x41   :  { %1773 = vmatpush1.bf16.msra.mxu0 %v4489_v53  ;;  %v385_v28 = vld [vmem:[#allocation2 + $0x640] sm:$0xff]  ;;  %v362_v39 = vld [vmem:[#allocation2 + $0x588] sm:$0xff]  ;;  %v4634_v41 = vcombine.high %v378_v31, %v386_v32  ;;  %v4633_v44 = vcombine.low %v378_v31, %v386_v32 }
  0x42   :  { %1774 = vmatprep.subr.bf16.mxu0 %v4474_v56  ;;  %v361_v35 = vld [vmem:[#allocation2 + $0x580] sm:$0xff]  ;;  %v4632_v37 = vcombine.high %v377_v27, %v385_v28  ;;  %v370_v40 = vld [vmem:[#allocation2 + $0x5c8] sm:$0xff]  ;;  %v4631_v42 = vcombine.low %v377_v27, %v385_v28 }
  0x43   :  { %1732 = vmatpush1.bf16.msra.mxu1 %v4471_v57  ;;  %v369_v36 = vld [vmem:[#allocation2 + $0x5c0] sm:$0xff]  ;;  %v4618_v45 = vcombine.high %v362_v39, %v370_v40  ;;  %v4617_v47 = vcombine.low %v362_v39, %v370_v40  ;;  %v346_v50 = vld [vmem:[#allocation2 + $0x508] sm:$0xff]  ;;  %v283_v40 = vld [vmem:[#allocation2 + $0x310] sm:$0xff] }
  0x44   :  { %1733 = vmatprep.subr.bf16.mxu1 %v4456_v60  ;;  %v4616_v43 = vcombine.high %v361_v35, %v369_v36  ;;  %v4615_v46 = vcombine.low %v361_v35, %v369_v36  ;;  %v345_v48 = vld [vmem:[#allocation2 + $0x500] sm:$0xff]  ;;  %v354_v52 = vld [vmem:[#allocation2 + $0x548] sm:$0xff] }
  0x45   :  { %1775 = vmatpush1.bf16.msra.mxu0 %v4473_v61  ;;  %v353_v49 = vld [vmem:[#allocation2 + $0x540] sm:$0xff]  ;;  %v4601_v53 = vcombine.low %v346_v50, %v354_v52  ;;  %v4602_v54 = vcombine.high %v346_v50, %v354_v52  ;;  %v330_v58 = vld [vmem:[#allocation2 + $0x488] sm:$0xff]  ;;  %v268_v50 = vld [vmem:[#allocation2 + $0x298] sm:$0xff] }
  0x46   :  { %1776 = vmatprep.subr.bf16.mxu0 %v4458_v1  ;;  %v4600_v51 = vcombine.high %v345_v48, %v353_v49  ;;  %v4599_v55 = vcombine.low %v345_v48, %v353_v49  ;;  %v329_v56 = vld [vmem:[#allocation2 + $0x480] sm:$0xff]  ;;  %v338_v60 = vld [vmem:[#allocation2 + $0x4c8] sm:$0xff]  ;;  %v275_v49 = vld [vmem:[#allocation2 + $0x2d0] sm:$0xff] }
  0x47   :  { %1734 = vmatpush1.bf16.msra.mxu1 %v4455_v2  ;;  %v337_v57 = vld [vmem:[#allocation2 + $0x4c0] sm:$0xff]  ;;  %v4585_v61 = vcombine.low %v330_v58, %v338_v60  ;;  %v4586_v62 = vcombine.high %v330_v58, %v338_v60  ;;  %v314_v3 = vld [vmem:[#allocation2 + $0x408] sm:$0xff]  ;;  %v252_v58 = vld [vmem:[#allocation2 + $0x218] sm:$0xff] }
  0x48   :  { %1735 = vmatprep.subr.bf16.mxu1 %v4440_v5  ;;  %v4584_v59 = vcombine.high %v329_v56, %v337_v57  ;;  %v4583_v63 = vcombine.low %v329_v56, %v337_v57  ;;  %v313_v1 = vld [vmem:[#allocation2 + $0x400] sm:$0xff]  ;;  %v322_v5 = vld [vmem:[#allocation2 + $0x448] sm:$0xff]  ;;  %v251_v56 = vld [vmem:[#allocation2 + $0x210] sm:$0xff] }
  0x49   :  { %1777 = vmatpush1.bf16.msra.mxu0 %v4457_v6  ;;  %v321_v2 = vld [vmem:[#allocation2 + $0x440] sm:$0xff]  ;;  %v4569_v6 = vcombine.low %v314_v3, %v322_v5  ;;  %v4570_v7 = vcombine.high %v314_v3, %v322_v5  ;;  %v259_v57 = vld [vmem:[#allocation2 + $0x250] sm:$0xff]  ;;  %v236_v3 = vld [vmem:[#allocation2 + $0x198] sm:$0xff] }
  0x4a   :  { %1778 = vmatprep.subr.bf16.mxu0 %v4442_v9  ;;  %v4568_v4 = vcombine.high %v313_v1, %v321_v2  ;;  %v4567_v8 = vcombine.low %v313_v1, %v321_v2  ;;  %v299_v9 = vld [vmem:[#allocation2 + $0x390] sm:$0xff]  ;;  %v4507_v5 = vcombine.low %v251_v56, %v259_v57 }
  0x4b   :  { %1736 = vmatpush1.bf16.msra.mxu1 %v4439_v10  ;;  %v307_v10 = vld [vmem:[#allocation2 + $0x3d0] sm:$0xff] }
  0x4c   :  { %1737 = vmatprep.subr.bf16.mxu1 %v4680_v13  ;;  %v4556_v12 = vcombine.high %v299_v9, %v307_v10  ;;  %v308_v13 = vld [vmem:[#allocation2 + $0x3d8] sm:$0xff]  ;;  %v235_v1 = vld [vmem:[#allocation2 + $0x190] sm:$0xff] }
  0x4d   :  { %1779 = vmatpush1.bf16.msra.mxu0 %v4441_v14  ;;  %v4555_v14 = vcombine.low %v299_v9, %v307_v10  ;;  %v4557_v15 = vcombine.low %v300_v11, %v308_v13  ;;  %v4558_v16 = vcombine.high %v300_v11, %v308_v13  ;;  %v243_v2 = vld [vmem:[#allocation2 + $0x1d0] sm:$0xff]  ;;  %v220_v11 = vld [vmem:[#allocation2 + $0x118] sm:$0xff] }
  0x4e   :  { %1780 = vmatprep.subr.bf16.mxu0 %v4682_v17  ;;  %v5476_v17 = vmov 1966171168   ;;  %v219_v9 = vld [vmem:[#allocation2 + $0x110] sm:$0xff]  ;;  %v4491_v13 = vcombine.low %v235_v1, %v243_v2 }
  0x4f   :  { %1738 = vmatpush2.bf16.msra.mxu1 %v4679_v18  ;;  %v154_v18 = vunpack.c.l.s4 %v5476_v17  ;;  %v227_v10 = vld [vmem:[#allocation2 + $0x150] sm:$0xff] }
  0x50   :  { %1739 = vmatprep.subr.bf16.mxu1 %v4664_v21  ;;  %v157_v21 = vshrl.u32 %v156_v19, 7  ;;  %v203_v17 = vld [vmem:[#allocation2 + $0x90] sm:$0xff]  ;;  %v204_v19 = vld [vmem:[#allocation2 + $0x98] sm:$0xff] }
  0x51   :  { %1781 = vmatpush2.bf16.msra.mxu0 %v4681_v22  ;;  %v155_v20 = vunpack.c.0.s8 %v154_v18  ;;  %v4438_v22 = vld.sshfl [vmem:[%s5727_s2] sm:$0x11 pattern:$0x75316420]  ;;  %v211_v18 = vld [vmem:[#allocation2 + $0xd0] sm:$0xff] }
  0x52   :  { %1782 = vmatprep.subr.bf16.mxu0 %v4666_v25  ;;  %v152_v24 = vcombine.high %v4438_v22, %v4438_v22 }
  0x53   :  { %1740 = vmatpush2.bf16.msra.mxu1 %v4663_v26  ;;  %v5549_v23 = vsub.s32 %v155_v20, %v157_v21  ;;  %v212_v20 = vld [vmem:[#allocation2 + $0xd8] sm:$0xff] }
  0x54   :  { %1741 = vmatprep.subr.bf16.mxu1 %v4648_v29  ;;  %v5553_v29 = vsub.s32 0, %v157_v21  ;;  %v4475_v21 = vcombine.low %v219_v9, %v227_v10 }
  0x55   :  { %1783 = vmatpush2.bf16.msra.mxu0 %v4665_v30  ;;  %v159_v25 = vrot.slane %v4438_v22, %v5549_v23  ;;  %v166_v26 = vrot.slane %v152_v24, %v5549_v23  ;;  %v4460_v24 = vcombine.high %v203_v17, %v211_v18 }
  0x56   :  { %1784 = vmatprep.subr.bf16.mxu0 %v4650_v33 }
  0x57   :  { %1742 = vmatpush2.bf16.msra.mxu1 %v4647_v34  ;;  %v168_v28 = vpack.i.b16 %v159_v25, %v159_v25  ;;  %v175_v30 = vpack.i.b16 %v166_v26, %v166_v26  ;;  %v4462_v25 = vcombine.high %v204_v19, %v212_v20  ;;  %v187_v26 = vld [vmem:[#allocation2 + $0x10] sm:$0xff] }
  0x58   :  { %1743 = vmatprep.subr.bf16.mxu1 %v4632_v37 }
  0x59   :  { %1785 = vmatpush2.bf16.msra.mxu0 %v4649_v38  ;;  %v173_v33 = vrot.slane %v168_v28, %v5553_v29  ;;  %v180_v35 = vrot.slane %v175_v30, %v5553_v29  ;;  %v188_v28 = vld [vmem:[#allocation2 + $0x18] sm:$0xff] }
  0x5a   :  { %1786 = vmatprep.subr.bf16.mxu0 %v4634_v41  ;;  %v291_v41 = vld [vmem:[#allocation2 + $0x350] sm:$0xff]  ;;  %v196_v30 = vld [vmem:[#allocation2 + $0x58] sm:$0xff] }
  0x5b   :  { %1744 = vmatpush2.bf16.msra.mxu1 %v4631_v42  ;;  %v284_v42 = vld [vmem:[#allocation2 + $0x318] sm:$0xff]  ;;  %v4539_v52 = vcombine.low %v283_v40, %v291_v41 }
  0x5c   :  { %1745 = vmatprep.subr.bf16.mxu1 %v4616_v43  ;;  %v292_v43 = vld [vmem:[#allocation2 + $0x358] sm:$0xff] }
  0x5d   :  { %1787 = vmatpush2.bf16.msra.mxu0 %v4633_v44  ;;  %v4542_v48 = vcombine.high %v284_v42, %v292_v43 }
  0x5e   :  { %1788 = vmatprep.subr.bf16.mxu0 %v4618_v45 }
  0x5f   :  { %1746 = vmatpush2.bf16.msra.mxu1 %v4615_v46  ;;  %v267_v46 = vld [vmem:[#allocation2 + $0x290] sm:$0xff] }
  0x60   :  { %1747 = vmatprep.subr.bf16.mxu1 %v4600_v51  ;;  %v276_v51 = vld [vmem:[#allocation2 + $0x2d8] sm:$0xff]  ;;  %v4523_v60 = vcombine.low %v267_v46, %v275_v49 }
  0x61   :  { %1789 = vmatpush2.bf16.msra.mxu0 %v4617_v47  ;;  %v4540_v47 = vcombine.high %v283_v40, %v291_v41  ;;  %v4445_v40 = vcombine.low %v188_v28, %v196_v30 }
  0x62   :  { %1790 = vmatprep.subr.bf16.mxu0 %v4602_v54  ;;  %v4524_v54 = vcombine.high %v267_v46, %v275_v49  ;;  %v419_v46 = vld [vmem:[#allocation2 + $0x750] sm:$0xff] }
  0x63   :  { %1748 = vmatpush2.bf16.msra.mxu1 %v4599_v55  ;;  %v4526_v55 = vcombine.high %v268_v50, %v276_v51 }
  0x64   :  { %1749 = vmatprep.subr.bf16.mxu1 %v4584_v59  ;;  %v260_v59 = vld [vmem:[#allocation2 + $0x258] sm:$0xff] }
  0x65   :  { %1791 = vmatpush2.bf16.msra.mxu0 %v4601_v53  ;;  %v4541_v53 = vcombine.low %v284_v42, %v292_v43  ;;  %v411_v43 = vld [vmem:[#allocation2 + $0x710] sm:$0xff] }
  0x66   :  { %1792 = vmatprep.subr.bf16.mxu0 %v4586_v62  ;;  %v4508_v62 = vcombine.high %v251_v56, %v259_v57  ;;  %v404_v56 = vld [vmem:[#allocation2 + $0x6d8] sm:$0xff]  ;;  %v4667_v57 = vcombine.low %v411_v43, %v419_v46 }
  0x67   :  { %1750 = vmatpush2.bf16.msra.mxu1 %v4583_v63  ;;  %v4510_v63 = vcombine.high %v252_v58, %v260_v59 }
  0x68   :  { %1751 = vmatprep.subr.bf16.mxu1 %v4568_v4  ;;  %v244_v4 = vld [vmem:[#allocation2 + $0x1d8] sm:$0xff] }
  0x69   :  { %1793 = vmatpush2.bf16.msra.mxu0 %v4585_v61  ;;  %v4525_v61 = vcombine.low %v268_v50, %v276_v51  ;;  %v4668_v51 = vcombine.high %v411_v43, %v419_v46  ;;  %v310_v43 = vld [vmem:[#allocation2 + $0x3e8] sm:$0xff] }
  0x6a   :  { %1794 = vmatprep.subr.bf16.mxu0 %v4570_v7  ;;  %v4492_v7 = vcombine.high %v235_v1, %v243_v2  ;;  %v388_v1 = vld [vmem:[#allocation2 + $0x658] sm:$0xff] }
  0x6b   :  { %1752 = vmatpush2.bf16.msra.mxu1 %v4567_v8  ;;  %v4494_v8 = vcombine.high %v236_v3, %v244_v4 }
  0x6c   :  { %1807 = vmatprep.subr.bf16.mxu1 %v4556_v12  ;;  %v228_v12 = vld [vmem:[#allocation2 + $0x158] sm:$0xff] }
  0x6d   :  { %1795 = vmatpush2.bf16.msra.mxu0 %v4569_v6  ;;  %v4509_v6 = vcombine.low %v252_v58, %v260_v59  ;;  %v4477_v22 = vcombine.low %v220_v11, %v228_v12 }
  0x6e   :  { %1850 = vmatprep.subr.bf16.mxu0 %v4558_v16  ;;  %v4478_v16 = vcombine.high %v220_v11, %v228_v12 }
  0xf0   :  { %v132_v27 = vpop.f32.mrf.mxu0 }
  0xf2   :  { %v134_v31 = vpop.f32.mrf.mxu0 }
  0xf4   :  { %v136_v32 = vpop.f32.mrf.mxu0 }
  0xf5   :  { %v141_v34 = vpack.c.bf16 %v136_v32, %v132_v27  ;;  %v195_v27 = vld [vmem:[#allocation2 + $0x50] sm:$0xff]  ;;  %v4461_v32 = vcombine.low %v204_v19, %v212_v20 }
  0xf6   :  { %v138_v36 = vpop.f32.mrf.mxu0 }
  0xf7   :  { %v142_v37 = vpack.c.bf16 %v138_v36, %v134_v31  ;;  %v181_v38 = vadd.bf16 %v173_v33, %v141_v34  ;;  %v4459_v31 = vcombine.low %v203_v17, %v211_v18  ;;  %v4444_v33 = vcombine.high %v187_v26, %v195_v27  ;;  %v435_v36 = vld [vmem:[#allocation2 + $0x7d0] sm:$0xff]  ;;  %v356_v17 = vld [vmem:[#allocation2 + $0x558] sm:$0xff] }
  0xf8   :  { %v4446_v34 = vcombine.high %v188_v28, %v196_v30 }
  0xf9   :  { %v182_v39 = vadd.bf16 %v180_v35, %v142_v37  ;;  %v5561_v45 = vmax.bf16 %v5475_v0, %v181_v38  ;;  %v427_v35 = vld [vmem:[#allocation2 + $0x790] sm:$0xff]  ;;  %v428_v37 = vld [vmem:[#allocation2 + $0x798] sm:$0xff] }
  0xfa   :  { %v436_v38 = vld [vmem:[#allocation2 + $0x7d8] sm:$0xff]  ;;  %v4684_v41 = vcombine.high %v427_v35, %v435_v36  ;;  %v4683_v49 = vcombine.low %v427_v35, %v435_v36 }
  0xfb   :  { %v5558_v44 = vmax.bf16 %v5475_v0, %v182_v39  ;;  %v4443_v39 = vcombine.low %v187_v26, %v195_v27  ;;  %v4686_v42 = vcombine.high %v428_v37, %v436_v38  ;;  %v4685_v50 = vcombine.low %v428_v37, %v436_v38  ;;  %v340_v26 = vld [vmem:[#allocation2 + $0x4d8] sm:$0xff] }
  0xfc   :  { %v324_v35 = vld [vmem:[#allocation2 + $0x458] sm:$0xff] }
  0xfd   :  { %1753 = vmatprep.mubr.bf16.mxu1 %v5558_v44  ;;  %1796 = vmatprep.mubr.bf16.mxu0 %v5558_v44 }
  0xfe   :  { %1754 = vmatmul.mubr.bf16.vlgmr.msra.gmra.mxu1 %v5561_v45  ;;  %1797 = vmatmul.mubr.bf16.vlgmr.msra.gmra.mxu0 %v5561_v45 }
  0xff   :  { %1808 = vmatpush1.bf16.msra.mxu1 %v4555_v14  ;;  %1851 = vmatpush1.bf16.msra.mxu0 %v4557_v15  ;;  %v4493_v14 = vcombine.low %v236_v3, %v244_v4  ;;  %v4476_v15 = vcombine.high %v219_v9, %v227_v10  ;;  %v372_v9 = vld [vmem:[#allocation2 + $0x5d8] sm:$0xff] }
 0x100   :  { %1839 = vmatprep.mubr.bf16.mxu1 %v5558_v44  ;;  %1882 = vmatprep.mubr.bf16.mxu0 %v5558_v44 }
 0x101   :  { %1809 = vmatprep.subr.bf16.mxu1 %v4540_v47  ;;  %1852 = vmatprep.subr.bf16.mxu0 %v4542_v48  ;;  %v412_v47 = vld [vmem:[#allocation2 + $0x718] sm:$0xff] }
 0x102   :  { %v420_v48 = vld [vmem:[#allocation2 + $0x758] sm:$0xff] }
 0x103   :  { %1810 = vmatpush1.bf16.msra.mxu1 %v4539_v52  ;;  %1853 = vmatpush1.bf16.msra.mxu0 %v4541_v53  ;;  %v4670_v52 = vcombine.high %v412_v47, %v420_v48  ;;  %v395_v53 = vld [vmem:[#allocation2 + $0x690] sm:$0xff]  ;;  %v4669_v58 = vcombine.low %v412_v47, %v420_v48 }
 0x104   :  { %1811 = vmatprep.subr.bf16.mxu1 %v4524_v54  ;;  %1854 = vmatprep.subr.bf16.mxu0 %v4526_v55  ;;  %v403_v54 = vld [vmem:[#allocation2 + $0x6d0] sm:$0xff]  ;;  %v396_v55 = vld [vmem:[#allocation2 + $0x698] sm:$0xff] }
 0x105   :  { %v4652_v59 = vcombine.high %v395_v53, %v403_v54  ;;  %v4651_v2 = vcombine.low %v395_v53, %v403_v54  ;;  %v4653_v3 = vcombine.low %v396_v55, %v404_v56  ;;  %v294_v53 = vld [vmem:[#allocation2 + $0x368] sm:$0xff] }
 0x107   :  { %1812 = vmatpush1.bf16.msra.mxu1 %v4523_v60  ;;  %1855 = vmatpush1.bf16.msra.mxu0 %v4525_v61  ;;  %v4654_v60 = vcombine.high %v396_v55, %v404_v56  ;;  %v379_v61 = vld [vmem:[#allocation2 + $0x610] sm:$0xff] }
 0x108   :  { %1813 = vmatprep.subr.bf16.mxu1 %v4508_v62  ;;  %1856 = vmatprep.subr.bf16.mxu0 %v4510_v63  ;;  %v387_v62 = vld [vmem:[#allocation2 + $0x650] sm:$0xff]  ;;  %v380_v63 = vld [vmem:[#allocation2 + $0x618] sm:$0xff] }
 0x109   :  { %v4636_v4 = vcombine.high %v379_v61, %v387_v62  ;;  %v4635_v10 = vcombine.low %v379_v61, %v387_v62  ;;  %v4637_v11 = vcombine.low %v380_v63, %v388_v1  ;;  %v278_v61 = vld [vmem:[#allocation2 + $0x2e8] sm:$0xff] }
 0x10b   :  { %1814 = vmatpush1.bf16.msra.mxu1 %v4507_v5  ;;  %1857 = vmatpush1.bf16.msra.mxu0 %v4509_v6  ;;  %v4638_v5 = vcombine.high %v380_v63, %v388_v1  ;;  %v363_v6 = vld [vmem:[#allocation2 + $0x590] sm:$0xff] }
 0x10c   :  { %1815 = vmatprep.subr.bf16.mxu1 %v4492_v7  ;;  %1858 = vmatprep.subr.bf16.mxu0 %v4494_v8  ;;  %v371_v7 = vld [vmem:[#allocation2 + $0x5d0] sm:$0xff]  ;;  %v364_v8 = vld [vmem:[#allocation2 + $0x598] sm:$0xff] }
 0x10d   :  { %v4620_v12 = vcombine.high %v363_v6, %v371_v7  ;;  %v4619_v18 = vcombine.low %v363_v6, %v371_v7  ;;  %v4621_v19 = vcombine.low %v364_v8, %v372_v9  ;;  %v262_v6 = vld [vmem:[#allocation2 + $0x268] sm:$0xff] }
 0x10f   :  { %1816 = vmatpush1.bf16.msra.mxu1 %v4491_v13  ;;  %1859 = vmatpush1.bf16.msra.mxu0 %v4493_v14  ;;  %v4622_v13 = vcombine.high %v364_v8, %v372_v9  ;;  %v347_v14 = vld [vmem:[#allocation2 + $0x510] sm:$0xff] }
 0x110   :  { %1817 = vmatprep.subr.bf16.mxu1 %v4476_v15  ;;  %1860 = vmatprep.subr.bf16.mxu0 %v4478_v16  ;;  %v355_v15 = vld [vmem:[#allocation2 + $0x550] sm:$0xff]  ;;  %v348_v16 = vld [vmem:[#allocation2 + $0x518] sm:$0xff] }
 0x111   :  { %v4604_v20 = vcombine.high %v347_v14, %v355_v15  ;;  %v4603_v27 = vcombine.low %v347_v14, %v355_v15  ;;  %v4605_v28 = vcombine.low %v348_v16, %v356_v17  ;;  %v246_v14 = vld [vmem:[#allocation2 + $0x1e8] sm:$0xff] }
 0x113   :  { %1818 = vmatpush1.bf16.msra.mxu1 %v4475_v21  ;;  %1861 = vmatpush1.bf16.msra.mxu0 %v4477_v22  ;;  %v4606_v21 = vcombine.high %v348_v16, %v356_v17  ;;  %v331_v22 = vld [vmem:[#allocation2 + $0x490] sm:$0xff] }
 0x114   :  { %1819 = vmatprep.subr.bf16.mxu1 %v4460_v24  ;;  %1862 = vmatprep.subr.bf16.mxu0 %v4462_v25  ;;  %v339_v24 = vld [vmem:[#allocation2 + $0x4d0] sm:$0xff]  ;;  %v332_v25 = vld [vmem:[#allocation2 + $0x498] sm:$0xff] }
 0x115   :  { %v4588_v30 = vcombine.high %v331_v22, %v339_v24  ;;  %v4587_v36 = vcombine.low %v331_v22, %v339_v24  ;;  %v4589_v37 = vcombine.low %v332_v25, %v340_v26  ;;  %v230_v22 = vld [vmem:[#allocation2 + $0x168] sm:$0xff] }
 0x117   :  { %1820 = vmatpush1.bf16.msra.mxu1 %v4459_v31  ;;  %1863 = vmatpush1.bf16.msra.mxu0 %v4461_v32  ;;  %v4590_v31 = vcombine.high %v332_v25, %v340_v26  ;;  %v315_v32 = vld [vmem:[#allocation2 + $0x410] sm:$0xff] }
 0x118   :  { %1821 = vmatprep.subr.bf16.mxu1 %v4444_v33  ;;  %1864 = vmatprep.subr.bf16.mxu0 %v4446_v34  ;;  %v323_v33 = vld [vmem:[#allocation2 + $0x450] sm:$0xff]  ;;  %v316_v34 = vld [vmem:[#allocation2 + $0x418] sm:$0xff] }
 0x119   :  { %v4572_v38 = vcombine.high %v315_v32, %v323_v33  ;;  %v4571_v46 = vcombine.low %v315_v32, %v323_v33  ;;  %v4573_v47 = vcombine.low %v316_v34, %v324_v35  ;;  %v214_v32 = vld [vmem:[#allocation2 + $0xe8] sm:$0xff] }
 0x11b   :  { %1822 = vmatpush1.bf16.msra.mxu1 %v4443_v39  ;;  %1865 = vmatpush1.bf16.msra.mxu0 %v4445_v40  ;;  %v4574_v39 = vcombine.high %v316_v34, %v324_v35  ;;  %v301_v40 = vld [vmem:[#allocation2 + $0x3a0] sm:$0xff] }
 0x11c   :  { %1823 = vmatprep.subr.bf16.mxu1 %v4684_v41  ;;  %1866 = vmatprep.subr.bf16.mxu0 %v4686_v42  ;;  %v309_v41 = vld [vmem:[#allocation2 + $0x3e0] sm:$0xff]  ;;  %v302_v42 = vld [vmem:[#allocation2 + $0x3a8] sm:$0xff] }
 0x11d   :  { %v4560_v48 = vcombine.high %v301_v40, %v309_v41  ;;  %v4559_v54 = vcombine.low %v301_v40, %v309_v41  ;;  %v4561_v55 = vcombine.low %v302_v42, %v310_v43  ;;  %v198_v40 = vld [vmem:[#allocation2 + $0x68] sm:$0xff] }
 0x11f   :  { %1824 = vmatpush2.bf16.msra.mxu1 %v4683_v49  ;;  %1867 = vmatpush2.bf16.msra.mxu0 %v4685_v50  ;;  %v4562_v49 = vcombine.high %v302_v42, %v310_v43  ;;  %v285_v50 = vld [vmem:[#allocation2 + $0x320] sm:$0xff] }
 0x120   :  { %1825 = vmatprep.subr.bf16.mxu1 %v4668_v51  ;;  %1868 = vmatprep.subr.bf16.mxu0 %v4670_v52  ;;  %v293_v51 = vld [vmem:[#allocation2 + $0x360] sm:$0xff]  ;;  %v286_v52 = vld [vmem:[#allocation2 + $0x328] sm:$0xff] }
 0x121   :  { %v4544_v56 = vcombine.high %v285_v50, %v293_v51  ;;  %v4543_v62 = vcombine.low %v285_v50, %v293_v51  ;;  %v4545_v63 = vcombine.low %v286_v52, %v294_v53  ;;  %v438_v50 = vld [vmem:[#allocation2 + $0x7e8] sm:$0xff] }
 0x123   :  { %1826 = vmatpush2.bf16.msra.mxu1 %v4667_v57  ;;  %1869 = vmatpush2.bf16.msra.mxu0 %v4669_v58  ;;  %v4546_v57 = vcombine.high %v286_v52, %v294_v53  ;;  %v269_v58 = vld [vmem:[#allocation2 + $0x2a0] sm:$0xff] }
 0x124   :  { %1827 = vmatprep.subr.bf16.mxu1 %v4652_v59  ;;  %1870 = vmatprep.subr.bf16.mxu0 %v4654_v60  ;;  %v277_v59 = vld [vmem:[#allocation2 + $0x2e0] sm:$0xff]  ;;  %v270_v60 = vld [vmem:[#allocation2 + $0x2a8] sm:$0xff] }
 0x125   :  { %v4528_v1 = vcombine.high %v269_v58, %v277_v59  ;;  %v4527_v7 = vcombine.low %v269_v58, %v277_v59  ;;  %v4529_v8 = vcombine.low %v270_v60, %v278_v61  ;;  %v422_v58 = vld [vmem:[#allocation2 + $0x768] sm:$0xff] }
 0x127   :  { %1828 = vmatpush2.bf16.msra.mxu1 %v4651_v2  ;;  %1871 = vmatpush2.bf16.msra.mxu0 %v4653_v3  ;;  %v4530_v2 = vcombine.high %v270_v60, %v278_v61  ;;  %v253_v3 = vld [vmem:[#allocation2 + $0x220] sm:$0xff] }
 0x128   :  { %1829 = vmatprep.subr.bf16.mxu1 %v4636_v4  ;;  %1872 = vmatprep.subr.bf16.mxu0 %v4638_v5  ;;  %v261_v4 = vld [vmem:[#allocation2 + $0x260] sm:$0xff]  ;;  %v254_v5 = vld [vmem:[#allocation2 + $0x228] sm:$0xff] }
 0x129   :  { %v4512_v9 = vcombine.high %v253_v3, %v261_v4  ;;  %v4511_v15 = vcombine.low %v253_v3, %v261_v4  ;;  %v4513_v16 = vcombine.low %v254_v5, %v262_v6  ;;  %v406_v3 = vld [vmem:[#allocation2 + $0x6e8] sm:$0xff] }
 0x12b   :  { %1830 = vmatpush2.bf16.msra.mxu1 %v4635_v10  ;;  %1873 = vmatpush2.bf16.msra.mxu0 %v4637_v11  ;;  %v4514_v10 = vcombine.high %v254_v5, %v262_v6  ;;  %v237_v11 = vld [vmem:[#allocation2 + $0x1a0] sm:$0xff] }
 0x12c   :  { %1831 = vmatprep.subr.bf16.mxu1 %v4620_v12  ;;  %1874 = vmatprep.subr.bf16.mxu0 %v4622_v13  ;;  %v245_v12 = vld [vmem:[#allocation2 + $0x1e0] sm:$0xff]  ;;  %v238_v13 = vld [vmem:[#allocation2 + $0x1a8] sm:$0xff] }
 0x12d   :  { %v4496_v17 = vcombine.high %v237_v11, %v245_v12  ;;  %v4495_v24 = vcombine.low %v237_v11, %v245_v12  ;;  %v4497_v25 = vcombine.low %v238_v13, %v246_v14  ;;  %v390_v11 = vld [vmem:[#allocation2 + $0x668] sm:$0xff] }
 0x12f   :  { %1832 = vmatpush2.bf16.msra.mxu1 %v4619_v18  ;;  %1875 = vmatpush2.bf16.msra.mxu0 %v4621_v19  ;;  %v4498_v18 = vcombine.high %v238_v13, %v246_v14  ;;  %v221_v19 = vld [vmem:[#allocation2 + $0x120] sm:$0xff] }
 0x130   :  { %1833 = vmatprep.subr.bf16.mxu1 %v4604_v20  ;;  %1876 = vmatprep.subr.bf16.mxu0 %v4606_v21  ;;  %v229_v20 = vld [vmem:[#allocation2 + $0x160] sm:$0xff]  ;;  %v222_v21 = vld [vmem:[#allocation2 + $0x128] sm:$0xff] }
 0x131   :  { %v4480_v26 = vcombine.high %v221_v19, %v229_v20  ;;  %v4479_v33 = vcombine.low %v221_v19, %v229_v20  ;;  %v4481_v34 = vcombine.low %v222_v21, %v230_v22  ;;  %v374_v19 = vld [vmem:[#allocation2 + $0x5e8] sm:$0xff] }
 0x133   :  { %1834 = vmatpush2.bf16.msra.mxu1 %v4603_v27  ;;  %1877 = vmatpush2.bf16.msra.mxu0 %v4605_v28  ;;  %v4482_v27 = vcombine.high %v222_v21, %v230_v22  ;;  %v205_v28 = vld [vmem:[#allocation2 + $0xa0] sm:$0xff] }
 0x134   :  { %1835 = vmatprep.subr.bf16.mxu1 %v4588_v30  ;;  %1878 = vmatprep.subr.bf16.mxu0 %v4590_v31  ;;  %v213_v30 = vld [vmem:[#allocation2 + $0xe0] sm:$0xff]  ;;  %v206_v31 = vld [vmem:[#allocation2 + $0xa8] sm:$0xff] }
 0x135   :  { %v4464_v35 = vcombine.high %v205_v28, %v213_v30  ;;  %v4463_v41 = vcombine.low %v205_v28, %v213_v30  ;;  %v4465_v42 = vcombine.low %v206_v31, %v214_v32  ;;  %v358_v28 = vld [vmem:[#allocation2 + $0x568] sm:$0xff] }
 0x137   :  { %1836 = vmatpush2.bf16.msra.mxu1 %v4587_v36  ;;  %1879 = vmatpush2.bf16.msra.mxu0 %v4589_v37  ;;  %v4466_v36 = vcombine.high %v206_v31, %v214_v32  ;;  %v189_v37 = vld [vmem:[#allocation2 + $0x20] sm:$0xff] }
 0x138   :  { %1837 = vmatprep.subr.bf16.mxu1 %v4572_v38  ;;  %1880 = vmatprep.subr.bf16.mxu0 %v4574_v39  ;;  %v197_v38 = vld [vmem:[#allocation2 + $0x60] sm:$0xff]  ;;  %v190_v39 = vld [vmem:[#allocation2 + $0x28] sm:$0xff] }
 0x139   :  { %v4448_v43 = vcombine.high %v189_v37, %v197_v38  ;;  %v4447_v51 = vcombine.low %v189_v37, %v197_v38  ;;  %v4449_v52 = vcombine.low %v190_v39, %v198_v40  ;;  %v342_v37 = vld [vmem:[#allocation2 + $0x4e8] sm:$0xff] }
 0x13b   :  { %1838 = vmatpush2.bf16.msra.mxu1 %v4571_v46  ;;  %1881 = vmatpush2.bf16.msra.mxu0 %v4573_v47  ;;  %v4450_v46 = vcombine.high %v190_v39, %v198_v40  ;;  %v429_v47 = vld [vmem:[#allocation2 + $0x7a0] sm:$0xff] }
 0x13c   :  { %1893 = vmatprep.subr.bf16.mxu1 %v4560_v48  ;;  %1936 = vmatprep.subr.bf16.mxu0 %v4562_v49  ;;  %v437_v48 = vld [vmem:[#allocation2 + $0x7e0] sm:$0xff]  ;;  %v430_v49 = vld [vmem:[#allocation2 + $0x7a8] sm:$0xff] }
 0x13d   :  { %v4688_v53 = vcombine.high %v429_v47, %v437_v48  ;;  %v4687_v59 = vcombine.low %v429_v47, %v437_v48  ;;  %v4689_v60 = vcombine.low %v430_v49, %v438_v50  ;;  %v326_v47 = vld [vmem:[#allocation2 + $0x468] sm:$0xff] }
 0x13e   :  { %1840 = vmatmul.mubr.bf16.vlgmr.msra.gmra.mxu1 %v5561_v45  ;;  %1883 = vmatmul.mubr.bf16.vlgmr.msra.gmra.mxu0 %v5561_v45 }
 0x13f   :  { %1894 = vmatpush1.bf16.msra.mxu1 %v4559_v54  ;;  %1925 = vmatprep.mubr.bf16.mxu1 %v5558_v44  ;;  %v4690_v54 = vcombine.high %v430_v49, %v438_v50 }
 0x140   :  { %1937 = vmatpush1.bf16.msra.mxu0 %v4561_v55  ;;  %1968 = vmatprep.mubr.bf16.mxu0 %v5558_v44  ;;  %v413_v55 = vld [vmem:[#allocation2 + $0x720] sm:$0xff] }
 0x141   :  { %1895 = vmatprep.subr.bf16.mxu1 %v4544_v56  ;;  %1938 = vmatprep.subr.bf16.mxu0 %v4546_v57  ;;  %v421_v56 = vld [vmem:[#allocation2 + $0x760] sm:$0xff]  ;;  %v414_v57 = vld [vmem:[#allocation2 + $0x728] sm:$0xff] }
 0x142   :  { %v4672_v61 = vcombine.high %v413_v55, %v421_v56  ;;  %v4671_v4 = vcombine.low %v413_v55, %v421_v56  ;;  %v4673_v5 = vcombine.low %v414_v57, %v422_v58  ;;  %v312_v55 = vld [vmem:[#allocation2 + $0x3f8] sm:$0xff] }
 0x143   :  { %1896 = vmatpush1.bf16.msra.mxu1 %v4543_v62  ;;  %v4674_v62 = vcombine.high %v414_v57, %v422_v58 }
 0x144   :  { %1939 = vmatpush1.bf16.msra.mxu0 %v4545_v63  ;;  %1897 = vmatprep.subr.bf16.mxu1 %v4528_v1  ;;  %v397_v63 = vld [vmem:[#allocation2 + $0x6a0] sm:$0xff] }
 0x145   :  { %1940 = vmatprep.subr.bf16.mxu0 %v4530_v2  ;;  %v405_v1 = vld [vmem:[#allocation2 + $0x6e0] sm:$0xff]  ;;  %v398_v2 = vld [vmem:[#allocation2 + $0x6a8] sm:$0xff] }
 0x146   :  { %v4656_v6 = vcombine.high %v397_v63, %v405_v1  ;;  %v4655_v12 = vcombine.low %v397_v63, %v405_v1  ;;  %v4657_v13 = vcombine.low %v398_v2, %v406_v3  ;;  %v288_v63 = vld [vmem:[#allocation2 + $0x338] sm:$0xff] }
 0x147   :  { %1898 = vmatpush1.bf16.msra.mxu1 %v4527_v7  ;;  %v4658_v7 = vcombine.high %v398_v2, %v406_v3  ;;  %v296_v1 = vld [vmem:[#allocation2 + $0x378] sm:$0xff] }
 0x148   :  { %1941 = vmatpush1.bf16.msra.mxu0 %v4529_v8  ;;  %1899 = vmatprep.subr.bf16.mxu1 %v4512_v9  ;;  %v381_v8 = vld [vmem:[#allocation2 + $0x620] sm:$0xff] }
 0x149   :  { %1942 = vmatprep.subr.bf16.mxu0 %v4514_v10  ;;  %v389_v9 = vld [vmem:[#allocation2 + $0x660] sm:$0xff]  ;;  %v382_v10 = vld [vmem:[#allocation2 + $0x628] sm:$0xff] }
 0x14a   :  { %v4640_v14 = vcombine.high %v381_v8, %v389_v9  ;;  %v4639_v20 = vcombine.low %v381_v8, %v389_v9  ;;  %v4641_v21 = vcombine.low %v382_v10, %v390_v11  ;;  %v280_v8 = vld [vmem:[#allocation2 + $0x2f8] sm:$0xff] }
 0x14b   :  { %1900 = vmatpush1.bf16.msra.mxu1 %v4511_v15  ;;  %v4642_v15 = vcombine.high %v382_v10, %v390_v11  ;;  %v4549_v10 = vcombine.low %v288_v63, %v296_v1 }
 0x14c   :  { %1943 = vmatpush1.bf16.msra.mxu0 %v4513_v16  ;;  %1901 = vmatprep.subr.bf16.mxu1 %v4496_v17  ;;  %v365_v16 = vld [vmem:[#allocation2 + $0x5a0] sm:$0xff] }
 0x14d   :  { %1944 = vmatprep.subr.bf16.mxu0 %v4498_v18  ;;  %v373_v17 = vld [vmem:[#allocation2 + $0x5e0] sm:$0xff]  ;;  %v366_v18 = vld [vmem:[#allocation2 + $0x5a8] sm:$0xff] }
 0x14e   :  { %v4624_v22 = vcombine.high %v365_v16, %v373_v17  ;;  %v4623_v30 = vcombine.low %v365_v16, %v373_v17  ;;  %v4625_v31 = vcombine.low %v366_v18, %v374_v19  ;;  %v264_v16 = vld [vmem:[#allocation2 + $0x278] sm:$0xff] }
 0x14f   :  { %1902 = vmatpush1.bf16.msra.mxu1 %v4495_v24  ;;  %v4626_v24 = vcombine.high %v366_v18, %v374_v19 }
 0x150   :  { %1945 = vmatpush1.bf16.msra.mxu0 %v4497_v25  ;;  %1903 = vmatprep.subr.bf16.mxu1 %v4480_v26  ;;  %v349_v25 = vld [vmem:[#allocation2 + $0x520] sm:$0xff] }
 0x151   :  { %1946 = vmatprep.subr.bf16.mxu0 %v4482_v27  ;;  %v357_v26 = vld [vmem:[#allocation2 + $0x560] sm:$0xff]  ;;  %v350_v27 = vld [vmem:[#allocation2 + $0x528] sm:$0xff] }
 0x152   :  { %v4608_v32 = vcombine.high %v349_v25, %v357_v26  ;;  %v4607_v38 = vcombine.low %v349_v25, %v357_v26  ;;  %v4609_v39 = vcombine.low %v350_v27, %v358_v28  ;;  %v248_v25 = vld [vmem:[#allocation2 + $0x1f8] sm:$0xff] }
 0x153   :  { %1904 = vmatpush1.bf16.msra.mxu1 %v4479_v33  ;;  %v4610_v33 = vcombine.high %v350_v27, %v358_v28 }
 0x154   :  { %1947 = vmatpush1.bf16.msra.mxu0 %v4481_v34  ;;  %1905 = vmatprep.subr.bf16.mxu1 %v4464_v35  ;;  %v333_v34 = vld [vmem:[#allocation2 + $0x4a0] sm:$0xff] }
 0x155   :  { %1948 = vmatprep.subr.bf16.mxu0 %v4466_v36  ;;  %v341_v35 = vld [vmem:[#allocation2 + $0x4e0] sm:$0xff]  ;;  %v334_v36 = vld [vmem:[#allocation2 + $0x4a8] sm:$0xff] }
 0x156   :  { %v4592_v40 = vcombine.high %v333_v34, %v341_v35  ;;  %v4591_v48 = vcombine.low %v333_v34, %v341_v35  ;;  %v4593_v49 = vcombine.low %v334_v36, %v342_v37 }
 0x157   :  { %1906 = vmatpush1.bf16.msra.mxu1 %v4463_v41  ;;  %v4594_v41 = vcombine.high %v334_v36, %v342_v37 }
 0x158   :  { %1949 = vmatpush1.bf16.msra.mxu0 %v4465_v42  ;;  %1907 = vmatprep.subr.bf16.mxu1 %v4448_v43  ;;  %v317_v42 = vld [vmem:[#allocation2 + $0x420] sm:$0xff] }
 0x159   :  { %1950 = vmatprep.subr.bf16.mxu0 %v4450_v46  ;;  %v325_v43 = vld [vmem:[#allocation2 + $0x460] sm:$0xff]  ;;  %v318_v46 = vld [vmem:[#allocation2 + $0x428] sm:$0xff] }
 0x15a   :  { %v4576_v50 = vcombine.high %v317_v42, %v325_v43  ;;  %v4575_v56 = vcombine.low %v317_v42, %v325_v43  ;;  %v4577_v57 = vcombine.low %v318_v46, %v326_v47 }
 0x15b   :  { %1908 = vmatpush1.bf16.msra.mxu1 %v4447_v51  ;;  %v4578_v51 = vcombine.high %v318_v46, %v326_v47 }
 0x15c   :  { %1951 = vmatpush1.bf16.msra.mxu0 %v4449_v52  ;;  %1909 = vmatprep.subr.bf16.mxu1 %v4688_v53  ;;  %v303_v52 = vld [vmem:[#allocation2 + $0x3b0] sm:$0xff] }
 0x15d   :  { %1952 = vmatprep.subr.bf16.mxu0 %v4690_v54  ;;  %v311_v53 = vld [vmem:[#allocation2 + $0x3f0] sm:$0xff]  ;;  %v304_v54 = vld [vmem:[#allocation2 + $0x3b8] sm:$0xff] }
 0x15e   :  { %v4564_v58 = vcombine.high %v303_v52, %v311_v53  ;;  %v4565_v2 = vcombine.low %v304_v54, %v312_v55 }
 0x15f   :  { %1910 = vmatpush2.bf16.msra.mxu1 %v4687_v59  ;;  %v4566_v59 = vcombine.high %v304_v54, %v312_v55 }
 0x160   :  { %1953 = vmatpush2.bf16.msra.mxu0 %v4689_v60  ;;  %1911 = vmatprep.subr.bf16.mxu1 %v4672_v61  ;;  %v287_v60 = vld [vmem:[#allocation2 + $0x330] sm:$0xff] }
 0x161   :  { %1954 = vmatprep.subr.bf16.mxu0 %v4674_v62  ;;  %v295_v61 = vld [vmem:[#allocation2 + $0x370] sm:$0xff]  ;;  %v4563_v62 = vcombine.low %v303_v52, %v311_v53 }
 0x162   :  { %v4548_v3 = vcombine.high %v287_v60, %v295_v61  ;;  %v4547_v9 = vcombine.low %v287_v60, %v295_v61 }
 0x163   :  { %1912 = vmatpush2.bf16.msra.mxu1 %v4671_v4  ;;  %v271_v4 = vld [vmem:[#allocation2 + $0x2b0] sm:$0xff] }
 0x164   :  { %1955 = vmatpush2.bf16.msra.mxu0 %v4673_v5  ;;  %1913 = vmatprep.subr.bf16.mxu1 %v4656_v6  ;;  %v279_v5 = vld [vmem:[#allocation2 + $0x2f0] sm:$0xff]  ;;  %v4550_v6 = vcombine.high %v288_v63, %v296_v1 }
 0x165   :  { %1956 = vmatprep.subr.bf16.mxu0 %v4658_v7  ;;  %v272_v7 = vld [vmem:[#allocation2 + $0x2b8] sm:$0xff]  ;;  %v4532_v11 = vcombine.high %v271_v4, %v279_v5  ;;  %v4531_v17 = vcombine.low %v271_v4, %v279_v5  ;;  %v415_v1 = vld [vmem:[#allocation2 + $0x730] sm:$0xff] }
 0x166   :  { %v4533_v18 = vcombine.low %v272_v7, %v280_v8  ;;  %v424_v4 = vld [vmem:[#allocation2 + $0x778] sm:$0xff] }
 0x167   :  { %1914 = vmatpush2.bf16.msra.mxu1 %v4655_v12  ;;  %v4534_v12 = vcombine.high %v272_v7, %v280_v8 }
 0x168   :  { %1957 = vmatpush2.bf16.msra.mxu0 %v4657_v13  ;;  %1915 = vmatprep.subr.bf16.mxu1 %v4640_v14  ;;  %v255_v13 = vld [vmem:[#allocation2 + $0x230] sm:$0xff] }
 0x169   :  { %1958 = vmatprep.subr.bf16.mxu0 %v4642_v15  ;;  %v263_v14 = vld [vmem:[#allocation2 + $0x270] sm:$0xff]  ;;  %v256_v15 = vld [vmem:[#allocation2 + $0x238] sm:$0xff] }
 0x16a   :  { %v4516_v19 = vcombine.high %v255_v13, %v263_v14  ;;  %v4517_v26 = vcombine.low %v256_v15, %v264_v16 }
 0x16b   :  { %1916 = vmatpush2.bf16.msra.mxu1 %v4639_v20  ;;  %v4518_v20 = vcombine.high %v256_v15, %v264_v16 }
 0x16c   :  { %1959 = vmatpush2.bf16.msra.mxu0 %v4641_v21  ;;  %1917 = vmatprep.subr.bf16.mxu1 %v4624_v22  ;;  %v239_v21 = vld [vmem:[#allocation2 + $0x1b0] sm:$0xff] }
 0x16d   :  { %1960 = vmatprep.subr.bf16.mxu0 %v4626_v24  ;;  %v247_v22 = vld [vmem:[#allocation2 + $0x1f0] sm:$0xff]  ;;  %v240_v24 = vld [vmem:[#allocation2 + $0x1b8] sm:$0xff] }
 0x16e   :  { %v4500_v27 = vcombine.high %v239_v21, %v247_v22  ;;  %v4502_v28 = vcombine.high %v240_v24, %v248_v25  ;;  %v4499_v34 = vcombine.low %v239_v21, %v247_v22  ;;  %v4501_v35 = vcombine.low %v240_v24, %v248_v25 }
 0x16f   :  { %1918 = vmatpush2.bf16.msra.mxu1 %v4623_v30  ;;  %v223_v30 = vld [vmem:[#allocation2 + $0x130] sm:$0xff] }
 0x170   :  { %1961 = vmatpush2.bf16.msra.mxu0 %v4625_v31  ;;  %1919 = vmatprep.subr.bf16.mxu1 %v4608_v32  ;;  %v231_v31 = vld [vmem:[#allocation2 + $0x170] sm:$0xff]  ;;  %v224_v32 = vld [vmem:[#allocation2 + $0x138] sm:$0xff] }
 0x171   :  { %1962 = vmatprep.subr.bf16.mxu0 %v4610_v33  ;;  %v232_v33 = vld [vmem:[#allocation2 + $0x178] sm:$0xff]  ;;  %v4484_v36 = vcombine.high %v223_v30, %v231_v31  ;;  %v4483_v42 = vcombine.low %v223_v30, %v231_v31 }
 0x172   :  { %v4486_v37 = vcombine.high %v224_v32, %v232_v33  ;;  %v4485_v43 = vcombine.low %v224_v32, %v232_v33 }
 0x173   :  { %1920 = vmatpush2.bf16.msra.mxu1 %v4607_v38  ;;  %v207_v38 = vld [vmem:[#allocation2 + $0xb0] sm:$0xff] }
 0x174   :  { %1963 = vmatpush2.bf16.msra.mxu0 %v4609_v39  ;;  %1921 = vmatprep.subr.bf16.mxu1 %v4592_v40  ;;  %v215_v39 = vld [vmem:[#allocation2 + $0xf0] sm:$0xff]  ;;  %v208_v40 = vld [vmem:[#allocation2 + $0xb8] sm:$0xff] }
 0x175   :  { %1964 = vmatprep.subr.bf16.mxu0 %v4594_v41  ;;  %v216_v41 = vld [vmem:[#allocation2 + $0xf8] sm:$0xff]  ;;  %v4468_v46 = vcombine.high %v207_v38, %v215_v39  ;;  %v4467_v52 = vcombine.low %v207_v38, %v215_v39 }
 0x176   :  { %v4470_v47 = vcombine.high %v208_v40, %v216_v41  ;;  %v4469_v53 = vcombine.low %v208_v40, %v216_v41  ;;  %v5580_v41 = vld [vmem:[%s5729_s4] sm:$0xff] }
 0x177   :  { %1922 = vmatpush2.bf16.msra.mxu1 %v4591_v48  ;;  %v191_v48 = vld [vmem:[#allocation2 + $0x30] sm:$0xff] }
 0x178   :  { %1965 = vmatpush2.bf16.msra.mxu0 %v4593_v49  ;;  %1923 = vmatprep.subr.bf16.mxu1 %v4576_v50  ;;  %v199_v49 = vld [vmem:[#allocation2 + $0x70] sm:$0xff]  ;;  %v192_v50 = vld [vmem:[#allocation2 + $0x38] sm:$0xff] }
 0x179   :  { %1966 = vmatprep.subr.bf16.mxu0 %v4578_v51  ;;  %v200_v51 = vld [vmem:[#allocation2 + $0x78] sm:$0xff]  ;;  %v4452_v54 = vcombine.high %v191_v48, %v199_v49  ;;  %v4451_v60 = vcombine.low %v191_v48, %v199_v49 }
 0x17a   :  { %v4454_v55 = vcombine.high %v192_v50, %v200_v51  ;;  %v4453_v61 = vcombine.low %v192_v50, %v200_v51  ;;  %v344_v48 = vld [vmem:[#allocation2 + $0x4f8] sm:$0xff]  ;;  %v5584_v50 = vrot.slane %v5580_v41, %v5549_v23 }
 0x17b   :  { %1924 = vmatpush2.bf16.msra.mxu1 %v4575_v56  ;;  %v431_v56 = vld [vmem:[#allocation2 + $0x7b0] sm:$0xff] }
 0x17c   :  { %1967 = vmatpush2.bf16.msra.mxu0 %v4577_v57  ;;  %1979 = vmatprep.subr.bf16.mxu1 %v4564_v58  ;;  %v439_v57 = vld [vmem:[#allocation2 + $0x7f0] sm:$0xff]  ;;  %v432_v58 = vld [vmem:[#allocation2 + $0x7b8] sm:$0xff] }
 0x17d   :  { %2022 = vmatprep.subr.bf16.mxu0 %v4566_v59  ;;  %v440_v59 = vld [vmem:[#allocation2 + $0x7f8] sm:$0xff]  ;;  %v4691_v5 = vcombine.low %v431_v56, %v439_v57 }
 0x17e   :  { %1926 = vmatmul.mubr.bf16.vlgmr.msra.gmra.mxu1 %v5561_v45  ;;  %v4694_v63 = vcombine.high %v432_v58, %v440_v59 }
 0x17f   :  { %1969 = vmatmul.mubr.bf16.vlgmr.msra.gmra.mxu0 %v5561_v45  ;;  %1980 = vmatpush1.bf16.msra.mxu1 %v4563_v62  ;;  %v4692_v62 = vcombine.high %v431_v56, %v439_v57  ;;  %v320_v56 = vld [vmem:[#allocation2 + $0x438] sm:$0xff] }
 0x180   :  { %2011 = vmatprep.mubr.bf16.mxu1 %v5558_v44  ;;  %2023 = vmatpush1.bf16.msra.mxu0 %v4565_v2  ;;  %v423_v2 = vld [vmem:[#allocation2 + $0x770] sm:$0xff]  ;;  %v328_v57 = vld [vmem:[#allocation2 + $0x478] sm:$0xff] }
 0x181   :  { %2054 = vmatprep.mubr.bf16.mxu0 %v5558_v44  ;;  %1981 = vmatprep.subr.bf16.mxu1 %v4548_v3  ;;  %v4515_v44 = vcombine.low %v255_v13, %v263_v14  ;;  %v416_v3 = vld [vmem:[#allocation2 + $0x738] sm:$0xff]  ;;  %v4676_v7 = vcombine.high %v415_v1, %v423_v2  ;;  %v4675_v13 = vcombine.low %v415_v1, %v423_v2 }
 0x182   :  { %2024 = vmatprep.subr.bf16.mxu0 %v4550_v6  ;;  %v4693_v6 = vcombine.low %v432_v58, %v440_v59  ;;  %v4678_v8 = vcombine.high %v416_v3, %v424_v4  ;;  %v4677_v14 = vcombine.low %v416_v3, %v424_v4  ;;  %v2100_v59 = vcombine.high %v5584_v50, %v5584_v50  ;;  %v5003_v3 = vld [vmem:[#allocation4 + $0x74] ss:$8 sps:$4 sm:$0xff]  }
 0x183   :  { %1982 = vmatpush1.bf16.msra.mxu1 %v4547_v9  ;;  %v399_v9 = vld [vmem:[#allocation2 + $0x6b0] sm:$0xff]  ;;  %v4581_v2 = vcombine.low %v320_v56, %v328_v57 }
 0x184   :  { %2025 = vmatpush1.bf16.msra.mxu0 %v4549_v10  ;;  %1983 = vmatprep.subr.bf16.mxu1 %v4532_v11  ;;  %v407_v10 = vld [vmem:[#allocation2 + $0x6f0] sm:$0xff]  ;;  %v400_v11 = vld [vmem:[#allocation2 + $0x6b8] sm:$0xff]  ;;  %v2122_v1 = vrot.slane %v2100_v59, %v5549_v23 }
 0x185   :  { %2026 = vmatprep.subr.bf16.mxu0 %v4534_v12  ;;  %v408_v12 = vld [vmem:[#allocation2 + $0x6f8] sm:$0xff]  ;;  %v4660_v15 = vcombine.high %v399_v9, %v407_v10  ;;  %v4659_v21 = vcombine.low %v399_v9, %v407_v10  ;;  %v5012_v9 = vld [vmem:[#allocation4 + $0x164] ss:$8 sps:$4 sm:$0xff]  }
 0x186   :  { %v4662_v16 = vcombine.high %v400_v11, %v408_v12  ;;  %v4661_v22 = vcombine.low %v400_v11, %v408_v12  ;;  %v5006_v4 = vld [vmem:[#allocation4 + $0x174] ss:$8 sps:$4 sm:$0xff]   ;;  %v5007_v12 = vld [vmem:[#allocation4 + $0x60] ss:$8 sps:$4 sm:$0xff]  }
 0x187   :  { %1984 = vmatpush1.bf16.msra.mxu1 %v4531_v17  ;;  %v383_v17 = vld [vmem:[#allocation2 + $0x630] sm:$0xff] }
 0x188   :  { %2027 = vmatpush1.bf16.msra.mxu0 %v4533_v18  ;;  %1985 = vmatprep.subr.bf16.mxu1 %v4516_v19  ;;  %v391_v18 = vld [vmem:[#allocation2 + $0x670] sm:$0xff]  ;;  %v384_v19 = vld [vmem:[#allocation2 + $0x638] sm:$0xff] }
 0x189   :  { %2028 = vmatprep.subr.bf16.mxu0 %v4518_v20  ;;  %v392_v20 = vld [vmem:[#allocation2 + $0x678] sm:$0xff]  ;;  %v4644_v24 = vcombine.high %v383_v17, %v391_v18  ;;  %v4643_v30 = vcombine.low %v383_v17, %v391_v18  ;;  %v5010_v17 = vld [vmem:[#allocation4 + $0x160] ss:$8 sps:$4 sm:$0xff]  }
 0x18a   :  { %v4646_v25 = vcombine.high %v384_v19, %v392_v20  ;;  %v4645_v31 = vcombine.low %v384_v19, %v392_v20  ;;  %v5015_v18 = vld [vmem:[#allocation4 + $0x54] ss:$8 sps:$4 sm:$0xff]  }
 0x18b   :  { %1986 = vmatpush1.bf16.msra.mxu1 %v4515_v44  ;;  %v367_v44 = vld [vmem:[#allocation2 + $0x5b0] sm:$0xff] }
 0x18c   :  { %2029 = vmatpush1.bf16.msra.mxu0 %v4517_v26  ;;  %1987 = vmatprep.subr.bf16.mxu1 %v4500_v27  ;;  %v375_v26 = vld [vmem:[#allocation2 + $0x5f0] sm:$0xff]  ;;  %v368_v27 = vld [vmem:[#allocation2 + $0x5b8] sm:$0xff] }
 0x18d   :  { %2030 = vmatprep.subr.bf16.mxu0 %v4502_v28  ;;  %v376_v28 = vld [vmem:[#allocation2 + $0x5f8] sm:$0xff]  ;;  %v4628_v32 = vcombine.high %v367_v44, %v375_v26  ;;  %v4627_v38 = vcombine.low %v367_v44, %v375_v26 }
 0x18e   :  { %v4630_v33 = vcombine.high %v368_v27, %v376_v28  ;;  %v4629_v39 = vcombine.low %v368_v27, %v376_v28  ;;  %v5018_v19 = vld [vmem:[#allocation4 + $0x154] ss:$8 sps:$4 sm:$0xff]   ;;  %v5016_v26 = vld [vmem:[#allocation4 + $0x150] ss:$8 sps:$4 sm:$0xff]   ;;  %v5021_v27 = vld [vmem:[#allocation4 + $0x44] ss:$8 sps:$4 sm:$0xff]  }
 0x18f   :  { %1988 = vmatpush1.bf16.msra.mxu1 %v4499_v34  ;;  %v351_v34 = vld [vmem:[#allocation2 + $0x530] sm:$0xff] }
 0x190   :  { %2031 = vmatpush1.bf16.msra.mxu0 %v4501_v35  ;;  %1989 = vmatprep.subr.bf16.mxu1 %v4484_v36  ;;  %v359_v35 = vld [vmem:[#allocation2 + $0x570] sm:$0xff]  ;;  %v352_v36 = vld [vmem:[#allocation2 + $0x538] sm:$0xff] }
 0x191   :  { %2032 = vmatprep.subr.bf16.mxu0 %v4486_v37  ;;  %v360_v37 = vld [vmem:[#allocation2 + $0x578] sm:$0xff]  ;;  %v4612_v40 = vcombine.high %v351_v34, %v359_v35  ;;  %v4611_v49 = vcombine.low %v351_v34, %v359_v35  ;;  %v5019_v34 = vld [vmem:[#allocation4 + $0x40] ss:$8 sps:$4 sm:$0xff]  }
 0x192   :  { %v4613_v51 = vcombine.low %v352_v36, %v360_v37  ;;  %v5022_v35 = vld [vmem:[#allocation4 + $0x140] ss:$8 sps:$4 sm:$0xff]   ;;  %v5054_v59 = vld [vmem:[#allocation4 + $0x1f4] ss:$8 sps:$4 sm:$0xff]  }
 0x193   :  { %1990 = vmatpush1.bf16.msra.mxu1 %v4483_v42  ;;  %v4614_v42 = vcombine.high %v352_v36, %v360_v37 }
 0x194   :  { %2033 = vmatpush1.bf16.msra.mxu0 %v4485_v43  ;;  %1991 = vmatprep.subr.bf16.mxu1 %v4468_v46  ;;  %v335_v43 = vld [vmem:[#allocation2 + $0x4b0] sm:$0xff] }
 0x195   :  { %2034 = vmatprep.subr.bf16.mxu0 %v4470_v47  ;;  %v343_v46 = vld [vmem:[#allocation2 + $0x4f0] sm:$0xff]  ;;  %v336_v47 = vld [vmem:[#allocation2 + $0x4b8] sm:$0xff] }
 0x196   :  { %v4595_v58 = vcombine.low %v335_v43, %v343_v46 }
 0x197   :  { %1992 = vmatpush1.bf16.msra.mxu1 %v4467_v52  ;;  %v4596_v52 = vcombine.high %v335_v43, %v343_v46  ;;  %v5033_v43 = vld [vmem:[#allocation4 + $0x24] ss:$8 sps:$4 sm:$0xff]  }
 0x198   :  { %2035 = vmatpush1.bf16.msra.mxu0 %v4469_v53  ;;  %1993 = vmatprep.subr.bf16.mxu1 %v4452_v54  ;;  %v4598_v53 = vcombine.high %v336_v47, %v344_v48  ;;  %v319_v54 = vld [vmem:[#allocation2 + $0x430] sm:$0xff]  ;;  %v5036_v46 = vld [vmem:[#allocation4 + $0x124] ss:$8 sps:$4 sm:$0xff]  }
 0x199   :  { %2036 = vmatprep.subr.bf16.mxu0 %v4454_v55  ;;  %v327_v55 = vld [vmem:[#allocation2 + $0x470] sm:$0xff] }
 0x19b   :  { %1994 = vmatpush1.bf16.msra.mxu1 %v4451_v60  ;;  %v4597_v60 = vcombine.low %v336_v47, %v344_v48  ;;  %v5031_v47 = vld [vmem:[#allocation4 + $0x20] ss:$8 sps:$4 sm:$0xff]  }
 0x19c   :  { %2037 = vmatpush1.bf16.msra.mxu0 %v4453_v61  ;;  %1995 = vmatprep.subr.bf16.mxu1 %v4692_v62  ;;  %v4580_v61 = vcombine.high %v319_v54, %v327_v55  ;;  %v4582_v62 = vcombine.high %v320_v56, %v328_v57  ;;  %v5034_v48 = vld [vmem:[#allocation4 + $0x120] ss:$8 sps:$4 sm:$0xff]  }
 0x19d   :  { %2038 = vmatprep.subr.bf16.mxu0 %v4694_v63  ;;  %v4579_v63 = vcombine.low %v319_v54, %v327_v55  ;;  %v5045_v54 = vld [vmem:[#allocation4 + $0x4] ss:$8 sps:$4 sm:$0xff]   ;;  %v5043_v56 = vld [vmem:[#allocation4] ss:$8 sps:$4 sm:$0xff]  }
 0x19e   :  { %v5048_v55 = vld [vmem:[#allocation4 + $0x104] ss:$8 sps:$4 sm:$0xff]   ;;  %v5046_v57 = vld [vmem:[#allocation4 + $0x100] ss:$8 sps:$4 sm:$0xff]  }
 0x19f   :  { %1996 = vmatpush2.bf16.msra.mxu1 %v4691_v5  ;;  %v5001_v5 = vld [vmem:[#allocation4 + $0x70] ss:$8 sps:$4 sm:$0xff]  }
 0x1a0   :  { %2039 = vmatpush2.bf16.msra.mxu0 %v4693_v6  ;;  %1997 = vmatprep.subr.bf16.mxu1 %v4676_v7  ;;  %v2132_v6 = vcombine.high %v2122_v1, %v2122_v1  ;;  %v5004_v7 = vld [vmem:[#allocation4 + $0x170] ss:$8 sps:$4 sm:$0xff]  }
 0x1a1   :  { %2040 = vmatprep.subr.bf16.mxu0 %v4678_v8  ;;  %v5009_v8 = vld [vmem:[#allocation4 + $0x64] ss:$8 sps:$4 sm:$0xff]  }
 0x1a3   :  { %1998 = vmatpush2.bf16.msra.mxu1 %v4675_v13  ;;  %v2191_v13 = vpack.i.b16 %v2122_v1, %v2122_v1  ;;  %v5055_v1 = vld [vmem:[#allocation4 + $0xe0] ss:$8 sps:$4 sm:$0xff]  }
 0x1a4   :  { %2041 = vmatpush2.bf16.msra.mxu0 %v4677_v14  ;;  %1999 = vmatprep.subr.bf16.mxu1 %v4660_v15  ;;  %v2205_v14 = vpack.i.b16 %v2132_v6, %v2132_v6  ;;  %v5064_v6 = vld [vmem:[#allocation4 + $0x1d0] ss:$8 sps:$4 sm:$0xff]  }
 0x1a5   :  { %2042 = vmatprep.subr.bf16.mxu0 %v4662_v16 }
 0x1a7   :  { %2000 = vmatpush2.bf16.msra.mxu1 %v4659_v21 }
 0x1a8   :  { %2043 = vmatpush2.bf16.msra.mxu0 %v4661_v22  ;;  %2001 = vmatprep.subr.bf16.mxu1 %v4644_v24  ;;  %v2196_v22 = vrot.slane %v2191_v13, %v5553_v29  ;;  %v5013_v24 = vld [vmem:[#allocation4 + $0x50] ss:$8 sps:$4 sm:$0xff]   ;;  %v5075_v13 = vld [vmem:[#allocation4 + $0xb4] ss:$8 sps:$4 sm:$0xff]  }
 0x1a9   :  { %2044 = vmatprep.subr.bf16.mxu0 %v4646_v25 }
 0x1ab   :  { %2002 = vmatpush2.bf16.msra.mxu1 %v4643_v30 }
 0x1ac   :  { %2045 = vmatpush2.bf16.msra.mxu0 %v4645_v31  ;;  %2003 = vmatprep.subr.bf16.mxu1 %v4628_v32  ;;  %v5024_v31 = vld [vmem:[#allocation4 + $0x144] ss:$8 sps:$4 sm:$0xff]  }
 0x1ad   :  { %2046 = vmatprep.subr.bf16.mxu0 %v4630_v33 }
 0x1af   :  { %2004 = vmatpush2.bf16.msra.mxu1 %v4627_v38  ;;  %v5027_v38 = vld [vmem:[#allocation4 + $0x34] ss:$8 sps:$4 sm:$0xff]  }
 0x1b0   :  { %2047 = vmatpush2.bf16.msra.mxu0 %v4629_v39  ;;  %2005 = vmatprep.subr.bf16.mxu1 %v4612_v40  ;;  %v5030_v39 = vld [vmem:[#allocation4 + $0x134] ss:$8 sps:$4 sm:$0xff]   ;;  %v5025_v40 = vld [vmem:[#allocation4 + $0x30] ss:$8 sps:$4 sm:$0xff]  }
 0x1b1   :  { %2048 = vmatprep.subr.bf16.mxu0 %v4614_v42  ;;  %v5028_v42 = vld [vmem:[#allocation4 + $0x130] ss:$8 sps:$4 sm:$0xff]  }
 0x1b3   :  { %2006 = vmatpush2.bf16.msra.mxu1 %v4611_v49  ;;  %v5039_v49 = vld [vmem:[#allocation4 + $0x14] ss:$8 sps:$4 sm:$0xff]  }
 0x1b4   :  { %2049 = vmatpush2.bf16.msra.mxu0 %v4613_v51  ;;  %2007 = vmatprep.subr.bf16.mxu1 %v4596_v52  ;;  %v5042_v51 = vld [vmem:[#allocation4 + $0x114] ss:$8 sps:$4 sm:$0xff]   ;;  %v5037_v52 = vld [vmem:[#allocation4 + $0x10] ss:$8 sps:$4 sm:$0xff]  }
 0x1b5   :  { %2050 = vmatprep.subr.bf16.mxu0 %v4598_v53  ;;  %v5040_v53 = vld [vmem:[#allocation4 + $0x110] ss:$8 sps:$4 sm:$0xff]  }
 0x1b7   :  { %2008 = vmatpush2.bf16.msra.mxu1 %v4595_v58  ;;  %v5051_v58 = vld [vmem:[#allocation4 + $0xf4] ss:$8 sps:$4 sm:$0xff]  }
 0x1b8   :  { %2051 = vmatpush2.bf16.msra.mxu0 %v4597_v60  ;;  %2009 = vmatprep.subr.bf16.mxu1 %v4580_v61  ;;  %v5049_v60 = vld [vmem:[#allocation4 + $0xf0] ss:$8 sps:$4 sm:$0xff]  }
 0x1b9   :  { %2052 = vmatprep.subr.bf16.mxu0 %v4582_v62  ;;  %v5052_v61 = vld [vmem:[#allocation4 + $0x1f0] ss:$8 sps:$4 sm:$0xff]   ;;  %v5057_v62 = vld [vmem:[#allocation4 + $0xe4] ss:$8 sps:$4 sm:$0xff]  }
 0x1bb   :  { %2010 = vmatpush2.bf16.msra.mxu1 %v4579_v63  ;;  %v5060_v63 = vld [vmem:[#allocation4 + $0x1e4] ss:$8 sps:$4 sm:$0xff]  }
 0x1bc   :  { %2053 = vmatpush2.bf16.msra.mxu0 %v4581_v2  ;;  %3863 = vmatprep.subr.bf16.mxu1 %v5003_v3  ;;  %v5058_v2 = vld [vmem:[#allocation4 + $0x1e0] ss:$8 sps:$4 sm:$0xff]   ;;  %v5063_v3 = vld [vmem:[#allocation4 + $0xd4] ss:$8 sps:$4 sm:$0xff]  }
 0x1bd   :  { %3906 = vmatprep.subr.bf16.mxu0 %v5006_v4  ;;  %v5066_v4 = vld [vmem:[#allocation4 + $0x1d4] ss:$8 sps:$4 sm:$0xff]  }
 0x1be   :  { %2012 = vmatmul.mubr.bf16.vlgmr.msra.gmra.mxu1 %v5561_v45  ;;  %v5590_v10 = vpop.f32.mrf.mxu1  ;;  %v5592_v11 = vpop.f32.mrf.mxu0 }
 0x1bf   :  { %2055 = vmatmul.mubr.bf16.vlgmr.msra.gmra.mxu0 %v5561_v45  ;;  %3864 = vmatpush1.bf16.msra.mxu1 %v5001_v5  ;;  %v2210_v45 = vrot.slane %v2205_v14, %v5553_v29  ;;  %v5061_v5 = vld [vmem:[#allocation4 + $0xd0] ss:$8 sps:$4 sm:$0xff]   ;;  %v2108_v14 = vrot.slane %v5584_v50, %v5549_v23 }
 0x1c0   :  { %3907 = vmatpush1.bf16.msra.mxu0 %v5004_v7  ;;  %v1757_v15 = vpop.f32.mrf.mxu1  ;;  %v1800_v16 = vpop.f32.mrf.mxu0  ;;  %3865 = vmatprep.subr.bf16.mxu1 %v5009_v8  ;;  %v5069_v7 = vld [vmem:[#allocation4 + $0xc4] ss:$8 sps:$4 sm:$0xff]  }
 0x1c1   :  { %3908 = vmatprep.subr.bf16.mxu0 %v5012_v9  ;;  %v5072_v8 = vld [vmem:[#allocation4 + $0x1c4] ss:$8 sps:$4 sm:$0xff]   ;;  %v5067_v9 = vld [vmem:[#allocation4 + $0xc0] ss:$8 sps:$4 sm:$0xff]   ;;  %v2184_v50 = vpack.i.b16 %v2108_v14, %v2108_v14 }
 0x1c2   :  { %v5595_v20 = vpop.f32.mrf.mxu1  ;;  %v5597_v21 = vpop.f32.mrf.mxu0 }
 0x1c3   :  { %3866 = vmatpush1.bf16.msra.mxu1 %v5007_v12  ;;  %v5070_v12 = vld [vmem:[#allocation4 + $0x1c0] ss:$8 sps:$4 sm:$0xff]  }
 0x1c4   :  { %3909 = vmatpush1.bf16.msra.mxu0 %v5010_v17  ;;  %v1761_v25 = vpop.f32.mrf.mxu1  ;;  %v1804_v44 = vpop.f32.mrf.mxu0  ;;  %3867 = vmatprep.subr.bf16.mxu1 %v5015_v18  ;;  %v2085_v17 = vcombine.high %v5580_v41, %v5580_v41  ;;  %v5076_v18 = vld [vmem:[#allocation4 + $0x1b0] ss:$8 sps:$4 sm:$0xff]   ;;  %v5090_v41 = vld [vmem:[#allocation4 + $0x194] ss:$8 sps:$4 sm:$0xff]  }
 0x1c5   :  { %v2066_v28 = vpack.c.bf16 %v1761_v25, %v1757_v15  ;;  %v2068_v30 = vpack.c.bf16 %v1804_v44, %v1800_v16  ;;  %3910 = vmatprep.subr.bf16.mxu0 %v5018_v19  ;;  %v5078_v15 = vld [vmem:[#allocation4 + $0x1b4] ss:$8 sps:$4 sm:$0xff]   ;;  %v5073_v16 = vld [vmem:[#allocation4 + $0xb0] ss:$8 sps:$4 sm:$0xff]   ;;  %v5081_v19 = vld [vmem:[#allocation4 + $0xa4] ss:$8 sps:$4 sm:$0xff]  }
 0x1c6   :  { %v5608_v25 = vrot.slane %v2085_v17, %v5549_v23  ;;  %v5082_v44 = vld [vmem:[#allocation4 + $0x1a0] ss:$8 sps:$4 sm:$0xff]  }
 0x1c7   :  { %v2296_v32 = vadd.bf16 %v2196_v22, %v2066_v28  ;;  %v2298_v33 = vadd.bf16 %v2210_v45, %v2068_v30  ;;  %3868 = vmatpush1.bf16.msra.mxu1 %v5013_v24  ;;  %v2130_v22 = vcombine.high %v2108_v14, %v2108_v14  ;;  %v5084_v45 = vld [vmem:[#allocation4 + $0x1a4] ss:$8 sps:$4 sm:$0xff]   ;;  %v5079_v24 = vld [vmem:[#allocation4 + $0xa0] ss:$8 sps:$4 sm:$0xff]   ;;  %v5085_v28 = vld [vmem:[#allocation4 + $0x90] ss:$8 sps:$4 sm:$0xff]  }
 0x1c8   :  { %3911 = vmatpush1.bf16.msra.mxu0 %v5016_v26  ;;  %3869 = vmatprep.subr.bf16.mxu1 %v5021_v27  ;;  %v5087_v26 = vld [vmem:[#allocation4 + $0x94] ss:$8 sps:$4 sm:$0xff]   ;;  %v2101_v30 = vcombine.high %v5608_v25, %v5608_v25 }
 0x1c9   :  { %3912 = vmatprep.subr.bf16.mxu0 %v5024_v31  ;;  %v2312_v36 = vmax.bf16 %v5475_v0, %v2296_v32  ;;  %v2314_v37 = vmax.bf16 %v5475_v0, %v2298_v33  ;;  %v2198_v27 = vpack.i.b16 %v2130_v22, %v2130_v22  ;;  %v2065_v31 = vpack.c.bf16 %v5595_v20, %v5590_v10  ;;  %v5088_v33 = vld [vmem:[#allocation4 + $0x190] ss:$8 sps:$4 sm:$0xff]   ;;  %v5094_v10 = vld [vmem:[#allocation4 + $0x180] ss:$8 sps:$4 sm:$0xff]   ;;  %v5099_v20 = vld [vmem:[#allocation4 + $0x274] ss:$8 sps:$4 sm:$0xff]  }
 0x1ca   :  { %v2189_v32 = vrot.slane %v2184_v50, %v5553_v29  ;;  %v5127_v22 = vld [vmem:[#allocation4 + $0x334] ss:$8 sps:$4 sm:$0xff]   ;;  %v5130_v50 = vld [vmem:[#allocation4 + $0x224] ss:$8 sps:$4 sm:$0xff]  }
 0x1cb   :  { %3870 = vmatpush1.bf16.msra.mxu1 %v5019_v34  ;;  %3895 = vmatprep.mubr.bf16.mxu1 %v2312_v36  ;;  %v5093_v34 = vld [vmem:[#allocation4 + $0x84] ss:$8 sps:$4 sm:$0xff]   ;;  %v2203_v36 = vrot.slane %v2198_v27, %v5553_v29  ;;  %v5131_v27 = vld [vmem:[#allocation4 + $0x320] ss:$8 sps:$4 sm:$0xff]  }
 0x1cc   :  { %3913 = vmatpush1.bf16.msra.mxu0 %v5022_v35  ;;  %3938 = vmatprep.mubr.bf16.mxu0 %v2314_v37  ;;  %v2067_v35 = vpack.c.bf16 %v5597_v21, %v5592_v11  ;;  %v5096_v37 = vld [vmem:[#allocation4 + $0x184] ss:$8 sps:$4 sm:$0xff]   ;;  %v5100_v21 = vld [vmem:[#allocation4 + $0x370] ss:$8 sps:$4 sm:$0xff]  }
 0x1cd   :  { %3871 = vmatprep.subr.bf16.mxu1 %v5027_v38  ;;  %3914 = vmatprep.subr.bf16.mxu0 %v5030_v39  ;;  %v5091_v38 = vld [vmem:[#allocation4 + $0x80] ss:$8 sps:$4 sm:$0xff]   ;;  %v2129_v39 = vrot.slane %v2101_v30, %v5549_v23  ;;  %v5134_v30 = vld [vmem:[#allocation4 + $0x210] ss:$8 sps:$4 sm:$0xff]  }
 0x1cf   :  { %3872 = vmatpush1.bf16.msra.mxu1 %v5025_v40  ;;  %v2295_v40 = vadd.bf16 %v2189_v32, %v2065_v31  ;;  %v5137_v31 = vld [vmem:[#allocation4 + $0x310] ss:$8 sps:$4 sm:$0xff]   ;;  %v5142_v32 = vld [vmem:[#allocation4 + $0x204] ss:$8 sps:$4 sm:$0xff]  }
 0x1d0   :  { %3915 = vmatpush1.bf16.msra.mxu0 %v5028_v42  ;;  %3873 = vmatprep.subr.bf16.mxu1 %v5033_v43  ;;  %v2297_v42 = vadd.bf16 %v2203_v36, %v2067_v35  ;;  %v5102_v43 = vld [vmem:[#allocation4 + $0x374] ss:$8 sps:$4 sm:$0xff]   ;;  %v5143_v35 = vld [vmem:[#allocation4 + $0x300] ss:$8 sps:$4 sm:$0xff]  }
 0x1d1   :  { %3916 = vmatprep.subr.bf16.mxu0 %v5036_v46  ;;  %v5097_v46 = vld [vmem:[#allocation4 + $0x270] ss:$8 sps:$4 sm:$0xff]   ;;  %v2311_v11 = vmax.bf16 %v5475_v0, %v2295_v40  ;;  %v5148_v36 = vld [vmem:[#allocation4 + $0x2f4] ss:$8 sps:$4 sm:$0xff]   ;;  %v5154_v40 = vld [vmem:[#allocation4 + $0x2e4] ss:$8 sps:$4 sm:$0xff]  }
 0x1d3   :  { %3874 = vmatpush1.bf16.msra.mxu1 %v5031_v47  ;;  %v2133_v47 = vcombine.high %v2129_v39, %v2129_v39 }
 0x1d4   :  { %3917 = vmatpush1.bf16.msra.mxu0 %v5034_v48  ;;  %3875 = vmatprep.subr.bf16.mxu1 %v5039_v49  ;;  %v5106_v48 = vld [vmem:[#allocation4 + $0x264] ss:$8 sps:$4 sm:$0xff]   ;;  %v2313_v49 = vmax.bf16 %v5475_v0, %v2297_v42  ;;  %v5155_v42 = vld [vmem:[#allocation4 + $0x3e0] ss:$8 sps:$4 sm:$0xff]  }
 0x1d5   :  { %3918 = vmatprep.subr.bf16.mxu0 %v5042_v51  ;;  %v5109_v51 = vld [vmem:[#allocation4 + $0x364] ss:$8 sps:$4 sm:$0xff]  }
 0x1d7   :  { %3876 = vmatpush1.bf16.msra.mxu1 %v5037_v52 }
 0x1d8   :  { %3919 = vmatpush1.bf16.msra.mxu0 %v5040_v53  ;;  %3877 = vmatprep.subr.bf16.mxu1 %v5045_v54  ;;  %v5104_v54 = vld [vmem:[#allocation4 + $0x260] ss:$8 sps:$4 sm:$0xff]  }
 0x1d9   :  { %3920 = vmatprep.subr.bf16.mxu0 %v5048_v55  ;;  %v2219_v55 = vpack.i.b16 %v2129_v39, %v2129_v39  ;;  %v5149_v39 = vld [vmem:[#allocation4 + $0x3f0] ss:$8 sps:$4 sm:$0xff]  }
 0x1db   :  { %3878 = vmatpush1.bf16.msra.mxu1 %v5043_v56  ;;  %v2233_v56 = vpack.i.b16 %v2133_v47, %v2133_v47  ;;  %v5158_v47 = vld [vmem:[#allocation4 + $0x2d0] ss:$8 sps:$4 sm:$0xff]  }
 0x1dc   :  { %3921 = vmatpush1.bf16.msra.mxu0 %v5046_v57  ;;  %3879 = vmatprep.subr.bf16.mxu1 %v5051_v58 }
 0x1dd   :  { %3922 = vmatprep.subr.bf16.mxu0 %v5054_v59  ;;  %v5107_v59 = vld [vmem:[#allocation4 + $0x360] ss:$8 sps:$4 sm:$0xff]  }
 0x1df   :  { %3880 = vmatpush2.bf16.msra.mxu1 %v5049_v60  ;;  %v5112_v60 = vld [vmem:[#allocation4 + $0x254] ss:$8 sps:$4 sm:$0xff]  }
 0x1e0   :  { %3923 = vmatpush2.bf16.msra.mxu0 %v5052_v61  ;;  %3881 = vmatprep.subr.bf16.mxu1 %v5057_v62  ;;  %v5115_v61 = vld [vmem:[#allocation4 + $0x354] ss:$8 sps:$4 sm:$0xff]  }
 0x1e1   :  { %3924 = vmatprep.subr.bf16.mxu0 %v5060_v63 }
 0x1e3   :  { %3882 = vmatpush2.bf16.msra.mxu1 %v5055_v1  ;;  %v2224_v1 = vrot.slane %v2219_v55, %v5553_v29  ;;  %v2115_v55 = vrot.slane %v5608_v25, %v5549_v23  ;;  %v5179_v25 = vld [vmem:[#allocation4 + $0x3a0] ss:$8 sps:$4 sm:$0xff]  }
 0x1e4   :  { %3925 = vmatpush2.bf16.msra.mxu0 %v5058_v2  ;;  %3883 = vmatprep.subr.bf16.mxu1 %v5063_v3  ;;  %v2238_v2 = vrot.slane %v2233_v56, %v5553_v29  ;;  %v5110_v3 = vld [vmem:[#allocation4 + $0x250] ss:$8 sps:$4 sm:$0xff]   ;;  %v5175_v56 = vld [vmem:[#allocation4 + $0x3b4] ss:$8 sps:$4 sm:$0xff]  }
 0x1e5   :  { %3926 = vmatprep.subr.bf16.mxu0 %v5066_v4 }
 0x1e7   :  { %3884 = vmatpush2.bf16.msra.mxu1 %v5061_v5 }
 0x1e8   :  { %3927 = vmatpush2.bf16.msra.mxu0 %v5064_v6  ;;  %3885 = vmatprep.subr.bf16.mxu1 %v5069_v7  ;;  %v5113_v6 = vld [vmem:[#allocation4 + $0x350] ss:$8 sps:$4 sm:$0xff]   ;;  %v5118_v7 = vld [vmem:[#allocation4 + $0x244] ss:$8 sps:$4 sm:$0xff]  }
 0x1e9   :  { %3928 = vmatprep.subr.bf16.mxu0 %v5072_v8 }
 0x1eb   :  { %3886 = vmatpush2.bf16.msra.mxu1 %v5067_v9 }
 0x1ec   :  { %3929 = vmatpush2.bf16.msra.mxu0 %v5070_v12  ;;  %3887 = vmatprep.subr.bf16.mxu1 %v5075_v13  ;;  %v5121_v12 = vld [vmem:[#allocation4 + $0x344] ss:$8 sps:$4 sm:$0xff]  }
 0x1ed   :  { %3930 = vmatprep.subr.bf16.mxu0 %v5078_v15  ;;  %v5116_v15 = vld [vmem:[#allocation4 + $0x240] ss:$8 sps:$4 sm:$0xff]  }
 0x1ef   :  { %3888 = vmatpush2.bf16.msra.mxu1 %v5073_v16  ;;  %v5119_v16 = vld [vmem:[#allocation4 + $0x340] ss:$8 sps:$4 sm:$0xff]  }
 0x1f0   :  { %3931 = vmatpush2.bf16.msra.mxu0 %v5076_v18  ;;  %3889 = vmatprep.subr.bf16.mxu1 %v5081_v19  ;;  %v5124_v19 = vld [vmem:[#allocation4 + $0x234] ss:$8 sps:$4 sm:$0xff]  }
 0x1f1   :  { %3932 = vmatprep.subr.bf16.mxu0 %v5084_v45  ;;  %v5122_v45 = vld [vmem:[#allocation4 + $0x230] ss:$8 sps:$4 sm:$0xff]  }
 0x1f3   :  { %3890 = vmatpush2.bf16.msra.mxu1 %v5079_v24  ;;  %v5125_v24 = vld [vmem:[#allocation4 + $0x330] ss:$8 sps:$4 sm:$0xff]  }
 0x1f4   :  { %3933 = vmatpush2.bf16.msra.mxu0 %v5082_v44  ;;  %3891 = vmatprep.subr.bf16.mxu1 %v5087_v26  ;;  %v5133_v44 = vld [vmem:[#allocation4 + $0x324] ss:$8 sps:$4 sm:$0xff]   ;;  %v5128_v26 = vld [vmem:[#allocation4 + $0x220] ss:$8 sps:$4 sm:$0xff]  }
 0x1f5   :  { %3934 = vmatprep.subr.bf16.mxu0 %v5090_v41  ;;  %v5136_v41 = vld [vmem:[#allocation4 + $0x214] ss:$8 sps:$4 sm:$0xff]  }
 0x1f7   :  { %3892 = vmatpush2.bf16.msra.mxu1 %v5085_v28  ;;  %v5139_v28 = vld [vmem:[#allocation4 + $0x314] ss:$8 sps:$4 sm:$0xff]  }
 0x1f8   :  { %3935 = vmatpush2.bf16.msra.mxu0 %v5088_v33  ;;  %3893 = vmatprep.subr.bf16.mxu1 %v5093_v34  ;;  %v5145_v33 = vld [vmem:[#allocation4 + $0x304] ss:$8 sps:$4 sm:$0xff]   ;;  %v5140_v34 = vld [vmem:[#allocation4 + $0x200] ss:$8 sps:$4 sm:$0xff]  }
 0x1f9   :  { %3936 = vmatprep.subr.bf16.mxu0 %v5096_v37  ;;  %v5151_v37 = vld [vmem:[#allocation4 + $0x3f4] ss:$8 sps:$4 sm:$0xff]  }
 0x1fb   :  { %3894 = vmatpush2.bf16.msra.mxu1 %v5091_v38  ;;  %v5146_v38 = vld [vmem:[#allocation4 + $0x2f0] ss:$8 sps:$4 sm:$0xff]  }
 0x1fc   :  { %3937 = vmatpush2.bf16.msra.mxu0 %v5094_v10  ;;  %3949 = vmatprep.subr.bf16.mxu1 %v5099_v20  ;;  %v5157_v10 = vld [vmem:[#allocation4 + $0x3e4] ss:$8 sps:$4 sm:$0xff]   ;;  %v5152_v20 = vld [vmem:[#allocation4 + $0x2e0] ss:$8 sps:$4 sm:$0xff]  }
 0x1fd   :  { %3992 = vmatprep.subr.bf16.mxu0 %v5102_v43  ;;  %v5160_v43 = vld [vmem:[#allocation4 + $0x2d4] ss:$8 sps:$4 sm:$0xff]  }
 0x1fe   :  { %v5621_v52 = vpop.f32.mrf.mxu1  ;;  %v5623_v53 = vpop.f32.mrf.mxu0  ;;  %3896 = vmatmul.mubr.bf16.vlgmr.msra.gmra.mxu1 %v2311_v11  ;;  %v5161_v11 = vld [vmem:[#allocation4 + $0x3d0] ss:$8 sps:$4 sm:$0xff]  }
 0x1ff   :  { %3939 = vmatmul.mubr.bf16.vlgmr.msra.gmra.mxu0 %v2313_v49  ;;  %3950 = vmatpush1.bf16.msra.mxu1 %v5097_v46  ;;  %v5163_v46 = vld [vmem:[#allocation4 + $0x3d4] ss:$8 sps:$4 sm:$0xff]   ;;  %v5164_v49 = vld [vmem:[#allocation4 + $0x2c0] ss:$8 sps:$4 sm:$0xff]  }
 0x200   :  { %3993 = vmatpush1.bf16.msra.mxu0 %v5100_v21  ;;  %v1843_v57 = vpop.f32.mrf.mxu1  ;;  %v1886_v58 = vpop.f32.mrf.mxu0  ;;  %3951 = vmatprep.subr.bf16.mxu1 %v5106_v48  ;;  %v5166_v21 = vld [vmem:[#allocation4 + $0x2c4] ss:$8 sps:$4 sm:$0xff]  }
 0x201   :  { %3994 = vmatprep.subr.bf16.mxu0 %v5109_v51  ;;  %v5169_v48 = vld [vmem:[#allocation4 + $0x3c4] ss:$8 sps:$4 sm:$0xff]   ;;  %v5167_v51 = vld [vmem:[#allocation4 + $0x3c0] ss:$8 sps:$4 sm:$0xff]  }
 0x202   :  { %v5625_v62 = vpop.f32.mrf.mxu1  ;;  %v5627_v63 = vpop.f32.mrf.mxu0 }
 0x203   :  { %3952 = vmatpush1.bf16.msra.mxu1 %v5104_v54  ;;  %v5172_v54 = vld [vmem:[#allocation4 + $0x2b4] ss:$8 sps:$4 sm:$0xff]  }
 0x204   :  { %3995 = vmatpush1.bf16.msra.mxu0 %v5107_v59  ;;  %v1847_v4 = vpop.f32.mrf.mxu1  ;;  %v1890_v5 = vpop.f32.mrf.mxu0  ;;  %3953 = vmatprep.subr.bf16.mxu1 %v5112_v60  ;;  %v5178_v59 = vld [vmem:[#allocation4 + $0x2a4] ss:$8 sps:$4 sm:$0xff]   ;;  %v2131_v60 = vcombine.high %v2115_v55, %v2115_v55 }
 0x205   :  { %v2070_v8 = vpack.c.bf16 %v1847_v4, %v1843_v57  ;;  %v2072_v9 = vpack.c.bf16 %v1890_v5, %v1886_v58  ;;  %3996 = vmatprep.subr.bf16.mxu0 %v5115_v61  ;;  %v5170_v57 = vld [vmem:[#allocation4 + $0x2b0] ss:$8 sps:$4 sm:$0xff]   ;;  %v5181_v61 = vld [vmem:[#allocation4 + $0x3a4] ss:$8 sps:$4 sm:$0xff]   ;;  %v5184_v4 = vld [vmem:[#allocation4 + $0x294] ss:$8 sps:$4 sm:$0xff]  }
 0x206   :  { %v5173_v58 = vld [vmem:[#allocation4 + $0x3b0] ss:$8 sps:$4 sm:$0xff]  }
 0x207   :  { %v2300_v13 = vadd.bf16 %v2224_v1, %v2070_v8  ;;  %v2302_v14 = vadd.bf16 %v2238_v2, %v2072_v9  ;;  %3954 = vmatpush1.bf16.msra.mxu1 %v5110_v3  ;;  %v5638_v1 = vld [vmem:[%s5729_s4 + $0x8] sm:$0xff]  ;;  %v2212_v3 = vpack.i.b16 %v2115_v55, %v2115_v55  ;;  %v5182_v8 = vld [vmem:[#allocation4 + $0x290] ss:$8 sps:$4 sm:$0xff]   ;;  %v2069_v9 = vpack.c.bf16 %v5625_v62, %v5621_v52  ;;  %v5196_v62 = vld [vmem:[#allocation4 + $0x474] ss:$8 sps:$4 sm:$0xff]  }
 0x208   :  { %3997 = vmatpush1.bf16.msra.mxu0 %v5113_v6  ;;  %3955 = vmatprep.subr.bf16.mxu1 %v5118_v7  ;;  %v5176_v2 = vld [vmem:[#allocation4 + $0x2a0] ss:$8 sps:$4 sm:$0xff]   ;;  %v5642_v5 = vrot.slane %v5638_v1, %v5549_v23  ;;  %v2226_v6 = vpack.i.b16 %v2131_v60, %v2131_v60  ;;  %v5187_v7 = vld [vmem:[#allocation4 + $0x394] ss:$8 sps:$4 sm:$0xff]  }
 0x209   :  { %3998 = vmatprep.subr.bf16.mxu0 %v5121_v12  ;;  %v2316_v17 = vmax.bf16 %v5475_v0, %v2300_v13  ;;  %v2318_v18 = vmax.bf16 %v5475_v0, %v2302_v14  ;;  %v2217_v12 = vrot.slane %v2212_v3, %v5553_v29  ;;  %v5185_v13 = vld [vmem:[#allocation4 + $0x390] ss:$8 sps:$4 sm:$0xff]   ;;  %v5190_v14 = vld [vmem:[#allocation4 + $0x284] ss:$8 sps:$4 sm:$0xff]   ;;  %v5191_v52 = vld [vmem:[#allocation4 + $0x380] ss:$8 sps:$4 sm:$0xff]  }
 0x20a   :  { %v5212_v55 = vld [vmem:[#allocation4 + $0x440] ss:$8 sps:$4 sm:$0xff]   ;;  %v5223_v60 = vld [vmem:[#allocation4 + $0x534] ss:$8 sps:$4 sm:$0xff]   ;;  %v5221_v3 = vld [vmem:[#allocation4 + $0x530] ss:$8 sps:$4 sm:$0xff]  }
 0x20b   :  { %3956 = vmatpush1.bf16.msra.mxu1 %v5116_v15  ;;  %3981 = vmatprep.mubr.bf16.mxu1 %v2316_v17  ;;  %v2149_v15 = vcombine.high %v5642_v5, %v5642_v5  ;;  %v2231_v17 = vrot.slane %v2226_v6, %v5553_v29  ;;  %v5224_v6 = vld [vmem:[#allocation4 + $0x420] ss:$8 sps:$4 sm:$0xff]  }
 0x20c   :  { %3999 = vmatpush1.bf16.msra.mxu0 %v5119_v16  ;;  %4024 = vmatprep.mubr.bf16.mxu0 %v2318_v18  ;;  %v2071_v16 = vpack.c.bf16 %v5627_v63, %v5623_v53  ;;  %v5193_v18 = vld [vmem:[#allocation4 + $0x384] ss:$8 sps:$4 sm:$0xff]   ;;  %v5197_v63 = vld [vmem:[#allocation4 + $0x570] ss:$8 sps:$4 sm:$0xff]  }
 0x20d   :  { %3957 = vmatprep.subr.bf16.mxu1 %v5124_v19  ;;  %4000 = vmatprep.subr.bf16.mxu0 %v5127_v22  ;;  %v5188_v19 = vld [vmem:[#allocation4 + $0x280] ss:$8 sps:$4 sm:$0xff]   ;;  %v2299_v22 = vadd.bf16 %v2217_v12, %v2069_v9  ;;  %v5235_v9 = vld [vmem:[#allocation4 + $0x514] ss:$8 sps:$4 sm:$0xff]   ;;  %v5230_v12 = vld [vmem:[#allocation4 + $0x410] ss:$8 sps:$4 sm:$0xff]  }
 0x20f   :  { %3958 = vmatpush1.bf16.msra.mxu1 %v5122_v45  ;;  %v2171_v45 = vrot.slane %v2149_v15, %v5549_v23  ;;  %v2315_v53 = vmax.bf16 %v5475_v0, %v2299_v22  ;;  %v5241_v15 = vld [vmem:[#allocation4 + $0x504] ss:$8 sps:$4 sm:$0xff]   ;;  %v5242_v22 = vld [vmem:[#allocation4 + $0x4f0] ss:$8 sps:$4 sm:$0xff]  }
 0x210   :  { %4001 = vmatpush1.bf16.msra.mxu0 %v5125_v24  ;;  %3959 = vmatprep.subr.bf16.mxu1 %v5130_v50  ;;  %v2301_v24 = vadd.bf16 %v2231_v17, %v2071_v16  ;;  %v5199_v50 = vld [vmem:[#allocation4 + $0x574] ss:$8 sps:$4 sm:$0xff]   ;;  %v5236_v16 = vld [vmem:[#allocation4 + $0x400] ss:$8 sps:$4 sm:$0xff]  }
 0x211   :  { %4002 = vmatprep.subr.bf16.mxu0 %v5133_v44  ;;  %v5194_v44 = vld [vmem:[#allocation4 + $0x470] ss:$8 sps:$4 sm:$0xff]   ;;  %v5239_v17 = vld [vmem:[#allocation4 + $0x500] ss:$8 sps:$4 sm:$0xff]  }
 0x213   :  { %3960 = vmatpush1.bf16.msra.mxu1 %v5128_v26  ;;  %v5202_v26 = vld [vmem:[#allocation4 + $0x464] ss:$8 sps:$4 sm:$0xff]  }
 0x214   :  { %4003 = vmatpush1.bf16.msra.mxu0 %v5131_v27  ;;  %3961 = vmatprep.subr.bf16.mxu1 %v5136_v41  ;;  %v2181_v27 = vcombine.high %v2171_v45, %v2171_v45  ;;  %v2317_v41 = vmax.bf16 %v5475_v0, %v2301_v24  ;;  %v5248_v24 = vld [vmem:[#allocation4 + $0x4e0] ss:$8 sps:$4 sm:$0xff]  }
 0x215   :  { %4004 = vmatprep.subr.bf16.mxu0 %v5139_v28  ;;  %v5205_v28 = vld [vmem:[#allocation4 + $0x564] ss:$8 sps:$4 sm:$0xff]  }
 0x217   :  { %3962 = vmatpush1.bf16.msra.mxu1 %v5134_v30 }
 0x218   :  { %4005 = vmatpush1.bf16.msra.mxu0 %v5137_v31  ;;  %3963 = vmatprep.subr.bf16.mxu1 %v5142_v32  ;;  %v5200_v32 = vld [vmem:[#allocation4 + $0x460] ss:$8 sps:$4 sm:$0xff]  }
 0x219   :  { %4006 = vmatprep.subr.bf16.mxu0 %v5145_v33  ;;  %v2247_v33 = vpack.i.b16 %v2171_v45, %v2171_v45  ;;  %v5253_v45 = vld [vmem:[#allocation4 + $0x5e4] ss:$8 sps:$4 sm:$0xff]  }
 0x21b   :  { %3964 = vmatpush1.bf16.msra.mxu1 %v5140_v34 }
 0x21c   :  { %4007 = vmatpush1.bf16.msra.mxu0 %v5143_v35  ;;  %3965 = vmatprep.subr.bf16.mxu1 %v5148_v36  ;;  %v5203_v35 = vld [vmem:[#allocation4 + $0x560] ss:$8 sps:$4 sm:$0xff]   ;;  %v2261_v36 = vpack.i.b16 %v2181_v27, %v2181_v27  ;;  %v5262_v27 = vld [vmem:[#allocation4 + $0x4c4] ss:$8 sps:$4 sm:$0xff]  }
 0x21d   :  { %4008 = vmatprep.subr.bf16.mxu0 %v5151_v37  ;;  %v5208_v37 = vld [vmem:[#allocation4 + $0x454] ss:$8 sps:$4 sm:$0xff]  }
 0x21f   :  { %3966 = vmatpush2.bf16.msra.mxu1 %v5146_v38 }
 0x220   :  { %4009 = vmatpush2.bf16.msra.mxu0 %v5149_v39  ;;  %3967 = vmatprep.subr.bf16.mxu1 %v5154_v40  ;;  %v5211_v39 = vld [vmem:[#allocation4 + $0x554] ss:$8 sps:$4 sm:$0xff]  }
 0x221   :  { %4010 = vmatprep.subr.bf16.mxu0 %v5157_v10 }
 0x223   :  { %3968 = vmatpush2.bf16.msra.mxu1 %v5152_v20  ;;  %v2252_v20 = vrot.slane %v2247_v33, %v5553_v29  ;;  %v5268_v33 = vld [vmem:[#allocation4 + $0x4b4] ss:$8 sps:$4 sm:$0xff]  }
 0x224   :  { %4011 = vmatpush2.bf16.msra.mxu0 %v5155_v42  ;;  %3969 = vmatprep.subr.bf16.mxu1 %v5160_v43  ;;  %v5206_v42 = vld [vmem:[#allocation4 + $0x450] ss:$8 sps:$4 sm:$0xff]  }
 0x225   :  { %4012 = vmatprep.subr.bf16.mxu0 %v5163_v46  ;;  %v2266_v46 = vrot.slane %v2261_v36, %v5553_v29  ;;  %v5266_v36 = vld [vmem:[#allocation4 + $0x4b0] ss:$8 sps:$4 sm:$0xff]  }
 0x227   :  { %3970 = vmatpush2.bf16.msra.mxu1 %v5158_v47  ;;  %v5209_v47 = vld [vmem:[#allocation4 + $0x550] ss:$8 sps:$4 sm:$0xff]  }
 0x228   :  { %4013 = vmatpush2.bf16.msra.mxu0 %v5161_v11  ;;  %3971 = vmatprep.subr.bf16.mxu1 %v5166_v21  ;;  %v5214_v11 = vld [vmem:[#allocation4 + $0x444] ss:$8 sps:$4 sm:$0xff]  }
 0x229   :  { %4014 = vmatprep.subr.bf16.mxu0 %v5169_v48 }
 0x22b   :  { %3972 = vmatpush2.bf16.msra.mxu1 %v5164_v49  ;;  %v5217_v49 = vld [vmem:[#allocation4 + $0x544] ss:$8 sps:$4 sm:$0xff]  }
 0x22c   :  { %4015 = vmatpush2.bf16.msra.mxu0 %v5167_v51  ;;  %3973 = vmatprep.subr.bf16.mxu1 %v5172_v54 }
 0x22d   :  { %4016 = vmatprep.subr.bf16.mxu0 %v5175_v56 }
 0x22f   :  { %3974 = vmatpush2.bf16.msra.mxu1 %v5170_v57  ;;  %v5215_v57 = vld [vmem:[#allocation4 + $0x540] ss:$8 sps:$4 sm:$0xff]  }
 0x230   :  { %4017 = vmatpush2.bf16.msra.mxu0 %v5173_v58  ;;  %3975 = vmatprep.subr.bf16.mxu1 %v5178_v59  ;;  %v5220_v59 = vld [vmem:[#allocation4 + $0x434] ss:$8 sps:$4 sm:$0xff]  }
 0x231   :  { %4018 = vmatprep.subr.bf16.mxu0 %v5181_v61 }
 0x233   :  { %3976 = vmatpush2.bf16.msra.mxu1 %v5176_v2  ;;  %v5218_v2 = vld [vmem:[#allocation4 + $0x430] ss:$8 sps:$4 sm:$0xff]  }
 0x234   :  { %4019 = vmatpush2.bf16.msra.mxu0 %v5179_v25  ;;  %3977 = vmatprep.subr.bf16.mxu1 %v5184_v4  ;;  %v5226_v25 = vld [vmem:[#allocation4 + $0x424] ss:$8 sps:$4 sm:$0xff]  }
 0x235   :  { %4020 = vmatprep.subr.bf16.mxu0 %v5187_v7  ;;  %v5229_v4 = vld [vmem:[#allocation4 + $0x524] ss:$8 sps:$4 sm:$0xff]   ;;  %v5227_v7 = vld [vmem:[#allocation4 + $0x520] ss:$8 sps:$4 sm:$0xff]  }
 0x237   :  { %3978 = vmatpush2.bf16.msra.mxu1 %v5182_v8  ;;  %v5232_v8 = vld [vmem:[#allocation4 + $0x414] ss:$8 sps:$4 sm:$0xff]  }
 0x238   :  { %4021 = vmatpush2.bf16.msra.mxu0 %v5185_v13  ;;  %3979 = vmatprep.subr.bf16.mxu1 %v5190_v14  ;;  %v5233_v13 = vld [vmem:[#allocation4 + $0x510] ss:$8 sps:$4 sm:$0xff]   ;;  %v5238_v14 = vld [vmem:[#allocation4 + $0x404] ss:$8 sps:$4 sm:$0xff]  }
 0x239   :  { %4022 = vmatprep.subr.bf16.mxu0 %v5193_v18  ;;  %v5244_v18 = vld [vmem:[#allocation4 + $0x4f4] ss:$8 sps:$4 sm:$0xff]  }
 0x23b   :  { %3980 = vmatpush2.bf16.msra.mxu1 %v5188_v19  ;;  %v5247_v19 = vld [vmem:[#allocation4 + $0x5f4] ss:$8 sps:$4 sm:$0xff]  }
 0x23c   :  { %4023 = vmatpush2.bf16.msra.mxu0 %v5191_v52  ;;  %4035 = vmatprep.subr.bf16.mxu1 %v5196_v62  ;;  %v5245_v52 = vld [vmem:[#allocation4 + $0x5f0] ss:$8 sps:$4 sm:$0xff]   ;;  %v5250_v62 = vld [vmem:[#allocation4 + $0x4e4] ss:$8 sps:$4 sm:$0xff]  }
 0x23d   :  { %4078 = vmatprep.subr.bf16.mxu0 %v5199_v50  ;;  %v5251_v50 = vld [vmem:[#allocation4 + $0x5e0] ss:$8 sps:$4 sm:$0xff]  }
 0x23e   :  { %v5655_v30 = vpop.f32.mrf.mxu1  ;;  %3982 = vmatmul.mubr.bf16.vlgmr.msra.gmra.mxu1 %v2315_v53  ;;  %v5259_v53 = vld [vmem:[#allocation4 + $0x5d4] ss:$8 sps:$4 sm:$0xff]  }
 0x23f   :  { %v5657_v31 = vpop.f32.mrf.mxu0  ;;  %4025 = vmatmul.mubr.bf16.vlgmr.msra.gmra.mxu0 %v2317_v41  ;;  %4036 = vmatpush1.bf16.msra.mxu1 %v5194_v44  ;;  %v5256_v44 = vld [vmem:[#allocation4 + $0x4d4] ss:$8 sps:$4 sm:$0xff]   ;;  %v5265_v41 = vld [vmem:[#allocation4 + $0x5c4] ss:$8 sps:$4 sm:$0xff]  }
 0x240   :  { %4079 = vmatpush1.bf16.msra.mxu0 %v5197_v63  ;;  %v1929_v34 = vpop.f32.mrf.mxu1  ;;  %4037 = vmatprep.subr.bf16.mxu1 %v5202_v26  ;;  %v5254_v63 = vld [vmem:[#allocation4 + $0x4d0] ss:$8 sps:$4 sm:$0xff]  }
 0x241   :  { %v1972_v38 = vpop.f32.mrf.mxu0  ;;  %4080 = vmatprep.subr.bf16.mxu0 %v5205_v28  ;;  %v5257_v26 = vld [vmem:[#allocation4 + $0x5d0] ss:$8 sps:$4 sm:$0xff]   ;;  %v5260_v28 = vld [vmem:[#allocation4 + $0x4c0] ss:$8 sps:$4 sm:$0xff]  }
 0x242   :  { %v5659_v40 = vpop.f32.mrf.mxu1 }
 0x243   :  { %v5661_v10 = vpop.f32.mrf.mxu0  ;;  %4038 = vmatpush1.bf16.msra.mxu1 %v5200_v32  ;;  %v5263_v32 = vld [vmem:[#allocation4 + $0x5c0] ss:$8 sps:$4 sm:$0xff]  }
 0x244   :  { %4081 = vmatpush1.bf16.msra.mxu0 %v5203_v35  ;;  %v1933_v43 = vpop.f32.mrf.mxu1  ;;  %4039 = vmatprep.subr.bf16.mxu1 %v5208_v37  ;;  %v5271_v35 = vld [vmem:[#allocation4 + $0x5b4] ss:$8 sps:$4 sm:$0xff]   ;;  %v5269_v37 = vld [vmem:[#allocation4 + $0x5b0] ss:$8 sps:$4 sm:$0xff]  }
 0x245   :  { %v2074_v21 = vpack.c.bf16 %v1933_v43, %v1929_v34  ;;  %v1976_v48 = vpop.f32.mrf.mxu0  ;;  %4082 = vmatprep.subr.bf16.mxu0 %v5211_v39  ;;  %v2157_v34 = vrot.slane %v5642_v5, %v5549_v23  ;;  %v2134_v39 = vcombine.high %v5638_v1, %v5638_v1  ;;  %v5272_v43 = vld [vmem:[#allocation4 + $0x4a0] ss:$8 sps:$4 sm:$0xff]   ;;  %v2073_v1 = vpack.c.bf16 %v5659_v40, %v5655_v30  ;;  %v5292_v40 = vld [vmem:[#allocation4 + $0x674] ss:$8 sps:$4 sm:$0xff]  }
 0x246   :  { %v2076_v51 = vpack.c.bf16 %v1976_v48, %v1972_v38  ;;  %v5274_v38 = vld [vmem:[#allocation4 + $0x4a4] ss:$8 sps:$4 sm:$0xff]   ;;  %v5275_v5 = vld [vmem:[#allocation4 + $0x5a0] ss:$8 sps:$4 sm:$0xff]   ;;  %v5283_v48 = vld [vmem:[#allocation4 + $0x594] ss:$8 sps:$4 sm:$0xff]  }
 0x247   :  { %v2304_v54 = vadd.bf16 %v2252_v20, %v2074_v21  ;;  %4040 = vmatpush1.bf16.msra.mxu1 %v5206_v42  ;;  %v2179_v20 = vcombine.high %v2157_v34, %v2157_v34  ;;  %v5277_v42 = vld [vmem:[#allocation4 + $0x5a4] ss:$8 sps:$4 sm:$0xff]   ;;  %v5287_v30 = vld [vmem:[#allocation4 + $0x580] ss:$8 sps:$4 sm:$0xff]  }
 0x248   :  { %v2306_v56 = vadd.bf16 %v2266_v46, %v2076_v51  ;;  %4083 = vmatpush1.bf16.msra.mxu0 %v5209_v47  ;;  %4041 = vmatprep.subr.bf16.mxu1 %v5214_v11  ;;  %v2240_v46 = vpack.i.b16 %v2157_v34, %v2157_v34  ;;  %v5280_v47 = vld [vmem:[#allocation4 + $0x494] ss:$8 sps:$4 sm:$0xff]   ;;  %v5672_v11 = vrot.slane %v2134_v39, %v5549_v23  ;;  %v5309_v34 = vld [vmem:[#allocation4 + $0x640] ss:$8 sps:$4 sm:$0xff]  }
 0x249   :  { %4084 = vmatprep.subr.bf16.mxu0 %v5217_v49  ;;  %v2320_v58 = vmax.bf16 %v5475_v0, %v2304_v54  ;;  %v2254_v21 = vpack.i.b16 %v2179_v20, %v2179_v20  ;;  %v5278_v49 = vld [vmem:[#allocation4 + $0x490] ss:$8 sps:$4 sm:$0xff]   ;;  %v5320_v39 = vld [vmem:[#allocation4 + $0x734] ss:$8 sps:$4 sm:$0xff]  }
 0x24a   :  { %v2322_v61 = vmax.bf16 %v5475_v0, %v2306_v56  ;;  %v2245_v51 = vrot.slane %v2240_v46, %v5553_v29  ;;  %v5281_v54 = vld [vmem:[#allocation4 + $0x590] ss:$8 sps:$4 sm:$0xff]   ;;  %v2150_v56 = vcombine.high %v5672_v11, %v5672_v11  ;;  %v5323_v46 = vld [vmem:[#allocation4 + $0x624] ss:$8 sps:$4 sm:$0xff]  }
 0x24b   :  { %4042 = vmatpush1.bf16.msra.mxu1 %v5212_v55  ;;  %4067 = vmatprep.mubr.bf16.mxu1 %v2320_v58  ;;  %v5286_v55 = vld [vmem:[#allocation4 + $0x484] ss:$8 sps:$4 sm:$0xff]   ;;  %v2259_v58 = vrot.slane %v2254_v21, %v5553_v29  ;;  %v5324_v21 = vld [vmem:[#allocation4 + $0x720] ss:$8 sps:$4 sm:$0xff]  }
 0x24c   :  { %4085 = vmatpush1.bf16.msra.mxu0 %v5215_v57  ;;  %4110 = vmatprep.mubr.bf16.mxu0 %v2322_v61  ;;  %v2075_v57 = vpack.c.bf16 %v5661_v10, %v5657_v31  ;;  %v2303_v61 = vadd.bf16 %v2245_v51, %v2073_v1  ;;  %v5293_v10 = vld [vmem:[#allocation4 + $0x770] ss:$8 sps:$4 sm:$0xff]  }
 0x24d   :  { %4043 = vmatprep.subr.bf16.mxu1 %v5220_v59  ;;  %4086 = vmatprep.subr.bf16.mxu0 %v5223_v60  ;;  %v5289_v59 = vld [vmem:[#allocation4 + $0x584] ss:$8 sps:$4 sm:$0xff]   ;;  %v5284_v60 = vld [vmem:[#allocation4 + $0x480] ss:$8 sps:$4 sm:$0xff]   ;;  %v5327_v1 = vld [vmem:[#allocation4 + $0x610] ss:$8 sps:$4 sm:$0xff]  }
 0x24e   :  { %v2319_v31 = vmax.bf16 %v5475_v0, %v2303_v61  ;;  %v5330_v51 = vld [vmem:[#allocation4 + $0x710] ss:$8 sps:$4 sm:$0xff]  }
 0x24f   :  { %4044 = vmatpush1.bf16.msra.mxu1 %v5218_v2  ;;  %v2178_v2 = vrot.slane %v2150_v56, %v5549_v23  ;;  %v5333_v56 = vld [vmem:[#allocation4 + $0x600] ss:$8 sps:$4 sm:$0xff]   ;;  %v5342_v61 = vld [vmem:[#allocation4 + $0x7f0] ss:$8 sps:$4 sm:$0xff]  }
 0x250   :  { %4087 = vmatpush1.bf16.msra.mxu0 %v5221_v3  ;;  %4045 = vmatprep.subr.bf16.mxu1 %v5226_v25  ;;  %v2305_v3 = vadd.bf16 %v2259_v58, %v2075_v57  ;;  %v5295_v25 = vld [vmem:[#allocation4 + $0x774] ss:$8 sps:$4 sm:$0xff]   ;;  %v5336_v57 = vld [vmem:[#allocation4 + $0x700] ss:$8 sps:$4 sm:$0xff]  }
 0x251   :  { %4088 = vmatprep.subr.bf16.mxu0 %v5229_v4  ;;  %v5290_v4 = vld [vmem:[#allocation4 + $0x670] ss:$8 sps:$4 sm:$0xff]   ;;  %v5341_v58 = vld [vmem:[#allocation4 + $0x6f4] ss:$8 sps:$4 sm:$0xff]  }
 0x253   :  { %4046 = vmatpush1.bf16.msra.mxu1 %v5224_v6  ;;  %v5299_v6 = vld [vmem:[#allocation4 + $0x664] ss:$8 sps:$4 sm:$0xff]  }
 0x254   :  { %4089 = vmatpush1.bf16.msra.mxu0 %v5227_v7  ;;  %4047 = vmatprep.subr.bf16.mxu1 %v5232_v8  ;;  %v2182_v7 = vcombine.high %v2178_v2, %v2178_v2  ;;  %v2321_v8 = vmax.bf16 %v5475_v0, %v2305_v3  ;;  %v5348_v3 = vld [vmem:[#allocation4 + $0x7e0] ss:$8 sps:$4 sm:$0xff]  }
 0x255   :  { %4090 = vmatprep.subr.bf16.mxu0 %v5235_v9  ;;  %v5302_v9 = vld [vmem:[#allocation4 + $0x764] ss:$8 sps:$4 sm:$0xff]  }
 0x257   :  { %4048 = vmatpush1.bf16.msra.mxu1 %v5230_v12 }
 0x258   :  { %4091 = vmatpush1.bf16.msra.mxu0 %v5233_v13  ;;  %4049 = vmatprep.subr.bf16.mxu1 %v5238_v14  ;;  %v5297_v14 = vld [vmem:[#allocation4 + $0x660] ss:$8 sps:$4 sm:$0xff]  }
 0x259   :  { %4092 = vmatprep.subr.bf16.mxu0 %v5241_v15  ;;  %v2275_v15 = vpack.i.b16 %v2178_v2, %v2178_v2  ;;  %v5345_v2 = vld [vmem:[#allocation4 + $0x6e0] ss:$8 sps:$4 sm:$0xff]  }
 0x25b   :  { %4050 = vmatpush1.bf16.msra.mxu1 %v5236_v16 }
 0x25c   :  { %4093 = vmatpush1.bf16.msra.mxu0 %v5239_v17  ;;  %4051 = vmatprep.subr.bf16.mxu1 %v5244_v18  ;;  %v5300_v17 = vld [vmem:[#allocation4 + $0x760] ss:$8 sps:$4 sm:$0xff]   ;;  %v2289_v18 = vpack.i.b16 %v2182_v7, %v2182_v7  ;;  %v5362_v7 = vld [vmem:[#allocation4 + $0x7c4] ss:$8 sps:$4 sm:$0xff]  }
 0x25d   :  { %4094 = vmatprep.subr.bf16.mxu0 %v5247_v19  ;;  %v5305_v19 = vld [vmem:[#allocation4 + $0x654] ss:$8 sps:$4 sm:$0xff]  }
 0x25f   :  { %4052 = vmatpush2.bf16.msra.mxu1 %v5242_v22 }
 0x260   :  { %4095 = vmatpush2.bf16.msra.mxu0 %v5245_v52  ;;  %4053 = vmatprep.subr.bf16.mxu1 %v5250_v62  ;;  %v5308_v52 = vld [vmem:[#allocation4 + $0x754] ss:$8 sps:$4 sm:$0xff]  }
 0x261   :  { %4096 = vmatprep.subr.bf16.mxu0 %v5253_v45 }
 0x263   :  { %4054 = vmatpush2.bf16.msra.mxu1 %v5248_v24  ;;  %v2280_v24 = vrot.slane %v2275_v15, %v5553_v29  ;;  %v2164_v15 = vrot.slane %v5672_v11, %v5549_v23  ;;  %v5380_v11 = vld [vmem:[#allocation4 + $0x794] ss:$8 sps:$4 sm:$0xff]  }
 0x264   :  { %4097 = vmatpush2.bf16.msra.mxu0 %v5251_v50  ;;  %4055 = vmatprep.subr.bf16.mxu1 %v5256_v44  ;;  %v5303_v50 = vld [vmem:[#allocation4 + $0x650] ss:$8 sps:$4 sm:$0xff]  }
 0x265   :  { %4098 = vmatprep.subr.bf16.mxu0 %v5259_v53  ;;  %v2294_v53 = vrot.slane %v2289_v18, %v5553_v29  ;;  %v5366_v18 = vld [vmem:[#allocation4 + $0x7b0] ss:$8 sps:$4 sm:$0xff]  }
 0x267   :  { %4056 = vmatpush2.bf16.msra.mxu1 %v5254_v63  ;;  %v5306_v63 = vld [vmem:[#allocation4 + $0x750] ss:$8 sps:$4 sm:$0xff]  }
 0x268   :  { %4099 = vmatpush2.bf16.msra.mxu0 %v5257_v26  ;;  %4057 = vmatprep.subr.bf16.mxu1 %v5262_v27  ;;  %v5311_v26 = vld [vmem:[#allocation4 + $0x644] ss:$8 sps:$4 sm:$0xff]  }
 0x269   :  { %4100 = vmatprep.subr.bf16.mxu0 %v5265_v41 }
 0x26b   :  { %4058 = vmatpush2.bf16.msra.mxu1 %v5260_v28  ;;  %v5314_v28 = vld [vmem:[#allocation4 + $0x744] ss:$8 sps:$4 sm:$0xff]  }
 0x26c   :  { %4101 = vmatpush2.bf16.msra.mxu0 %v5263_v32  ;;  %4059 = vmatprep.subr.bf16.mxu1 %v5268_v33 }
 0x26d   :  { %4102 = vmatprep.subr.bf16.mxu0 %v5271_v35 }
 0x26f   :  { %4060 = vmatpush2.bf16.msra.mxu1 %v5266_v36  ;;  %v5312_v36 = vld [vmem:[#allocation4 + $0x740] ss:$8 sps:$4 sm:$0xff]  }
 0x270   :  { %4103 = vmatpush2.bf16.msra.mxu0 %v5269_v37  ;;  %4061 = vmatprep.subr.bf16.mxu1 %v5274_v38  ;;  %v5317_v38 = vld [vmem:[#allocation4 + $0x634] ss:$8 sps:$4 sm:$0xff]  }
 0x271   :  { %4104 = vmatprep.subr.bf16.mxu0 %v5277_v42  ;;  %v5315_v42 = vld [vmem:[#allocation4 + $0x630] ss:$8 sps:$4 sm:$0xff]  }
 0x273   :  { %4062 = vmatpush2.bf16.msra.mxu1 %v5272_v43  ;;  %v5318_v43 = vld [vmem:[#allocation4 + $0x730] ss:$8 sps:$4 sm:$0xff]  }
 0x274   :  { %4105 = vmatpush2.bf16.msra.mxu0 %v5275_v5  ;;  %4063 = vmatprep.subr.bf16.mxu1 %v5280_v47  ;;  %v5326_v5 = vld [vmem:[#allocation4 + $0x724] ss:$8 sps:$4 sm:$0xff]   ;;  %v5321_v47 = vld [vmem:[#allocation4 + $0x620] ss:$8 sps:$4 sm:$0xff]  }
 0x275   :  { %4106 = vmatprep.subr.bf16.mxu0 %v5283_v48  ;;  %v5329_v48 = vld [vmem:[#allocation4 + $0x614] ss:$8 sps:$4 sm:$0xff]  }
 0x277   :  { %4064 = vmatpush2.bf16.msra.mxu1 %v5278_v49  ;;  %v5332_v49 = vld [vmem:[#allocation4 + $0x714] ss:$8 sps:$4 sm:$0xff]  }
 0x278   :  { %4107 = vmatpush2.bf16.msra.mxu0 %v5281_v54  ;;  %4065 = vmatprep.subr.bf16.mxu1 %v5286_v55  ;;  %v5335_v54 = vld [vmem:[#allocation4 + $0x604] ss:$8 sps:$4 sm:$0xff]  }
 0x279   :  { %4108 = vmatprep.subr.bf16.mxu0 %v5289_v59  ;;  %v5338_v55 = vld [vmem:[#allocation4 + $0x704] ss:$8 sps:$4 sm:$0xff]   ;;  %v5344_v59 = vld [vmem:[#allocation4 + $0x7f4] ss:$8 sps:$4 sm:$0xff]  }
 0x27b   :  { %4066 = vmatpush2.bf16.msra.mxu1 %v5284_v60  ;;  %v5339_v60 = vld [vmem:[#allocation4 + $0x6f0] ss:$8 sps:$4 sm:$0xff]  }
 0x27c   :  { %4109 = vmatpush2.bf16.msra.mxu0 %v5287_v30  ;;  %4121 = vmatprep.subr.bf16.mxu1 %v5292_v40  ;;  %v5347_v30 = vld [vmem:[#allocation4 + $0x6e4] ss:$8 sps:$4 sm:$0xff]  }
 0x27d   :  { %4164 = vmatprep.subr.bf16.mxu0 %v5295_v25  ;;  %v5350_v40 = vld [vmem:[#allocation4 + $0x7e4] ss:$8 sps:$4 sm:$0xff]   ;;  %v5353_v25 = vld [vmem:[#allocation4 + $0x6d4] ss:$8 sps:$4 sm:$0xff]  }
 0x27e   :  { %v5685_v12 = vpop.f32.mrf.mxu1  ;;  %4068 = vmatmul.mubr.bf16.vlgmr.msra.gmra.mxu1 %v2319_v31  ;;  %v5351_v31 = vld [vmem:[#allocation4 + $0x6d0] ss:$8 sps:$4 sm:$0xff]  }
 0x27f   :  { %v5687_v13 = vpop.f32.mrf.mxu0  ;;  %4111 = vmatmul.mubr.bf16.vlgmr.msra.gmra.mxu0 %v2321_v8  ;;  %4122 = vmatpush1.bf16.msra.mxu1 %v5290_v4  ;;  %v5356_v4 = vld [vmem:[#allocation4 + $0x7d4] ss:$8 sps:$4 sm:$0xff]   ;;  %v5357_v8 = vld [vmem:[#allocation4 + $0x6c0] ss:$8 sps:$4 sm:$0xff]  }
 0x280   :  { %4165 = vmatpush1.bf16.msra.mxu0 %v5293_v10  ;;  %v2015_v16 = vpop.f32.mrf.mxu1  ;;  %4123 = vmatprep.subr.bf16.mxu1 %v5299_v6  ;;  %v5354_v10 = vld [vmem:[#allocation4 + $0x7d0] ss:$8 sps:$4 sm:$0xff]   ;;  %v5359_v6 = vld [vmem:[#allocation4 + $0x6c4] ss:$8 sps:$4 sm:$0xff]  }
 0x281   :  { %v2058_v22 = vpop.f32.mrf.mxu0  ;;  %4166 = vmatprep.subr.bf16.mxu0 %v5302_v9  ;;  %v5360_v9 = vld [vmem:[#allocation4 + $0x7c0] ss:$8 sps:$4 sm:$0xff]  }
 0x282   :  { %v5689_v62 = vpop.f32.mrf.mxu1 }
 0x283   :  { %v5691_v45 = vpop.f32.mrf.mxu0  ;;  %4124 = vmatpush1.bf16.msra.mxu1 %v5297_v14  ;;  %v5365_v14 = vld [vmem:[#allocation4 + $0x6b4] ss:$8 sps:$4 sm:$0xff]  }
 0x284   :  { %4167 = vmatpush1.bf16.msra.mxu0 %v5300_v17  ;;  %v2019_v44 = vpop.f32.mrf.mxu1  ;;  %4125 = vmatprep.subr.bf16.mxu1 %v5305_v19  ;;  %v5363_v17 = vld [vmem:[#allocation4 + $0x6b0] ss:$8 sps:$4 sm:$0xff]   ;;  %v5371_v19 = vld [vmem:[#allocation4 + $0x6a4] ss:$8 sps:$4 sm:$0xff]  }
 0x285   :  { %v2078_v27 = vpack.c.bf16 %v2019_v44, %v2015_v16  ;;  %v2062_v41 = vpop.f32.mrf.mxu0  ;;  %4168 = vmatprep.subr.bf16.mxu0 %v5308_v52  ;;  %v5368_v16 = vld [vmem:[#allocation4 + $0x7b4] ss:$8 sps:$4 sm:$0xff]   ;;  %v5374_v52 = vld [vmem:[#allocation4 + $0x7a4] ss:$8 sps:$4 sm:$0xff]   ;;  %v5372_v44 = vld [vmem:[#allocation4 + $0x7a0] ss:$8 sps:$4 sm:$0xff]  }
 0x286   :  { %v2080_v32 = vpack.c.bf16 %v2062_v41, %v2058_v22  ;;  %v2180_v22 = vcombine.high %v2164_v15, %v2164_v15 }
 0x287   :  { %v2308_v33 = vadd.bf16 %v2280_v24, %v2078_v27  ;;  %4126 = vmatpush1.bf16.msra.mxu1 %v5303_v50  ;;  %v5369_v24 = vld [vmem:[#allocation4 + $0x6a0] ss:$8 sps:$4 sm:$0xff]   ;;  %v2268_v50 = vpack.i.b16 %v2164_v15, %v2164_v15  ;;  %v2077_v27 = vpack.c.bf16 %v5689_v62, %v5685_v12 }
 0x288   :  { %v2310_v35 = vadd.bf16 %v2294_v53, %v2080_v32  ;;  %4169 = vmatpush1.bf16.msra.mxu0 %v5306_v63  ;;  %4127 = vmatprep.subr.bf16.mxu1 %v5311_v26  ;;  %v5377_v53 = vld [vmem:[#allocation4 + $0x694] ss:$8 sps:$4 sm:$0xff]   ;;  %v2282_v63 = vpack.i.b16 %v2180_v22, %v2180_v22  ;;  %v5375_v26 = vld [vmem:[#allocation4 + $0x690] ss:$8 sps:$4 sm:$0xff]   ;;  %v5383_v32 = vld [vmem:[#allocation4 + $0x684] ss:$8 sps:$4 sm:$0xff]  }
 0x289   :  { %4170 = vmatprep.subr.bf16.mxu0 %v5314_v28  ;;  %v2324_v37 = vmax.bf16 %v5475_v0, %v2308_v33  ;;  %v2273_v41 = vrot.slane %v2268_v50, %v5553_v29  ;;  %v5378_v28 = vld [vmem:[#allocation4 + $0x790] ss:$8 sps:$4 sm:$0xff]   ;;  %v2079_v33 = vpack.c.bf16 %v5691_v45, %v5687_v13 }
 0x28a   :  { %v2326_v20 = vmax.bf16 %v5475_v0, %v2310_v35  ;;  %v5386_v35 = vld [vmem:[#allocation4 + $0x784] ss:$8 sps:$4 sm:$0xff]   ;;  %v5387_v13 = vld [vmem:[#allocation6 + $0x78] sm:$0xff]  }
 0x28b   :  { %4128 = vmatpush1.bf16.msra.mxu1 %v5309_v34  ;;  %4153 = vmatprep.mubr.bf16.mxu1 %v2324_v37  ;;  %v2287_v34 = vrot.slane %v2282_v63, %v5553_v29  ;;  %v2307_v37 = vadd.bf16 %v2273_v41, %v2077_v27  ;;  %v5388_v45 = vld [vmem:[#allocation6 + $0x38] sm:$0xff]  }
 0x28c   :  { %4171 = vmatpush1.bf16.msra.mxu0 %v5312_v36  ;;  %4196 = vmatprep.mubr.bf16.mxu0 %v2326_v20  ;;  %v5381_v36 = vld [vmem:[#allocation4 + $0x680] ss:$8 sps:$4 sm:$0xff]   ;;  %v5389_v20 = vld [vmem:[#allocation6 + $0x70] sm:$0xff]  }
 0x28d   :  { %4129 = vmatprep.subr.bf16.mxu1 %v5317_v38  ;;  %4172 = vmatprep.subr.bf16.mxu0 %v5320_v39  ;;  %v5384_v38 = vld [vmem:[#allocation4 + $0x780] ss:$8 sps:$4 sm:$0xff]   ;;  %v2309_v12 = vadd.bf16 %v2287_v34, %v2079_v33  ;;  %v2323_v62 = vmax.bf16 %v5475_v0, %v2307_v37 }
 0x28f   :  { %4130 = vmatpush1.bf16.msra.mxu1 %v5315_v42  ;;  %v2325_v39 = vmax.bf16 %v5475_v0, %v2309_v12  ;;  %v5390_v42 = vld [vmem:[#allocation6 + $0x30] sm:$0xff]  }
 0x290   :  { %4173 = vmatpush1.bf16.msra.mxu0 %v5318_v43  ;;  %4131 = vmatprep.subr.bf16.mxu1 %v5323_v46  ;;  %v5391_v43 = vld [vmem:[#allocation6 + $0x68] sm:$0xff]  }
 0x291   :  { %4174 = vmatprep.subr.bf16.mxu0 %v5326_v5  ;;  %v5392_v46 = vld [vmem:[#allocation6 + $0x28] sm:$0xff]   ;;  %v5393_v5 = vld [vmem:[#allocation6 + $0x60] sm:$0xff]  }
 0x293   :  { %4132 = vmatpush1.bf16.msra.mxu1 %v5321_v47  ;;  %v5394_v47 = vld [vmem:[#allocation6 + $0x20] sm:$0xff]  }
 0x294   :  { %4175 = vmatpush1.bf16.msra.mxu0 %v5324_v21  ;;  %4133 = vmatprep.subr.bf16.mxu1 %v5329_v48  ;;  %v5395_v21 = vld [vmem:[#allocation6 + $0x58] sm:$0xff]  }
 0x295   :  { %4176 = vmatprep.subr.bf16.mxu0 %v5332_v49  ;;  %v5396_v48 = vld [vmem:[#allocation6 + $0x18] sm:$0xff]   ;;  %v5397_v49 = vld [vmem:[#allocation6 + $0x50] sm:$0xff]  }
 0x297   :  { %4134 = vmatpush1.bf16.msra.mxu1 %v5327_v1  ;;  %v5398_v1 = vld [vmem:[#allocation6 + $0x10] sm:$0xff]  }
 0x298   :  { %4177 = vmatpush1.bf16.msra.mxu0 %v5330_v51  ;;  %4135 = vmatprep.subr.bf16.mxu1 %v5335_v54  ;;  %v5399_v51 = vld [vmem:[#allocation6 + $0x48] sm:$0xff]  }
 0x299   :  { %4178 = vmatprep.subr.bf16.mxu0 %v5338_v55  ;;  %v5400_v54 = vld [vmem:[#allocation6 + $0x8] sm:$0xff]   ;;  %v5401_v55 = vld [vmem:[#allocation6 + $0x40] sm:$0xff]  }
 0x29b   :  { %4136 = vmatpush1.bf16.msra.mxu1 %v5333_v56  ;;  %v5402_v56 = vld [vmem:[#allocation6] sm:$0xff]  }
 0x29c   :  { %4179 = vmatpush1.bf16.msra.mxu0 %v5336_v57  ;;  %4137 = vmatprep.subr.bf16.mxu1 %v5341_v58 }
 0x29d   :  { %4180 = vmatprep.subr.bf16.mxu0 %v5344_v59 }
 0x29f   :  { %4138 = vmatpush2.bf16.msra.mxu1 %v5339_v60 }
 0x2a0   :  { %4181 = vmatpush2.bf16.msra.mxu0 %v5342_v61  ;;  %4139 = vmatprep.subr.bf16.mxu1 %v5347_v30 }
 0x2a1   :  { %4182 = vmatprep.subr.bf16.mxu0 %v5350_v40 }
 0x2a3   :  { %4140 = vmatpush2.bf16.msra.mxu1 %v5345_v2 }
 0x2a4   :  { %4183 = vmatpush2.bf16.msra.mxu0 %v5348_v3  ;;  %4141 = vmatprep.subr.bf16.mxu1 %v5353_v25 }
 0x2a5   :  { %4184 = vmatprep.subr.bf16.mxu0 %v5356_v4 }
 0x2a7   :  { %4142 = vmatpush2.bf16.msra.mxu1 %v5351_v31 }
 0x2a8   :  { %4185 = vmatpush2.bf16.msra.mxu0 %v5354_v10  ;;  %4143 = vmatprep.subr.bf16.mxu1 %v5359_v6 }
 0x2a9   :  { %4186 = vmatprep.subr.bf16.mxu0 %v5362_v7 }
 0x2ab   :  { %4144 = vmatpush2.bf16.msra.mxu1 %v5357_v8 }
 0x2ac   :  { %4187 = vmatpush2.bf16.msra.mxu0 %v5360_v9  ;;  %4145 = vmatprep.subr.bf16.mxu1 %v5365_v14 }
 0x2ad   :  { %4188 = vmatprep.subr.bf16.mxu0 %v5368_v16 }
 0x2af   :  { %4146 = vmatpush2.bf16.msra.mxu1 %v5363_v17 }
 0x2b0   :  { %4189 = vmatpush2.bf16.msra.mxu0 %v5366_v18  ;;  %4147 = vmatprep.subr.bf16.mxu1 %v5371_v19 }
 0x2b1   :  { %4190 = vmatprep.subr.bf16.mxu0 %v5374_v52 }
 0x2b3   :  { %4148 = vmatpush2.bf16.msra.mxu1 %v5369_v24 }
 0x2b4   :  { %4191 = vmatpush2.bf16.msra.mxu0 %v5372_v44  ;;  %4149 = vmatprep.subr.bf16.mxu1 %v5377_v53  ;;  %v4951_v53 = vld.sshfl [vmem:[%s5731_s6] sm:$0x11 pattern:$0x75316420] }
 0x2b5   :  { %4192 = vmatprep.subr.bf16.mxu0 %v5380_v11  ;;  %v4225_v12 = vrot.slane %v4951_v53, %v5549_v23 }
 0x2b7   :  { %4150 = vmatpush2.bf16.msra.mxu1 %v5375_v26 }
 0x2b8   :  { %4193 = vmatpush2.bf16.msra.mxu0 %v5378_v28  ;;  %4151 = vmatprep.subr.bf16.mxu1 %v5383_v32  ;;  %v4218_v32 = vcombine.high %v4951_v53, %v4951_v53 }
 0x2b9   :  { %4194 = vmatprep.subr.bf16.mxu0 %v5386_v35 }
 0x2bb   :  { %4152 = vmatpush2.bf16.msra.mxu1 %v5381_v36 }
 0x2bc   :  { %4195 = vmatpush2.bf16.msra.mxu0 %v5384_v38  ;;  %4969 = vmatprep.subr.bf16.mxu1 %v5387_v13 }
 0x2be   :  { %4154 = vmatmul.mubr.bf16.vlgmr.msra.gmra.mxu1 %v2323_v62  ;;  %v3897_v57 = vpop.f32.mrf.mxu1 }
 0x2bf   :  { %4197 = vmatmul.mubr.bf16.vlgmr.msra.gmra.mxu0 %v2325_v39  ;;  %4970 = vmatpush3.bf16.msra.mxu1 %v5388_v45  ;;  %v3940_v58 = vpop.f32.mrf.mxu0  ;;  %v4232_v45 = vrot.slane %v4218_v32, %v5549_v23 }
 0x2c0   :  { %4971 = vmatprep.subr.bf16.mxu1 %v5389_v20  ;;  %v3899_v59 = vpop.f32.mrf.mxu1  ;;  %v3941_v15 = vadd.f32 %v3940_v58, %v3897_v57 }
 0x2c1   :  { %v3942_v60 = vpop.f32.mrf.mxu0 }
 0x2c2   :  { %v3901_v61 = vpop.f32.mrf.mxu1  ;;  %v3943_v17 = vadd.f32 %v3942_v60, %v3899_v59 }
 0x2c3   :  { %4972 = vmatpush3.bf16.msra.mxu1 %v5390_v42  ;;  %v3944_v30 = vpop.f32.mrf.mxu0 }
 0x2c4   :  { %4973 = vmatprep.subr.bf16.mxu1 %v5391_v43  ;;  %v3903_v40 = vpop.f32.mrf.mxu1  ;;  %v3945_v18 = vadd.f32 %v3944_v30, %v3901_v61 }
 0x2c5   :  { %v3946_v2 = vpop.f32.mrf.mxu0 }
 0x2c6   :  { %v3947_v52 = vadd.f32 %v3946_v2, %v3903_v40 }
 0x2c7   :  { %4974 = vmatpush3.bf16.msra.mxu1 %v5392_v46 }
 0x2c8   :  { %4975 = vmatprep.subr.bf16.mxu1 %v5393_v5 }
 0x2cb   :  { %4976 = vmatpush3.bf16.msra.mxu1 %v5394_v47 }
 0x2cc   :  { %4977 = vmatprep.subr.bf16.mxu1 %v5395_v21  ;;  %v4234_v21 = vpack.i.b16 %v4225_v12, %v4225_v12 }
 0x2ce   :  { %v4239_v59 = vrot.slane %v4234_v21, %v5553_v29 }
 0x2cf   :  { %4978 = vmatpush3.bf16.msra.mxu1 %v5396_v48 }
 0x2d0   :  { %4979 = vmatprep.subr.bf16.mxu1 %v5397_v49 }
 0x2d3   :  { %4980 = vmatpush3.bf16.msra.mxu1 %v5398_v1 }
 0x2d4   :  { %4981 = vmatprep.subr.bf16.mxu1 %v5399_v51 }
 0x2d7   :  { %4982 = vmatpush3.bf16.msra.mxu1 %v5400_v54  ;;  %v4241_v54 = vpack.i.b16 %v4232_v45, %v4232_v45 }
 0x2d8   :  { %4983 = vmatprep.subr.bf16.mxu1 %v5401_v55 }
 0x2d9   :  { %v4246_v40 = vrot.slane %v4241_v54, %v5553_v29 }
 0x2db   :  { %4984 = vmatpush3.bf16.msra.mxu1 %v5402_v56 }
 0x2fe   :  { %v3983_v3 = vpop.f32.mrf.mxu1 }
 0x2ff   :  { %v4026_v25 = vpop.f32.mrf.mxu0  ;;  %v3984_v19 = vadd.f32 %v3983_v3, %v3941_v15 }
 0x300   :  { %v3985_v4 = vpop.f32.mrf.mxu1 }
 0x301   :  { %v4028_v31 = vpop.f32.mrf.mxu0  ;;  %v3986_v24 = vadd.f32 %v3985_v4, %v3943_v17  ;;  %v4027_v63 = vadd.f32 %v4026_v25, %v3984_v19 }
 0x302   :  { %v3987_v10 = vpop.f32.mrf.mxu1 }
 0x303   :  { %v4030_v6 = vpop.f32.mrf.mxu0  ;;  %v3988_v50 = vadd.f32 %v3987_v10, %v3945_v18  ;;  %v4029_v27 = vadd.f32 %v4028_v31, %v3986_v24 }
 0x304   :  { %v3989_v7 = vpop.f32.mrf.mxu1 }
 0x305   :  { %v4032_v8 = vpop.f32.mrf.mxu0  ;;  %v3990_v11 = vadd.f32 %v3989_v7, %v3947_v52  ;;  %v4031_v41 = vadd.f32 %v4030_v6, %v3988_v50  ;;  %v4952_v6 = vld [vmem:[%s5733_s8] ss:$0 sm:$0xff] }
 0x307   :  { %v4033_v34 = vadd.f32 %v4032_v8, %v3990_v11 }
 0x33e   :  { %v4069_v9 = vpop.f32.mrf.mxu1 }
 0x33f   :  { %v4112_v14 = vpop.f32.mrf.mxu0  ;;  %v4070_v28 = vadd.f32 %v4069_v9, %v4027_v63 }
 0x340   :  { %v4071_v16 = vpop.f32.mrf.mxu1 }
 0x341   :  { %v4114_v22 = vpop.f32.mrf.mxu0  ;;  %v4072_v35 = vadd.f32 %v4071_v16, %v4029_v27  ;;  %v4113_v62 = vadd.f32 %v4112_v14, %v4070_v28 }
 0x342   :  { %v4073_v44 = vpop.f32.mrf.mxu1 }
 0x343   :  { %v4116_v26 = vpop.f32.mrf.mxu0  ;;  %v4074_v36 = vadd.f32 %v4073_v44, %v4031_v41  ;;  %v4115_v42 = vadd.f32 %v4114_v22, %v4072_v35 }
 0x344   :  { %v4075_v33 = vpop.f32.mrf.mxu1 }
 0x345   :  { %v4118_v37 = vpop.f32.mrf.mxu0  ;;  %v4076_v39 = vadd.f32 %v4075_v33, %v4033_v34  ;;  %v4117_v43 = vadd.f32 %v4116_v26, %v4074_v36 }
 0x347   :  { %v4119_v48 = vadd.f32 %v4118_v37, %v4076_v39 }
 0x37e   :  { %v4155_v38 = vpop.f32.mrf.mxu1 }
 0x37f   :  { %v4198_v13 = vpop.f32.mrf.mxu0  ;;  %v4156_v46 = vadd.f32 %v4155_v38, %v4113_v62 }
 0x380   :  { %v4157_v20 = vpop.f32.mrf.mxu1 }
 0x381   :  { %v4200_v5 = vpop.f32.mrf.mxu0  ;;  %v4158_v49 = vadd.f32 %v4157_v20, %v4115_v42  ;;  %v4199_v56 = vadd.f32 %v4198_v13, %v4156_v46 }
 0x382   :  { %v4159_v47 = vpop.f32.mrf.mxu1 }
 0x383   :  { %v4160_v1 = vadd.f32 %v4159_v47, %v4117_v43  ;;  %v4202_v51 = vpop.f32.mrf.mxu0  ;;  %v4201_v23 = vadd.f32 %v4200_v5, %v4158_v49 }
 0x384   :  { %v4161_v55 = vpop.f32.mrf.mxu1 }
 0x385   :  { %v4203_v57 = vadd.f32 %v4202_v51, %v4160_v1  ;;  %v4162_v58 = vadd.f32 %v4161_v55, %v4119_v48  ;;  %v4204_v60 = vpop.f32.mrf.mxu0 }
 0x387   :  { %v4207_v61 = vpack.c.bf16 %v4203_v57, %v4199_v56  ;;  %v4205_v30 = vadd.f32 %v4204_v60, %v4162_v58 }
 0x389   :  { %v4208_v2 = vpack.c.bf16 %v4205_v30, %v4201_v23  ;;  %v4247_v3 = vadd.bf16 %v4239_v59, %v4207_v61 }
 0x38b   :  { %v4248_v25 = vadd.bf16 %v4246_v40, %v4208_v2  ;;  %v4249_v31 = vmax.bf16 %v5475_v0, %v4247_v3 }
 0x38d   :  { %v4250_v4 = vmax.bf16 %v5475_v0, %v4248_v25 }
 0x38f   :  { %4418 = vmatprep.mubr.bf16.mxu1 %v4250_v4 }
 0x390   :  { %4419 = vmatmul.mubr.bf16.vlgmr.msra.gmra.mxu1 %v4249_v31 }
 0x450   :  { %v4985_v10 = vpop.f32.mrf.mxu1 }
 0x452   :  { %v4986_v7 = vpop.f32.mrf.mxu1 }
 0x453   :  { %v4987_v8 = vadd.f32 %v4986_v7, %v4985_v10 }
 0x454   :  { %v4988_v9 = vpop.f32.mrf.mxu1 }
 0x455   :  { %v4421_v14 = vadd.f32 %v4987_v8, %v4952_v6 }
 0x456   :  { %v4989_v15 = vpop.f32.mrf.mxu1 }
 0x457   :  { %4427 = vst [vmem:[%s5734_s9] sm:$0xff] %v4421_v14  ;;  %v4990_v29 = vadd.f32 %v4989_v15, %v4988_v9 }
 0x459   :  { %v4424_v16 = vadd.f32 %v4990_v29, %v4952_v6 }
 0x45b   :  { %4428 = vst [vmem:[%s5734_s9 + $0x8] sm:$0xff] %v4424_v16 }
 0x45c   :  { %4433 = vsyncpa [#allocation3], 1 }
 0x45d   :  { %4434 = vsyncpa [#allocation5], 1 }

// kernel: _forward_impl.1
= control target key start
LH: loop header
LB: loop body
LE: loop exit
PB: predicated region body
PF: predicated region fallthrough
CT: control target
= control target key end

     0   :  { %14 = vsyncpa [#allocation3], 0  ;;  %s5725_s0 = inlined_call_operand.vmem [shape: f32[16,4], index: 0, kind: input, shape index: {}]   ;;  %s5726_s1 = inlined_call_operand.vmem [shape: bf16[4,256], index: 1, kind: input, shape index: {}]   ;;  %s5727_s2 = inlined_call_operand.vmem [shape: bf16[1,256], index: 2, kind: input, shape index: {}]   ;;  %s5728_s3 = inlined_call_operand.hbm [shape: bf16[256,2048], index: 3, kind: input, shape index: {}]   ;;  %s5729_s4 = inlined_call_operand.vmem [shape: bf16[1,2048], index: 4, kind: input, shape index: {}]   ;;  %s5730_s5 = inlined_call_operand.hbm [shape: bf16[2048,256], index: 5, kind: input, shape index: {}]   ;;  %s5731_s6 = inlined_call_operand.vmem [shape: bf16[1,256], index: 6, kind: input, shape index: {}]   ;;  %s5732_s7 = inlined_call_operand.hbm [shape: bf16[256,128], index: 7, kind: input, shape index: {}]   ;;  %s5733_s8 = inlined_call_operand.vmem [shape: f32[1,128], index: 8, kind: input, shape index: {}]   ;;  %s5734_s9 = inlined_call_operand.vmem [shape: f32[16,128], index: 9, kind: output, shape index: {}]  }
   0x1   :  { %15 = vsyncpa [#allocation5], 0  ;;  %s5467_s30 = smov [#allocation4]  }
   0x2   :  { %s41_s10 = sshll.u32 %s5467_s30, 4  ;;  %s42_s10 = int_to_ptr.vmem [resolvable:$true] %s41_s10 }
   0x3   :  { %s5411_s11 = scalar_lea.vmem %s42_s10, 32768  ;;  %p5416_p1 = scmp.lt.s32.totalorder %s42_s10, %s42_s10 }
   0x4   :  { %p5412_p0 = scmp.ne.s32.totalorder %s42_s10, %s5411_s11  ;;  %p5417_p2 = scmp.lt.s32.totalorder %s5411_s11, %s5411_s11 }
   0x6   :  { %p5418_p3 = por %p5417_p2, %p5416_p1 }
   0x8   :  { %p5419_p4 = pnand %p5418_p3, %p5412_p0 }
   0xa   :  { %5422 = shalt.err (!%p5419_p4)
}
   0xb   :  { %s5468_s12 = smov 128   ;;  %s5469_s13 = smov 8  }
   0xc   :  { %47 = dma.hbm_to_vmem [thread:$0]  %s5730_s5, 32768, %s42_s10, [#allocation5], %s5468_s12, %s5468_s12, %s5469_s13  }
   0xd   :  { %s5470_s16 = smov [#allocation2]  }
   0xe   :  { %s27_s17 = sshll.u32 %s5470_s16, 4  ;;  %s28_s17 = int_to_ptr.vmem [resolvable:$true] %s27_s17 }
   0xf   :  { %s5431_s18 = scalar_lea.vmem %s28_s17, 32768  ;;  %p5436_p6 = scmp.lt.s32.totalorder %s28_s17, %s28_s17 }
  0x10   :  { %p5432_p5 = scmp.ne.s32.totalorder %s28_s17, %s5431_s18  ;;  %p5437_p7 = scmp.lt.s32.totalorder %s5431_s18, %s5431_s18 }
  0x12   :  { %p5438_p8 = por %p5437_p7, %p5436_p6 }
  0x14   :  { %p5439_p9 = pnand %p5438_p8, %p5432_p5 }
  0x16   :  { %5442 = shalt.err (!%p5439_p9)
}
  0x17   :  { %s5471_s19 = smov 1024   ;;  %s5472_s20 = smov 64  }
  0x18   :  { %33 = dma.hbm_to_vmem [thread:$0]  %s5728_s3, 32768, %s28_s17, [#allocation3], %s5471_s19, %s5471_s19, %s5472_s20  }
  0x19   :  { %s5473_s23 = smov [#allocation6]  }
  0x1a   :  { %s55_s24 = sshll.u32 %s5473_s23, 4  ;;  %s56_s24 = int_to_ptr.vmem [resolvable:$true] %s55_s24 }
  0x1b   :  { %s5451_s5 = scalar_lea.vmem %s56_s24, 2048  ;;  %p5456_p11 = scmp.lt.s32.totalorder %s56_s24, %s56_s24 }
  0x1c   :  { %p5452_p10 = scmp.ne.s32.totalorder %s56_s24, %s5451_s5  ;;  %p5457_p12 = scmp.lt.s32.totalorder %s5451_s5, %s5451_s5 }
  0x1e   :  { %p5458_p13 = por %p5457_p12, %p5456_p11 }
  0x20   :  { %p5459_p0 = pnand %p5458_p13, %p5452_p10 }
  0x22   :  { %5462 = shalt.err (!%p5459_p0)
}
  0x23   :  { %s5474_s25 = smov 4  }
  0x24   :  { %61 = dma.hbm_to_vmem [thread:$0]  %s5732_s7, 2048, %s56_s24, [#allocation5], %s5472_s20, %s5472_s20, %s5474_s25  }
  0x25   :  { %5463 = dma.done.wait [#allocation3], 32768  }
  0x26   :  { %5464 = vsyncadd [#allocation3], 4294934528 }
  0x27   :  { %5465 = dma.done.wait [#allocation5], 34816  }
  0x28   :  { %5466 = vsyncadd [#allocation5], 4294932480  ;;  %v5475_v0 = vmov 0   ;;  %vm91_vm0 = vcmask 1041408   ;;  %v74_v2 = vld [vmem:[%s5725_s0] sm:$0xff]  ;;  %v75_v3 = vld [vmem:[%s5725_s0 + $0x8] sm:$0xff] }
  0x29   :  { %130 = vmatprep.mubr.bf16.mxu0 %v5475_v0  ;;  %v4435_v1 = vld.sshfl [vmem:[%s5726_s1] sm:$0x33 pattern:$0x76325410]  ;;  %v298_v8 = vld [vmem:[#allocation2 + $0x388] sm:$0xff]  ;;  %v76_v14 = vpack.c.bf16 %v75_v3, %v74_v2  ;;  %vm87_vm1 = vcmask 31744  }
  0x2a   :  { %v86_v4 = vcombine.high %v4435_v1, %v4435_v1  ;;  %v93_v5 = vsel %vm91_vm0, %v4435_v1, 0  ;;  %v297_v6 = vld [vmem:[#allocation2 + $0x380] sm:$0xff]  ;;  %v306_v10 = vld [vmem:[#allocation2 + $0x3c8] sm:$0xff] }
  0x2b   :  { %v305_v7 = vld [vmem:[#allocation2 + $0x3c0] sm:$0xff]  ;;  %v4554_v15 = vcombine.high %v298_v8, %v306_v10  ;;  %v282_v17 = vld [vmem:[#allocation2 + $0x308] sm:$0xff]  ;;  %v4553_v20 = vcombine.low %v298_v8, %v306_v10 }
  0x2c   :  { %v4552_v9 = vcombine.high %v297_v6, %v305_v7  ;;  %v4551_v11 = vcombine.low %v297_v6, %v305_v7  ;;  %v281_v12 = vld [vmem:[#allocation2 + $0x300] sm:$0xff]  ;;  %4436 = vmatprep.subr.msk.bf16.mxu0 %vm91_vm0, %v86_v4  ;;  %v290_v18 = vld [vmem:[#allocation2 + $0x348] sm:$0xff] }
  0x2d   :  { %v289_v13 = vld [vmem:[#allocation2 + $0x340] sm:$0xff]  ;;  %113 = vmatpush1.bf16.msra.mxu0 %v93_v5  ;;  %v4538_v22 = vcombine.high %v282_v17, %v290_v18  ;;  %v266_v25 = vld [vmem:[#allocation2 + $0x288] sm:$0xff]  ;;  %v4537_v29 = vcombine.low %v282_v17, %v290_v18 }
  0x2e   :  { %v4536_v16 = vcombine.high %v281_v12, %v289_v13  ;;  %v265_v19 = vld [vmem:[#allocation2 + $0x280] sm:$0xff]  ;;  %1721 = vmatprep.subr.bf16.mxu1 %v4552_v9  ;;  %1764 = vmatprep.subr.bf16.mxu0 %v4554_v15  ;;  %v4535_v23 = vcombine.low %v281_v12, %v289_v13  ;;  %v274_v26 = vld [vmem:[#allocation2 + $0x2c8] sm:$0xff] }
  0x2f   :  { %v273_v21 = vld [vmem:[#allocation2 + $0x2c0] sm:$0xff]  ;;  %1722 = vmatpush1.bf16.msra.mxu1 %v4551_v11  ;;  %v4522_v30 = vcombine.high %v266_v25, %v274_v26  ;;  %v250_v33 = vld [vmem:[#allocation2 + $0x208] sm:$0xff]  ;;  %v4521_v37 = vcombine.low %v266_v25, %v274_v26 }
  0x30   :  { %1723 = vmatprep.subr.bf16.mxu1 %v4536_v16  ;;  %v4520_v24 = vcombine.high %v265_v19, %v273_v21  ;;  %4437 = vmatmul.mubr.msk.bf16.vlgmr.msra.gmra.mxu0 %vm87_vm1, %v76_v14  ;;  %v249_v27 = vld [vmem:[#allocation2 + $0x200] sm:$0xff]  ;;  %v4519_v31 = vcombine.low %v265_v19, %v273_v21  ;;  %v258_v34 = vld [vmem:[#allocation2 + $0x248] sm:$0xff] }
  0x31   :  { %v257_v28 = vld [vmem:[#allocation2 + $0x240] sm:$0xff]  ;;  %1765 = vmatpush1.bf16.msra.mxu0 %v4553_v20  ;;  %v4506_v38 = vcombine.high %v250_v33, %v258_v34  ;;  %v234_v41 = vld [vmem:[#allocation2 + $0x188] sm:$0xff]  ;;  %v4505_v45 = vcombine.low %v250_v33, %v258_v34 }
  0x32   :  { %1766 = vmatprep.subr.bf16.mxu0 %v4538_v22  ;;  %v4504_v32 = vcombine.high %v249_v27, %v257_v28  ;;  %v233_v35 = vld [vmem:[#allocation2 + $0x180] sm:$0xff]  ;;  %v4503_v39 = vcombine.low %v249_v27, %v257_v28  ;;  %v242_v42 = vld [vmem:[#allocation2 + $0x1c8] sm:$0xff] }
  0x33   :  { %1724 = vmatpush1.bf16.msra.mxu1 %v4535_v23  ;;  %v241_v36 = vld [vmem:[#allocation2 + $0x1c0] sm:$0xff]  ;;  %v4490_v46 = vcombine.high %v234_v41, %v242_v42  ;;  %v218_v48 = vld [vmem:[#allocation2 + $0x108] sm:$0xff]  ;;  %v4489_v53 = vcombine.low %v234_v41, %v242_v42 }
  0x34   :  { %1725 = vmatprep.subr.bf16.mxu1 %v4520_v24  ;;  %v4488_v40 = vcombine.high %v233_v35, %v241_v36  ;;  %v217_v43 = vld [vmem:[#allocation2 + $0x100] sm:$0xff]  ;;  %v4487_v47 = vcombine.low %v233_v35, %v241_v36  ;;  %v226_v49 = vld [vmem:[#allocation2 + $0x148] sm:$0xff] }
  0x35   :  { %1767 = vmatpush1.bf16.msra.mxu0 %v4537_v29  ;;  %v225_v44 = vld [vmem:[#allocation2 + $0x140] sm:$0xff]  ;;  %v202_v54 = vld [vmem:[#allocation2 + $0x88] sm:$0xff]  ;;  %v4474_v56 = vcombine.high %v218_v48, %v226_v49  ;;  %v4473_v61 = vcombine.low %v218_v48, %v226_v49 }
  0x36   :  { %1768 = vmatprep.subr.bf16.mxu0 %v4522_v30  ;;  %v201_v50 = vld [vmem:[#allocation2 + $0x80] sm:$0xff]  ;;  %v4472_v51 = vcombine.high %v217_v43, %v225_v44  ;;  %v210_v55 = vld [vmem:[#allocation2 + $0xc8] sm:$0xff]  ;;  %v4471_v57 = vcombine.low %v217_v43, %v225_v44 }
  0x37   :  { %1726 = vmatpush1.bf16.msra.mxu1 %v4519_v31  ;;  %v209_v52 = vld [vmem:[#allocation2 + $0xc0] sm:$0xff]  ;;  %v186_v62 = vld [vmem:[#allocation2 + $0x8] sm:$0xff]  ;;  %v4458_v1 = vcombine.high %v202_v54, %v210_v55  ;;  %v4457_v6 = vcombine.low %v202_v54, %v210_v55 }
  0x38   :  { %1727 = vmatprep.subr.bf16.mxu1 %v4504_v32  ;;  %v185_v58 = vld [vmem:[#allocation2] sm:$0xff]  ;;  %v4456_v60 = vcombine.high %v201_v50, %v209_v52  ;;  %v194_v63 = vld [vmem:[#allocation2 + $0x48] sm:$0xff]  ;;  %v4455_v2 = vcombine.low %v201_v50, %v209_v52 }
  0x39   :  { %1769 = vmatpush1.bf16.msra.mxu0 %v4521_v37  ;;  %v193_v59 = vld [vmem:[#allocation2 + $0x40] sm:$0xff]  ;;  %v426_v7 = vld [vmem:[#allocation2 + $0x788] sm:$0xff]  ;;  %v4442_v9 = vcombine.high %v186_v62, %v194_v63  ;;  %v4441_v14 = vcombine.low %v186_v62, %v194_v63 }
  0x3a   :  { %1770 = vmatprep.subr.bf16.mxu0 %v4506_v38  ;;  %v425_v3 = vld [vmem:[#allocation2 + $0x780] sm:$0xff]  ;;  %v4440_v5 = vcombine.high %v185_v58, %v193_v59  ;;  %v434_v8 = vld [vmem:[#allocation2 + $0x7c8] sm:$0xff]  ;;  %v4439_v10 = vcombine.low %v185_v58, %v193_v59 }
  0x3b   :  { %1728 = vmatpush1.bf16.msra.mxu1 %v4503_v39  ;;  %v433_v4 = vld [vmem:[#allocation2 + $0x7c0] sm:$0xff]  ;;  %v410_v15 = vld [vmem:[#allocation2 + $0x708] sm:$0xff]  ;;  %v4682_v17 = vcombine.high %v426_v7, %v434_v8  ;;  %v4681_v22 = vcombine.low %v426_v7, %v434_v8 }
  0x3c   :  { %1729 = vmatprep.subr.bf16.mxu1 %v4488_v40  ;;  %v409_v11 = vld [vmem:[#allocation2 + $0x700] sm:$0xff]  ;;  %v4680_v13 = vcombine.high %v425_v3, %v433_v4  ;;  %v418_v16 = vld [vmem:[#allocation2 + $0x748] sm:$0xff]  ;;  %v4679_v18 = vcombine.low %v425_v3, %v433_v4 }
  0x3d   :  { %1771 = vmatpush1.bf16.msra.mxu0 %v4505_v45  ;;  %v417_v12 = vld [vmem:[#allocation2 + $0x740] sm:$0xff]  ;;  %v394_v23 = vld [vmem:[#allocation2 + $0x688] sm:$0xff]  ;;  %v4666_v25 = vcombine.high %v410_v15, %v418_v16  ;;  %v4665_v30 = vcombine.low %v410_v15, %v418_v16 }
  0x3e   :  { %1772 = vmatprep.subr.bf16.mxu0 %v4490_v46  ;;  %v393_v19 = vld [vmem:[#allocation2 + $0x680] sm:$0xff]  ;;  %v4664_v21 = vcombine.high %v409_v11, %v417_v12  ;;  %v402_v24 = vld [vmem:[#allocation2 + $0x6c8] sm:$0xff]  ;;  %v4663_v26 = vcombine.low %v409_v11, %v417_v12  ;;  %v300_v11 = vld [vmem:[#allocation2 + $0x398] sm:$0xff] }
  0x3f   :  { %1730 = vmatpush1.bf16.msra.mxu1 %v4487_v47  ;;  %v401_v20 = vld [vmem:[#allocation2 + $0x6c0] sm:$0xff]  ;;  %v378_v31 = vld [vmem:[#allocation2 + $0x608] sm:$0xff]  ;;  %v4650_v33 = vcombine.high %v394_v23, %v402_v24  ;;  %v4649_v38 = vcombine.low %v394_v23, %v402_v24 }
  0x40   :  { %1731 = vmatprep.subr.bf16.mxu1 %v4472_v51  ;;  %v377_v27 = vld [vmem:[#allocation2 + $0x600] sm:$0xff]  ;;  %v4648_v29 = vcombine.high %v393_v19, %v401_v20  ;;  %v386_v32 = vld [vmem:[#allocation2 + $0x648] sm:$0xff]  ;;  %v4647_v34 = vcombine.low %v393_v19, %v401_v20  ;;  %v156_v19 = vlaneseq }
  0x41   :  { %1773 = vmatpush1.bf16.msra.mxu0 %v4489_v53  ;;  %v385_v28 = vld [vmem:[#allocation2 + $0x640] sm:$0xff]  ;;  %v362_v39 = vld [vmem:[#allocation2 + $0x588] sm:$0xff]  ;;  %v4634_v41 = vcombine.high %v378_v31, %v386_v32  ;;  %v4633_v44 = vcombine.low %v378_v31, %v386_v32 }
  0x42   :  { %1774 = vmatprep.subr.bf16.mxu0 %v4474_v56  ;;  %v361_v35 = vld [vmem:[#allocation2 + $0x580] sm:$0xff]  ;;  %v4632_v37 = vcombine.high %v377_v27, %v385_v28  ;;  %v370_v40 = vld [vmem:[#allocation2 + $0x5c8] sm:$0xff]  ;;  %v4631_v42 = vcombine.low %v377_v27, %v385_v28 }
  0x43   :  { %1732 = vmatpush1.bf16.msra.mxu1 %v4471_v57  ;;  %v369_v36 = vld [vmem:[#allocation2 + $0x5c0] sm:$0xff]  ;;  %v4618_v45 = vcombine.high %v362_v39, %v370_v40  ;;  %v4617_v47 = vcombine.low %v362_v39, %v370_v40  ;;  %v346_v50 = vld [vmem:[#allocation2 + $0x508] sm:$0xff]  ;;  %v283_v40 = vld [vmem:[#allocation2 + $0x310] sm:$0xff] }
  0x44   :  { %1733 = vmatprep.subr.bf16.mxu1 %v4456_v60  ;;  %v4616_v43 = vcombine.high %v361_v35, %v369_v36  ;;  %v4615_v46 = vcombine.low %v361_v35, %v369_v36  ;;  %v345_v48 = vld [vmem:[#allocation2 + $0x500] sm:$0xff]  ;;  %v354_v52 = vld [vmem:[#allocation2 + $0x548] sm:$0xff] }
  0x45   :  { %1775 = vmatpush1.bf16.msra.mxu0 %v4473_v61  ;;  %v353_v49 = vld [vmem:[#allocation2 + $0x540] sm:$0xff]  ;;  %v4601_v53 = vcombine.low %v346_v50, %v354_v52  ;;  %v4602_v54 = vcombine.high %v346_v50, %v354_v52  ;;  %v330_v58 = vld [vmem:[#allocation2 + $0x488] sm:$0xff]  ;;  %v268_v50 = vld [vmem:[#allocation2 + $0x298] sm:$0xff] }
  0x46   :  { %1776 = vmatprep.subr.bf16.mxu0 %v4458_v1  ;;  %v4600_v51 = vcombine.high %v345_v48, %v353_v49  ;;  %v4599_v55 = vcombine.low %v345_v48, %v353_v49  ;;  %v329_v56 = vld [vmem:[#allocation2 + $0x480] sm:$0xff]  ;;  %v338_v60 = vld [vmem:[#allocation2 + $0x4c8] sm:$0xff]  ;;  %v275_v49 = vld [vmem:[#allocation2 + $0x2d0] sm:$0xff] }
  0x47   :  { %1734 = vmatpush1.bf16.msra.mxu1 %v4455_v2  ;;  %v337_v57 = vld [vmem:[#allocation2 + $0x4c0] sm:$0xff]  ;;  %v4585_v61 = vcombine.low %v330_v58, %v338_v60  ;;  %v4586_v62 = vcombine.high %v330_v58, %v338_v60  ;;  %v314_v3 = vld [vmem:[#allocation2 + $0x408] sm:$0xff]  ;;  %v252_v58 = vld [vmem:[#allocation2 + $0x218] sm:$0xff] }
  0x48   :  { %1735 = vmatprep.subr.bf16.mxu1 %v4440_v5  ;;  %v4584_v59 = vcombine.high %v329_v56, %v337_v57  ;;  %v4583_v63 = vcombine.low %v329_v56, %v337_v57  ;;  %v313_v1 = vld [vmem:[#allocation2 + $0x400] sm:$0xff]  ;;  %v322_v5 = vld [vmem:[#allocation2 + $0x448] sm:$0xff]  ;;  %v251_v56 = vld [vmem:[#allocation2 + $0x210] sm:$0xff] }
  0x49   :  { %1777 = vmatpush1.bf16.msra.mxu0 %v4457_v6  ;;  %v321_v2 = vld [vmem:[#allocation2 + $0x440] sm:$0xff]  ;;  %v4569_v6 = vcombine.low %v314_v3, %v322_v5  ;;  %v4570_v7 = vcombine.high %v314_v3, %v322_v5  ;;  %v259_v57 = vld [vmem:[#allocation2 + $0x250] sm:$0xff]  ;;  %v236_v3 = vld [vmem:[#allocation2 + $0x198] sm:$0xff] }
  0x4a   :  { %1778 = vmatprep.subr.bf16.mxu0 %v4442_v9  ;;  %v4568_v4 = vcombine.high %v313_v1, %v321_v2  ;;  %v4567_v8 = vcombine.low %v313_v1, %v321_v2  ;;  %v299_v9 = vld [vmem:[#allocation2 + $0x390] sm:$0xff]  ;;  %v4507_v5 = vcombine.low %v251_v56, %v259_v57 }
  0x4b   :  { %1736 = vmatpush1.bf16.msra.mxu1 %v4439_v10  ;;  %v307_v10 = vld [vmem:[#allocation2 + $0x3d0] sm:$0xff] }
  0x4c   :  { %1737 = vmatprep.subr.bf16.mxu1 %v4680_v13  ;;  %v4556_v12 = vcombine.high %v299_v9, %v307_v10  ;;  %v308_v13 = vld [vmem:[#allocation2 + $0x3d8] sm:$0xff]  ;;  %v235_v1 = vld [vmem:[#allocation2 + $0x190] sm:$0xff] }
  0x4d   :  { %1779 = vmatpush1.bf16.msra.mxu0 %v4441_v14  ;;  %v4555_v14 = vcombine.low %v299_v9, %v307_v10  ;;  %v4557_v15 = vcombine.low %v300_v11, %v308_v13  ;;  %v4558_v16 = vcombine.high %v300_v11, %v308_v13  ;;  %v243_v2 = vld [vmem:[#allocation2 + $0x1d0] sm:$0xff]  ;;  %v220_v11 = vld [vmem:[#allocation2 + $0x118] sm:$0xff] }
  0x4e   :  { %1780 = vmatprep.subr.bf16.mxu0 %v4682_v17  ;;  %v5476_v17 = vmov 1966171168   ;;  %v219_v9 = vld [vmem:[#allocation2 + $0x110] sm:$0xff]  ;;  %v4491_v13 = vcombine.low %v235_v1, %v243_v2 }
  0x4f   :  { %1738 = vmatpush2.bf16.msra.mxu1 %v4679_v18  ;;  %v154_v18 = vunpack.c.l.s4 %v5476_v17  ;;  %v227_v10 = vld [vmem:[#allocation2 + $0x150] sm:$0xff] }
  0x50   :  { %1739 = vmatprep.subr.bf16.mxu1 %v4664_v21  ;;  %v157_v21 = vshrl.u32 %v156_v19, 7  ;;  %v203_v17 = vld [vmem:[#allocation2 + $0x90] sm:$0xff]  ;;  %v204_v19 = vld [vmem:[#allocation2 + $0x98] sm:$0xff] }
  0x51   :  { %1781 = vmatpush2.bf16.msra.mxu0 %v4681_v22  ;;  %v155_v20 = vunpack.c.0.s8 %v154_v18  ;;  %v4438_v22 = vld.sshfl [vmem:[%s5727_s2] sm:$0x11 pattern:$0x75316420]  ;;  %v211_v18 = vld [vmem:[#allocation2 + $0xd0] sm:$0xff] }
  0x52   :  { %1782 = vmatprep.subr.bf16.mxu0 %v4666_v25  ;;  %v152_v24 = vcombine.high %v4438_v22, %v4438_v22 }
  0x53   :  { %1740 = vmatpush2.bf16.msra.mxu1 %v4663_v26  ;;  %v5549_v23 = vsub.s32 %v155_v20, %v157_v21  ;;  %v212_v20 = vld [vmem:[#allocation2 + $0xd8] sm:$0xff] }
  0x54   :  { %1741 = vmatprep.subr.bf16.mxu1 %v4648_v29  ;;  %v5553_v29 = vsub.s32 0, %v157_v21  ;;  %v4475_v21 = vcombine.low %v219_v9, %v227_v10 }
  0x55   :  { %1783 = vmatpush2.bf16.msra.mxu0 %v4665_v30  ;;  %v159_v25 = vrot.slane %v4438_v22, %v5549_v23  ;;  %v166_v26 = vrot.slane %v152_v24, %v5549_v23  ;;  %v4460_v24 = vcombine.high %v203_v17, %v211_v18 }
  0x56   :  { %1784 = vmatprep.subr.bf16.mxu0 %v4650_v33 }
  0x57   :  { %1742 = vmatpush2.bf16.msra.mxu1 %v4647_v34  ;;  %v168_v28 = vpack.i.b16 %v159_v25, %v159_v25  ;;  %v175_v30 = vpack.i.b16 %v166_v26, %v166_v26  ;;  %v4462_v25 = vcombine.high %v204_v19, %v212_v20  ;;  %v187_v26 = vld [vmem:[#allocation2 + $0x10] sm:$0xff] }
  0x58   :  { %1743 = vmatprep.subr.bf16.mxu1 %v4632_v37 }
  0x59   :  { %1785 = vmatpush2.bf16.msra.mxu0 %v4649_v38  ;;  %v173_v33 = vrot.slane %v168_v28, %v5553_v29  ;;  %v180_v35 = vrot.slane %v175_v30, %v5553_v29  ;;  %v188_v28 = vld [vmem:[#allocation2 + $0x18] sm:$0xff] }
  0x5a   :  { %1786 = vmatprep.subr.bf16.mxu0 %v4634_v41  ;;  %v291_v41 = vld [vmem:[#allocation2 + $0x350] sm:$0xff]  ;;  %v196_v30 = vld [vmem:[#allocation2 + $0x58] sm:$0xff] }
  0x5b   :  { %1744 = vmatpush2.bf16.msra.mxu1 %v4631_v42  ;;  %v284_v42 = vld [vmem:[#allocation2 + $0x318] sm:$0xff]  ;;  %v4539_v52 = vcombine.low %v283_v40, %v291_v41 }
  0x5c   :  { %1745 = vmatprep.subr.bf16.mxu1 %v4616_v43  ;;  %v292_v43 = vld [vmem:[#allocation2 + $0x358] sm:$0xff] }
  0x5d   :  { %1787 = vmatpush2.bf16.msra.mxu0 %v4633_v44  ;;  %v4542_v48 = vcombine.high %v284_v42, %v292_v43 }
  0x5e   :  { %1788 = vmatprep.subr.bf16.mxu0 %v4618_v45 }
  0x5f   :  { %1746 = vmatpush2.bf16.msra.mxu1 %v4615_v46  ;;  %v267_v46 = vld [vmem:[#allocation2 + $0x290] sm:$0xff] }
  0x60   :  { %1747 = vmatprep.subr.bf16.mxu1 %v4600_v51  ;;  %v276_v51 = vld [vmem:[#allocation2 + $0x2d8] sm:$0xff]  ;;  %v4523_v60 = vcombine.low %v267_v46, %v275_v49 }
  0x61   :  { %1789 = vmatpush2.bf16.msra.mxu0 %v4617_v47  ;;  %v4540_v47 = vcombine.high %v283_v40, %v291_v41  ;;  %v4445_v40 = vcombine.low %v188_v28, %v196_v30 }
  0x62   :  { %1790 = vmatprep.subr.bf16.mxu0 %v4602_v54  ;;  %v4524_v54 = vcombine.high %v267_v46, %v275_v49  ;;  %v419_v46 = vld [vmem:[#allocation2 + $0x750] sm:$0xff] }
  0x63   :  { %1748 = vmatpush2.bf16.msra.mxu1 %v4599_v55  ;;  %v4526_v55 = vcombine.high %v268_v50, %v276_v51 }
  0x64   :  { %1749 = vmatprep.subr.bf16.mxu1 %v4584_v59  ;;  %v260_v59 = vld [vmem:[#allocation2 + $0x258] sm:$0xff] }
  0x65   :  { %1791 = vmatpush2.bf16.msra.mxu0 %v4601_v53  ;;  %v4541_v53 = vcombine.low %v284_v42, %v292_v43  ;;  %v411_v43 = vld [vmem:[#allocation2 + $0x710] sm:$0xff] }
  0x66   :  { %1792 = vmatprep.subr.bf16.mxu0 %v4586_v62  ;;  %v4508_v62 = vcombine.high %v251_v56, %v259_v57  ;;  %v404_v56 = vld [vmem:[#allocation2 + $0x6d8] sm:$0xff]  ;;  %v4667_v57 = vcombine.low %v411_v43, %v419_v46 }
  0x67   :  { %1750 = vmatpush2.bf16.msra.mxu1 %v4583_v63  ;;  %v4510_v63 = vcombine.high %v252_v58, %v260_v59 }
  0x68   :  { %1751 = vmatprep.subr.bf16.mxu1 %v4568_v4  ;;  %v244_v4 = vld [vmem:[#allocation2 + $0x1d8] sm:$0xff] }
  0x69   :  { %1793 = vmatpush2.bf16.msra.mxu0 %v4585_v61  ;;  %v4525_v61 = vcombine.low %v268_v50, %v276_v51  ;;  %v4668_v51 = vcombine.high %v411_v43, %v419_v46  ;;  %v310_v43 = vld [vmem:[#allocation2 + $0x3e8] sm:$0xff] }
  0x6a   :  { %1794 = vmatprep.subr.bf16.mxu0 %v4570_v7  ;;  %v4492_v7 = vcombine.high %v235_v1, %v243_v2  ;;  %v388_v1 = vld [vmem:[#allocation2 + $0x658] sm:$0xff] }
  0x6b   :  { %1752 = vmatpush2.bf16.msra.mxu1 %v4567_v8  ;;  %v4494_v8 = vcombine.high %v236_v3, %v244_v4 }
  0x6c   :  { %1807 = vmatprep.subr.bf16.mxu1 %v4556_v12  ;;  %v228_v12 = vld [vmem:[#allocation2 + $0x158] sm:$0xff] }
  0x6d   :  { %1795 = vmatpush2.bf16.msra.mxu0 %v4569_v6  ;;  %v4509_v6 = vcombine.low %v252_v58, %v260_v59  ;;  %v4477_v22 = vcombine.low %v220_v11, %v228_v12 }
  0x6e   :  { %1850 = vmatprep.subr.bf16.mxu0 %v4558_v16  ;;  %v4478_v16 = vcombine.high %v220_v11, %v228_v12 }
  0xf0   :  { %v132_v27 = vpop.f32.mrf.mxu0 }
  0xf2   :  { %v134_v31 = vpop.f32.mrf.mxu0 }
  0xf4   :  { %v136_v32 = vpop.f32.mrf.mxu0 }
  0xf5   :  { %v141_v34 = vpack.c.bf16 %v136_v32, %v132_v27  ;;  %v195_v27 = vld [vmem:[#allocation2 + $0x50] sm:$0xff]  ;;  %v4461_v32 = vcombine.low %v204_v19, %v212_v20 }
  0xf6   :  { %v138_v36 = vpop.f32.mrf.mxu0 }
  0xf7   :  { %v142_v37 = vpack.c.bf16 %v138_v36, %v134_v31  ;;  %v181_v38 = vadd.bf16 %v173_v33, %v141_v34  ;;  %v4459_v31 = vcombine.low %v203_v17, %v211_v18  ;;  %v4444_v33 = vcombine.high %v187_v26, %v195_v27  ;;  %v435_v36 = vld [vmem:[#allocation2 + $0x7d0] sm:$0xff]  ;;  %v356_v17 = vld [vmem:[#allocation2 + $0x558] sm:$0xff] }
  0xf8   :  { %v4446_v34 = vcombine.high %v188_v28, %v196_v30 }
  0xf9   :  { %v182_v39 = vadd.bf16 %v180_v35, %v142_v37  ;;  %v5561_v45 = vmax.bf16 %v5475_v0, %v181_v38  ;;  %v427_v35 = vld [vmem:[#allocation2 + $0x790] sm:$0xff]  ;;  %v428_v37 = vld [vmem:[#allocation2 + $0x798] sm:$0xff] }
  0xfa   :  { %v436_v38 = vld [vmem:[#allocation2 + $0x7d8] sm:$0xff]  ;;  %v4684_v41 = vcombine.high %v427_v35, %v435_v36  ;;  %v4683_v49 = vcombine.low %v427_v35, %v435_v36 }
  0xfb   :  { %v5558_v44 = vmax.bf16 %v5475_v0, %v182_v39  ;;  %v4443_v39 = vcombine.low %v187_v26, %v195_v27  ;;  %v4686_v42 = vcombine.high %v428_v37, %v436_v38  ;;  %v4685_v50 = vcombine.low %v428_v37, %v436_v38  ;;  %v340_v26 = vld [vmem:[#allocation2 + $0x4d8] sm:$0xff] }
  0xfc   :  { %v324_v35 = vld [vmem:[#allocation2 + $0x458] sm:$0xff] }
  0xfd   :  { %1753 = vmatprep.mubr.bf16.mxu1 %v5558_v44  ;;  %1796 = vmatprep.mubr.bf16.mxu0 %v5558_v44 }
  0xfe   :  { %1754 = vmatmul.mubr.bf16.vlgmr.msra.gmra.mxu1 %v5561_v45  ;;  %1797 = vmatmul.mubr.bf16.vlgmr.msra.gmra.mxu0 %v5561_v45 }
  0xff   :  { %1808 = vmatpush1.bf16.msra.mxu1 %v4555_v14  ;;  %1851 = vmatpush1.bf16.msra.mxu0 %v4557_v15  ;;  %v4493_v14 = vcombine.low %v236_v3, %v244_v4  ;;  %v4476_v15 = vcombine.high %v219_v9, %v227_v10  ;;  %v372_v9 = vld [vmem:[#allocation2 + $0x5d8] sm:$0xff] }
 0x100   :  { %1839 = vmatprep.mubr.bf16.mxu1 %v5558_v44  ;;  %1882 = vmatprep.mubr.bf16.mxu0 %v5558_v44 }
 0x101   :  { %1809 = vmatprep.subr.bf16.mxu1 %v4540_v47  ;;  %1852 = vmatprep.subr.bf16.mxu0 %v4542_v48  ;;  %v412_v47 = vld [vmem:[#allocation2 + $0x718] sm:$0xff] }
 0x102   :  { %v420_v48 = vld [vmem:[#allocation2 + $0x758] sm:$0xff] }
 0x103   :  { %1810 = vmatpush1.bf16.msra.mxu1 %v4539_v52  ;;  %1853 = vmatpush1.bf16.msra.mxu0 %v4541_v53  ;;  %v4670_v52 = vcombine.high %v412_v47, %v420_v48  ;;  %v395_v53 = vld [vmem:[#allocation2 + $0x690] sm:$0xff]  ;;  %v4669_v58 = vcombine.low %v412_v47, %v420_v48 }
 0x104   :  { %1811 = vmatprep.subr.bf16.mxu1 %v4524_v54  ;;  %1854 = vmatprep.subr.bf16.mxu0 %v4526_v55  ;;  %v403_v54 = vld [vmem:[#allocation2 + $0x6d0] sm:$0xff]  ;;  %v396_v55 = vld [vmem:[#allocation2 + $0x698] sm:$0xff] }
 0x105   :  { %v4652_v59 = vcombine.high %v395_v53, %v403_v54  ;;  %v4651_v2 = vcombine.low %v395_v53, %v403_v54  ;;  %v4653_v3 = vcombine.low %v396_v55, %v404_v56  ;;  %v294_v53 = vld [vmem:[#allocation2 + $0x368] sm:$0xff] }
 0x107   :  { %1812 = vmatpush1.bf16.msra.mxu1 %v4523_v60  ;;  %1855 = vmatpush1.bf16.msra.mxu0 %v4525_v61  ;;  %v4654_v60 = vcombine.high %v396_v55, %v404_v56  ;;  %v379_v61 = vld [vmem:[#allocation2 + $0x610] sm:$0xff] }
 0x108   :  { %1813 = vmatprep.subr.bf16.mxu1 %v4508_v62  ;;  %1856 = vmatprep.subr.bf16.mxu0 %v4510_v63  ;;  %v387_v62 = vld [vmem:[#allocation2 + $0x650] sm:$0xff]  ;;  %v380_v63 = vld [vmem:[#allocation2 + $0x618] sm:$0xff] }
 0x109   :  { %v4636_v4 = vcombine.high %v379_v61, %v387_v62  ;;  %v4635_v10 = vcombine.low %v379_v61, %v387_v62  ;;  %v4637_v11 = vcombine.low %v380_v63, %v388_v1  ;;  %v278_v61 = vld [vmem:[#allocation2 + $0x2e8] sm:$0xff] }
 0x10b   :  { %1814 = vmatpush1.bf16.msra.mxu1 %v4507_v5  ;;  %1857 = vmatpush1.bf16.msra.mxu0 %v4509_v6  ;;  %v4638_v5 = vcombine.high %v380_v63, %v388_v1  ;;  %v363_v6 = vld [vmem:[#allocation2 + $0x590] sm:$0xff] }
 0x10c   :  { %1815 = vmatprep.subr.bf16.mxu1 %v4492_v7  ;;  %1858 = vmatprep.subr.bf16.mxu0 %v4494_v8  ;;  %v371_v7 = vld [vmem:[#allocation2 + $0x5d0] sm:$0xff]  ;;  %v364_v8 = vld [vmem:[#allocation2 + $0x598] sm:$0xff] }
 0x10d   :  { %v4620_v12 = vcombine.high %v363_v6, %v371_v7  ;;  %v4619_v18 = vcombine.low %v363_v6, %v371_v7  ;;  %v4621_v19 = vcombine.low %v364_v8, %v372_v9  ;;  %v262_v6 = vld [vmem:[#allocation2 + $0x268] sm:$0xff] }
 0x10f   :  { %1816 = vmatpush1.bf16.msra.mxu1 %v4491_v13  ;;  %1859 = vmatpush1.bf16.msra.mxu0 %v4493_v14  ;;  %v4622_v13 = vcombine.high %v364_v8, %v372_v9  ;;  %v347_v14 = vld [vmem:[#allocation2 + $0x510] sm:$0xff] }
 0x110   :  { %1817 = vmatprep.subr.bf16.mxu1 %v4476_v15  ;;  %1860 = vmatprep.subr.bf16.mxu0 %v4478_v16  ;;  %v355_v15 = vld [vmem:[#allocation2 + $0x550] sm:$0xff]  ;;  %v348_v16 = vld [vmem:[#allocation2 + $0x518] sm:$0xff] }
 0x111   :  { %v4604_v20 = vcombine.high %v347_v14, %v355_v15  ;;  %v4603_v27 = vcombine.low %v347_v14, %v355_v15  ;;  %v4605_v28 = vcombine.low %v348_v16, %v356_v17  ;;  %v246_v14 = vld [vmem:[#allocation2 + $0x1e8] sm:$0xff] }
 0x113   :  { %1818 = vmatpush1.bf16.msra.mxu1 %v4475_v21  ;;  %1861 = vmatpush1.bf16.msra.mxu0 %v4477_v22  ;;  %v4606_v21 = vcombine.high %v348_v16, %v356_v17  ;;  %v331_v22 = vld [vmem:[#allocation2 + $0x490] sm:$0xff] }
 0x114   :  { %1819 = vmatprep.subr.bf16.mxu1 %v4460_v24  ;;  %1862 = vmatprep.subr.bf16.mxu0 %v4462_v25  ;;  %v339_v24 = vld [vmem:[#allocation2 + $0x4d0] sm:$0xff]  ;;  %v332_v25 = vld [vmem:[#allocation2 + $0x498] sm:$0xff] }
 0x115   :  { %v4588_v30 = vcombine.high %v331_v22, %v339_v24  ;;  %v4587_v36 = vcombine.low %v331_v22, %v339_v24  ;;  %v4589_v37 = vcombine.low %v332_v25, %v340_v26  ;;  %v230_v22 = vld [vmem:[#allocation2 + $0x168] sm:$0xff] }
 0x117   :  { %1820 = vmatpush1.bf16.msra.mxu1 %v4459_v31  ;;  %1863 = vmatpush1.bf16.msra.mxu0 %v4461_v32  ;;  %v4590_v31 = vcombine.high %v332_v25, %v340_v26  ;;  %v315_v32 = vld [vmem:[#allocation2 + $0x410] sm:$0xff] }
 0x118   :  { %1821 = vmatprep.subr.bf16.mxu1 %v4444_v33  ;;  %1864 = vmatprep.subr.bf16.mxu0 %v4446_v34  ;;  %v323_v33 = vld [vmem:[#allocation2 + $0x450] sm:$0xff]  ;;  %v316_v34 = vld [vmem:[#allocation2 + $0x418] sm:$0xff] }
 0x119   :  { %v4572_v38 = vcombine.high %v315_v32, %v323_v33  ;;  %v4571_v46 = vcombine.low %v315_v32, %v323_v33  ;;  %v4573_v47 = vcombine.low %v316_v34, %v324_v35  ;;  %v214_v32 = vld [vmem:[#allocation2 + $0xe8] sm:$0xff] }
 0x11b   :  { %1822 = vmatpush1.bf16.msra.mxu1 %v4443_v39  ;;  %1865 = vmatpush1.bf16.msra.mxu0 %v4445_v40  ;;  %v4574_v39 = vcombine.high %v316_v34, %v324_v35  ;;  %v301_v40 = vld [vmem:[#allocation2 + $0x3a0] sm:$0xff] }
 0x11c   :  { %1823 = vmatprep.subr.bf16.mxu1 %v4684_v41  ;;  %1866 = vmatprep.subr.bf16.mxu0 %v4686_v42  ;;  %v309_v41 = vld [vmem:[#allocation2 + $0x3e0] sm:$0xff]  ;;  %v302_v42 = vld [vmem:[#allocation2 + $0x3a8] sm:$0xff] }
 0x11d   :  { %v4560_v48 = vcombine.high %v301_v40, %v309_v41  ;;  %v4559_v54 = vcombine.low %v301_v40, %v309_v41  ;;  %v4561_v55 = vcombine.low %v302_v42, %v310_v43  ;;  %v198_v40 = vld [vmem:[#allocation2 + $0x68] sm:$0xff] }
 0x11f   :  { %1824 = vmatpush2.bf16.msra.mxu1 %v4683_v49  ;;  %1867 = vmatpush2.bf16.msra.mxu0 %v4685_v50  ;;  %v4562_v49 = vcombine.high %v302_v42, %v310_v43  ;;  %v285_v50 = vld [vmem:[#allocation2 + $0x320] sm:$0xff] }
 0x120   :  { %1825 = vmatprep.subr.bf16.mxu1 %v4668_v51  ;;  %1868 = vmatprep.subr.bf16.mxu0 %v4670_v52  ;;  %v293_v51 = vld [vmem:[#allocation2 + $0x360] sm:$0xff]  ;;  %v286_v52 = vld [vmem:[#allocation2 + $0x328] sm:$0xff] }
 0x121   :  { %v4544_v56 = vcombine.high %v285_v50, %v293_v51  ;;  %v4543_v62 = vcombine.low %v285_v50, %v293_v51  ;;  %v4545_v63 = vcombine.low %v286_v52, %v294_v53  ;;  %v438_v50 = vld [vmem:[#allocation2 + $0x7e8] sm:$0xff] }
 0x123   :  { %1826 = vmatpush2.bf16.msra.mxu1 %v4667_v57  ;;  %1869 = vmatpush2.bf16.msra.mxu0 %v4669_v58  ;;  %v4546_v57 = vcombine.high %v286_v52, %v294_v53  ;;  %v269_v58 = vld [vmem:[#allocation2 + $0x2a0] sm:$0xff] }
 0x124   :  { %1827 = vmatprep.subr.bf16.mxu1 %v4652_v59  ;;  %1870 = vmatprep.subr.bf16.mxu0 %v4654_v60  ;;  %v277_v59 = vld [vmem:[#allocation2 + $0x2e0] sm:$0xff]  ;;  %v270_v60 = vld [vmem:[#allocation2 + $0x2a8] sm:$0xff] }
 0x125   :  { %v4528_v1 = vcombine.high %v269_v58, %v277_v59  ;;  %v4527_v7 = vcombine.low %v269_v58, %v277_v59  ;;  %v4529_v8 = vcombine.low %v270_v60, %v278_v61  ;;  %v422_v58 = vld [vmem:[#allocation2 + $0x768] sm:$0xff] }
 0x127   :  { %1828 = vmatpush2.bf16.msra.mxu1 %v4651_v2  ;;  %1871 = vmatpush2.bf16.msra.mxu0 %v4653_v3  ;;  %v4530_v2 = vcombine.high %v270_v60, %v278_v61  ;;  %v253_v3 = vld [vmem:[#allocation2 + $0x220] sm:$0xff] }
 0x128   :  { %1829 = vmatprep.subr.bf16.mxu1 %v4636_v4  ;;  %1872 = vmatprep.subr.bf16.mxu0 %v4638_v5  ;;  %v261_v4 = vld [vmem:[#allocation2 + $0x260] sm:$0xff]  ;;  %v254_v5 = vld [vmem:[#allocation2 + $0x228] sm:$0xff] }
 0x129   :  { %v4512_v9 = vcombine.high %v253_v3, %v261_v4  ;;  %v4511_v15 = vcombine.low %v253_v3, %v261_v4  ;;  %v4513_v16 = vcombine.low %v254_v5, %v262_v6  ;;  %v406_v3 = vld [vmem:[#allocation2 + $0x6e8] sm:$0xff] }
 0x12b   :  { %1830 = vmatpush2.bf16.msra.mxu1 %v4635_v10  ;;  %1873 = vmatpush2.bf16.msra.mxu0 %v4637_v11  ;;  %v4514_v10 = vcombine.high %v254_v5, %v262_v6  ;;  %v237_v11 = vld [vmem:[#allocation2 + $0x1a0] sm:$0xff] }
 0x12c   :  { %1831 = vmatprep.subr.bf16.mxu1 %v4620_v12  ;;  %1874 = vmatprep.subr.bf16.mxu0 %v4622_v13  ;;  %v245_v12 = vld [vmem:[#allocation2 + $0x1e0] sm:$0xff]  ;;  %v238_v13 = vld [vmem:[#allocation2 + $0x1a8] sm:$0xff] }
 0x12d   :  { %v4496_v17 = vcombine.high %v237_v11, %v245_v12  ;;  %v4495_v24 = vcombine.low %v237_v11, %v245_v12  ;;  %v4497_v25 = vcombine.low %v238_v13, %v246_v14  ;;  %v390_v11 = vld [vmem:[#allocation2 + $0x668] sm:$0xff] }
 0x12f   :  { %1832 = vmatpush2.bf16.msra.mxu1 %v4619_v18  ;;  %1875 = vmatpush2.bf16.msra.mxu0 %v4621_v19  ;;  %v4498_v18 = vcombine.high %v238_v13, %v246_v14  ;;  %v221_v19 = vld [vmem:[#allocation2 + $0x120] sm:$0xff] }
 0x130   :  { %1833 = vmatprep.subr.bf16.mxu1 %v4604_v20  ;;  %1876 = vmatprep.subr.bf16.mxu0 %v4606_v21  ;;  %v229_v20 = vld [vmem:[#allocation2 + $0x160] sm:$0xff]  ;;  %v222_v21 = vld [vmem:[#allocation2 + $0x128] sm:$0xff] }
 0x131   :  { %v4480_v26 = vcombine.high %v221_v19, %v229_v20  ;;  %v4479_v33 = vcombine.low %v221_v19, %v229_v20  ;;  %v4481_v34 = vcombine.low %v222_v21, %v230_v22  ;;  %v374_v19 = vld [vmem:[#allocation2 + $0x5e8] sm:$0xff] }
 0x133   :  { %1834 = vmatpush2.bf16.msra.mxu1 %v4603_v27  ;;  %1877 = vmatpush2.bf16.msra.mxu0 %v4605_v28  ;;  %v4482_v27 = vcombine.high %v222_v21, %v230_v22  ;;  %v205_v28 = vld [vmem:[#allocation2 + $0xa0] sm:$0xff] }
 0x134   :  { %1835 = vmatprep.subr.bf16.mxu1 %v4588_v30  ;;  %1878 = vmatprep.subr.bf16.mxu0 %v4590_v31  ;;  %v213_v30 = vld [vmem:[#allocation2 + $0xe0] sm:$0xff]  ;;  %v206_v31 = vld [vmem:[#allocation2 + $0xa8] sm:$0xff] }
 0x135   :  { %v4464_v35 = vcombine.high %v205_v28, %v213_v30  ;;  %v4463_v41 = vcombine.low %v205_v28, %v213_v30  ;;  %v4465_v42 = vcombine.low %v206_v31, %v214_v32  ;;  %v358_v28 = vld [vmem:[#allocation2 + $0x568] sm:$0xff] }
 0x137   :  { %1836 = vmatpush2.bf16.msra.mxu1 %v4587_v36  ;;  %1879 = vmatpush2.bf16.msra.mxu0 %v4589_v37  ;;  %v4466_v36 = vcombine.high %v206_v31, %v214_v32  ;;  %v189_v37 = vld [vmem:[#allocation2 + $0x20] sm:$0xff] }
 0x138   :  { %1837 = vmatprep.subr.bf16.mxu1 %v4572_v38  ;;  %1880 = vmatprep.subr.bf16.mxu0 %v4574_v39  ;;  %v197_v38 = vld [vmem:[#allocation2 + $0x60] sm:$0xff]  ;;  %v190_v39 = vld [vmem:[#allocation2 + $0x28] sm:$0xff] }
 0x139   :  { %v4448_v43 = vcombine.high %v189_v37, %v197_v38  ;;  %v4447_v51 = vcombine.low %v189_v37, %v197_v38  ;;  %v4449_v52 = vcombine.low %v190_v39, %v198_v40  ;;  %v342_v37 = vld [vmem:[#allocation2 + $0x4e8] sm:$0xff] }
 0x13b   :  { %1838 = vmatpush2.bf16.msra.mxu1 %v4571_v46  ;;  %1881 = vmatpush2.bf16.msra.mxu0 %v4573_v47  ;;  %v4450_v46 = vcombine.high %v190_v39, %v198_v40  ;;  %v429_v47 = vld [vmem:[#allocation2 + $0x7a0] sm:$0xff] }
 0x13c   :  { %1893 = vmatprep.subr.bf16.mxu1 %v4560_v48  ;;  %1936 = vmatprep.subr.bf16.mxu0 %v4562_v49  ;;  %v437_v48 = vld [vmem:[#allocation2 + $0x7e0] sm:$0xff]  ;;  %v430_v49 = vld [vmem:[#allocation2 + $0x7a8] sm:$0xff] }
 0x13d   :  { %v4688_v53 = vcombine.high %v429_v47, %v437_v48  ;;  %v4687_v59 = vcombine.low %v429_v47, %v437_v48  ;;  %v4689_v60 = vcombine.low %v430_v49, %v438_v50  ;;  %v326_v47 = vld [vmem:[#allocation2 + $0x468] sm:$0xff] }
 0x13e   :  { %1840 = vmatmul.mubr.bf16.vlgmr.msra.gmra.mxu1 %v5561_v45  ;;  %1883 = vmatmul.mubr.bf16.vlgmr.msra.gmra.mxu0 %v5561_v45 }
 0x13f   :  { %1894 = vmatpush1.bf16.msra.mxu1 %v4559_v54  ;;  %1925 = vmatprep.mubr.bf16.mxu1 %v5558_v44  ;;  %v4690_v54 = vcombine.high %v430_v49, %v438_v50 }
 0x140   :  { %1937 = vmatpush1.bf16.msra.mxu0 %v4561_v55  ;;  %1968 = vmatprep.mubr.bf16.mxu0 %v5558_v44  ;;  %v413_v55 = vld [vmem:[#allocation2 + $0x720] sm:$0xff] }
 0x141   :  { %1895 = vmatprep.subr.bf16.mxu1 %v4544_v56  ;;  %1938 = vmatprep.subr.bf16.mxu0 %v4546_v57  ;;  %v421_v56 = vld [vmem:[#allocation2 + $0x760] sm:$0xff]  ;;  %v414_v57 = vld [vmem:[#allocation2 + $0x728] sm:$0xff] }
 0x142   :  { %v4672_v61 = vcombine.high %v413_v55, %v421_v56  ;;  %v4671_v4 = vcombine.low %v413_v55, %v421_v56  ;;  %v4673_v5 = vcombine.low %v414_v57, %v422_v58  ;;  %v312_v55 = vld [vmem:[#allocation2 + $0x3f8] sm:$0xff] }
 0x143   :  { %1896 = vmatpush1.bf16.msra.mxu1 %v4543_v62  ;;  %v4674_v62 = vcombine.high %v414_v57, %v422_v58 }
 0x144   :  { %1939 = vmatpush1.bf16.msra.mxu0 %v4545_v63  ;;  %1897 = vmatprep.subr.bf16.mxu1 %v4528_v1  ;;  %v397_v63 = vld [vmem:[#allocation2 + $0x6a0] sm:$0xff] }
 0x145   :  { %1940 = vmatprep.subr.bf16.mxu0 %v4530_v2  ;;  %v405_v1 = vld [vmem:[#allocation2 + $0x6e0] sm:$0xff]  ;;  %v398_v2 = vld [vmem:[#allocation2 + $0x6a8] sm:$0xff] }
 0x146   :  { %v4656_v6 = vcombine.high %v397_v63, %v405_v1  ;;  %v4655_v12 = vcombine.low %v397_v63, %v405_v1  ;;  %v4657_v13 = vcombine.low %v398_v2, %v406_v3  ;;  %v288_v63 = vld [vmem:[#allocation2 + $0x338] sm:$0xff] }
 0x147   :  { %1898 = vmatpush1.bf16.msra.mxu1 %v4527_v7  ;;  %v4658_v7 = vcombine.high %v398_v2, %v406_v3  ;;  %v296_v1 = vld [vmem:[#allocation2 + $0x378] sm:$0xff] }
 0x148   :  { %1941 = vmatpush1.bf16.msra.mxu0 %v4529_v8  ;;  %1899 = vmatprep.subr.bf16.mxu1 %v4512_v9  ;;  %v381_v8 = vld [vmem:[#allocation2 + $0x620] sm:$0xff] }
 0x149   :  { %1942 = vmatprep.subr.bf16.mxu0 %v4514_v10  ;;  %v389_v9 = vld [vmem:[#allocation2 + $0x660] sm:$0xff]  ;;  %v382_v10 = vld [vmem:[#allocation2 + $0x628] sm:$0xff] }
 0x14a   :  { %v4640_v14 = vcombine.high %v381_v8, %v389_v9  ;;  %v4639_v20 = vcombine.low %v381_v8, %v389_v9  ;;  %v4641_v21 = vcombine.low %v382_v10, %v390_v11  ;;  %v280_v8 = vld [vmem:[#allocation2 + $0x2f8] sm:$0xff] }
 0x14b   :  { %1900 = vmatpush1.bf16.msra.mxu1 %v4511_v15  ;;  %v4642_v15 = vcombine.high %v382_v10, %v390_v11  ;;  %v4549_v10 = vcombine.low %v288_v63, %v296_v1 }
 0x14c   :  { %1943 = vmatpush1.bf16.msra.mxu0 %v4513_v16  ;;  %1901 = vmatprep.subr.bf16.mxu1 %v4496_v17  ;;  %v365_v16 = vld [vmem:[#allocation2 + $0x5a0] sm:$0xff] }
 0x14d   :  { %1944 = vmatprep.subr.bf16.mxu0 %v4498_v18  ;;  %v373_v17 = vld [vmem:[#allocation2 + $0x5e0] sm:$0xff]  ;;  %v366_v18 = vld [vmem:[#allocation2 + $0x5a8] sm:$0xff] }
 0x14e   :  { %v4624_v22 = vcombine.high %v365_v16, %v373_v17  ;;  %v4623_v30 = vcombine.low %v365_v16, %v373_v17  ;;  %v4625_v31 = vcombine.low %v366_v18, %v374_v19  ;;  %v264_v16 = vld [vmem:[#allocation2 + $0x278] sm:$0xff] }
 0x14f   :  { %1902 = vmatpush1.bf16.msra.mxu1 %v4495_v24  ;;  %v4626_v24 = vcombine.high %v366_v18, %v374_v19 }
 0x150   :  { %1945 = vmatpush1.bf16.msra.mxu0 %v4497_v25  ;;  %1903 = vmatprep.subr.bf16.mxu1 %v4480_v26  ;;  %v349_v25 = vld [vmem:[#allocation2 + $0x520] sm:$0xff] }
 0x151   :  { %1946 = vmatprep.subr.bf16.mxu0 %v4482_v27  ;;  %v357_v26 = vld [vmem:[#allocation2 + $0x560] sm:$0xff]  ;;  %v350_v27 = vld [vmem:[#allocation2 + $0x528] sm:$0xff] }
 0x152   :  { %v4608_v32 = vcombine.high %v349_v25, %v357_v26  ;;  %v4607_v38 = vcombine.low %v349_v25, %v357_v26  ;;  %v4609_v39 = vcombine.low %v350_v27, %v358_v28  ;;  %v248_v25 = vld [vmem:[#allocation2 + $0x1f8] sm:$0xff] }
 0x153   :  { %1904 = vmatpush1.bf16.msra.mxu1 %v4479_v33  ;;  %v4610_v33 = vcombine.high %v350_v27, %v358_v28 }
 0x154   :  { %1947 = vmatpush1.bf16.msra.mxu0 %v4481_v34  ;;  %1905 = vmatprep.subr.bf16.mxu1 %v4464_v35  ;;  %v333_v34 = vld [vmem:[#allocation2 + $0x4a0] sm:$0xff] }
 0x155   :  { %1948 = vmatprep.subr.bf16.mxu0 %v4466_v36  ;;  %v341_v35 = vld [vmem:[#allocation2 + $0x4e0] sm:$0xff]  ;;  %v334_v36 = vld [vmem:[#allocation2 + $0x4a8] sm:$0xff] }
 0x156   :  { %v4592_v40 = vcombine.high %v333_v34, %v341_v35  ;;  %v4591_v48 = vcombine.low %v333_v34, %v341_v35  ;;  %v4593_v49 = vcombine.low %v334_v36, %v342_v37 }
 0x157   :  { %1906 = vmatpush1.bf16.msra.mxu1 %v4463_v41  ;;  %v4594_v41 = vcombine.high %v334_v36, %v342_v37 }
 0x158   :  { %1949 = vmatpush1.bf16.msra.mxu0 %v4465_v42  ;;  %1907 = vmatprep.subr.bf16.mxu1 %v4448_v43  ;;  %v317_v42 = vld [vmem:[#allocation2 + $0x420] sm:$0xff] }
 0x159   :  { %1950 = vmatprep.subr.bf16.mxu0 %v4450_v46  ;;  %v325_v43 = vld [vmem:[#allocation2 + $0x460] sm:$0xff]  ;;  %v318_v46 = vld [vmem:[#allocation2 + $0x428] sm:$0xff] }
 0x15a   :  { %v4576_v50 = vcombine.high %v317_v42, %v325_v43  ;;  %v4575_v56 = vcombine.low %v317_v42, %v325_v43  ;;  %v4577_v57 = vcombine.low %v318_v46, %v326_v47 }
 0x15b   :  { %1908 = vmatpush1.bf16.msra.mxu1 %v4447_v51  ;;  %v4578_v51 = vcombine.high %v318_v46, %v326_v47 }
 0x15c   :  { %1951 = vmatpush1.bf16.msra.mxu0 %v4449_v52  ;;  %1909 = vmatprep.subr.bf16.mxu1 %v4688_v53  ;;  %v303_v52 = vld [vmem:[#allocation2 + $0x3b0] sm:$0xff] }
 0x15d   :  { %1952 = vmatprep.subr.bf16.mxu0 %v4690_v54  ;;  %v311_v53 = vld [vmem:[#allocation2 + $0x3f0] sm:$0xff]  ;;  %v304_v54 = vld [vmem:[#allocation2 + $0x3b8] sm:$0xff] }
 0x15e   :  { %v4564_v58 = vcombine.high %v303_v52, %v311_v53  ;;  %v4565_v2 = vcombine.low %v304_v54, %v312_v55 }
 0x15f   :  { %1910 = vmatpush2.bf16.msra.mxu1 %v4687_v59  ;;  %v4566_v59 = vcombine.high %v304_v54, %v312_v55 }
 0x160   :  { %1953 = vmatpush2.bf16.msra.mxu0 %v4689_v60  ;;  %1911 = vmatprep.subr.bf16.mxu1 %v4672_v61  ;;  %v287_v60 = vld [vmem:[#allocation2 + $0x330] sm:$0xff] }
 0x161   :  { %1954 = vmatprep.subr.bf16.mxu0 %v4674_v62  ;;  %v295_v61 = vld [vmem:[#allocation2 + $0x370] sm:$0xff]  ;;  %v4563_v62 = vcombine.low %v303_v52, %v311_v53 }
 0x162   :  { %v4548_v3 = vcombine.high %v287_v60, %v295_v61  ;;  %v4547_v9 = vcombine.low %v287_v60, %v295_v61 }
 0x163   :  { %1912 = vmatpush2.bf16.msra.mxu1 %v4671_v4  ;;  %v271_v4 = vld [vmem:[#allocation2 + $0x2b0] sm:$0xff] }
 0x164   :  { %1955 = vmatpush2.bf16.msra.mxu0 %v4673_v5  ;;  %1913 = vmatprep.subr.bf16.mxu1 %v4656_v6  ;;  %v279_v5 = vld [vmem:[#allocation2 + $0x2f0] sm:$0xff]  ;;  %v4550_v6 = vcombine.high %v288_v63, %v296_v1 }
 0x165   :  { %1956 = vmatprep.subr.bf16.mxu0 %v4658_v7  ;;  %v272_v7 = vld [vmem:[#allocation2 + $0x2b8] sm:$0xff]  ;;  %v4532_v11 = vcombine.high %v271_v4, %v279_v5  ;;  %v4531_v17 = vcombine.low %v271_v4, %v279_v5  ;;  %v415_v1 = vld [vmem:[#allocation2 + $0x730] sm:$0xff] }
 0x166   :  { %v4533_v18 = vcombine.low %v272_v7, %v280_v8  ;;  %v424_v4 = vld [vmem:[#allocation2 + $0x778] sm:$0xff] }
 0x167   :  { %1914 = vmatpush2.bf16.msra.mxu1 %v4655_v12  ;;  %v4534_v12 = vcombine.high %v272_v7, %v280_v8 }
 0x168   :  { %1957 = vmatpush2.bf16.msra.mxu0 %v4657_v13  ;;  %1915 = vmatprep.subr.bf16.mxu1 %v4640_v14  ;;  %v255_v13 = vld [vmem:[#allocation2 + $0x230] sm:$0xff] }
 0x169   :  { %1958 = vmatprep.subr.bf16.mxu0 %v4642_v15  ;;  %v263_v14 = vld [vmem:[#allocation2 + $0x270] sm:$0xff]  ;;  %v256_v15 = vld [vmem:[#allocation2 + $0x238] sm:$0xff] }
 0x16a   :  { %v4516_v19 = vcombine.high %v255_v13, %v263_v14  ;;  %v4517_v26 = vcombine.low %v256_v15, %v264_v16 }
 0x16b   :  { %1916 = vmatpush2.bf16.msra.mxu1 %v4639_v20  ;;  %v4518_v20 = vcombine.high %v256_v15, %v264_v16 }
 0x16c   :  { %1959 = vmatpush2.bf16.msra.mxu0 %v4641_v21  ;;  %1917 = vmatprep.subr.bf16.mxu1 %v4624_v22  ;;  %v239_v21 = vld [vmem:[#allocation2 + $0x1b0] sm:$0xff] }
 0x16d   :  { %1960 = vmatprep.subr.bf16.mxu0 %v4626_v24  ;;  %v247_v22 = vld [vmem:[#allocation2 + $0x1f0] sm:$0xff]  ;;  %v240_v24 = vld [vmem:[#allocation2 + $0x1b8] sm:$0xff] }
 0x16e   :  { %v4500_v27 = vcombine.high %v239_v21, %v247_v22  ;;  %v4502_v28 = vcombine.high %v240_v24, %v248_v25  ;;  %v4499_v34 = vcombine.low %v239_v21, %v247_v22  ;;  %v4501_v35 = vcombine.low %v240_v24, %v248_v25 }
 0x16f   :  { %1918 = vmatpush2.bf16.msra.mxu1 %v4623_v30  ;;  %v223_v30 = vld [vmem:[#allocation2 + $0x130] sm:$0xff] }
 0x170   :  { %1961 = vmatpush2.bf16.msra.mxu0 %v4625_v31  ;;  %1919 = vmatprep.subr.bf16.mxu1 %v4608_v32  ;;  %v231_v31 = vld [vmem:[#allocation2 + $0x170] sm:$0xff]  ;;  %v224_v32 = vld [vmem:[#allocation2 + $0x138] sm:$0xff] }
 0x171   :  { %1962 = vmatprep.subr.bf16.mxu0 %v4610_v33  ;;  %v232_v33 = vld [vmem:[#allocation2 + $0x178] sm:$0xff]  ;;  %v4484_v36 = vcombine.high %v223_v30, %v231_v31  ;;  %v4483_v42 = vcombine.low %v223_v30, %v231_v31 }
 0x172   :  { %v4486_v37 = vcombine.high %v224_v32, %v232_v33  ;;  %v4485_v43 = vcombine.low %v224_v32, %v232_v33 }
 0x173   :  { %1920 = vmatpush2.bf16.msra.mxu1 %v4607_v38  ;;  %v207_v38 = vld [vmem:[#allocation2 + $0xb0] sm:$0xff] }
 0x174   :  { %1963 = vmatpush2.bf16.msra.mxu0 %v4609_v39  ;;  %1921 = vmatprep.subr.bf16.mxu1 %v4592_v40  ;;  %v215_v39 = vld [vmem:[#allocation2 + $0xf0] sm:$0xff]  ;;  %v208_v40 = vld [vmem:[#allocation2 + $0xb8] sm:$0xff] }
 0x175   :  { %1964 = vmatprep.subr.bf16.mxu0 %v4594_v41  ;;  %v216_v41 = vld [vmem:[#allocation2 + $0xf8] sm:$0xff]  ;;  %v4468_v46 = vcombine.high %v207_v38, %v215_v39  ;;  %v4467_v52 = vcombine.low %v207_v38, %v215_v39 }
 0x176   :  { %v4470_v47 = vcombine.high %v208_v40, %v216_v41  ;;  %v4469_v53 = vcombine.low %v208_v40, %v216_v41  ;;  %v5580_v41 = vld [vmem:[%s5729_s4] sm:$0xff] }
 0x177   :  { %1922 = vmatpush2.bf16.msra.mxu1 %v4591_v48  ;;  %v191_v48 = vld [vmem:[#allocation2 + $0x30] sm:$0xff] }
 0x178   :  { %1965 = vmatpush2.bf16.msra.mxu0 %v4593_v49  ;;  %1923 = vmatprep.subr.bf16.mxu1 %v4576_v50  ;;  %v199_v49 = vld [vmem:[#allocation2 + $0x70] sm:$0xff]  ;;  %v192_v50 = vld [vmem:[#allocation2 + $0x38] sm:$0xff] }
 0x179   :  { %1966 = vmatprep.subr.bf16.mxu0 %v4578_v51  ;;  %v200_v51 = vld [vmem:[#allocation2 + $0x78] sm:$0xff]  ;;  %v4452_v54 = vcombine.high %v191_v48, %v199_v49  ;;  %v4451_v60 = vcombine.low %v191_v48, %v199_v49 }
 0x17a   :  { %v4454_v55 = vcombine.high %v192_v50, %v200_v51  ;;  %v4453_v61 = vcombine.low %v192_v50, %v200_v51  ;;  %v344_v48 = vld [vmem:[#allocation2 + $0x4f8] sm:$0xff]  ;;  %v5584_v50 = vrot.slane %v5580_v41, %v5549_v23 }
 0x17b   :  { %1924 = vmatpush2.bf16.msra.mxu1 %v4575_v56  ;;  %v431_v56 = vld [vmem:[#allocation2 + $0x7b0] sm:$0xff] }
 0x17c   :  { %1967 = vmatpush2.bf16.msra.mxu0 %v4577_v57  ;;  %1979 = vmatprep.subr.bf16.mxu1 %v4564_v58  ;;  %v439_v57 = vld [vmem:[#allocation2 + $0x7f0] sm:$0xff]  ;;  %v432_v58 = vld [vmem:[#allocation2 + $0x7b8] sm:$0xff] }
 0x17d   :  { %2022 = vmatprep.subr.bf16.mxu0 %v4566_v59  ;;  %v440_v59 = vld [vmem:[#allocation2 + $0x7f8] sm:$0xff]  ;;  %v4691_v5 = vcombine.low %v431_v56, %v439_v57 }
 0x17e   :  { %1926 = vmatmul.mubr.bf16.vlgmr.msra.gmra.mxu1 %v5561_v45  ;;  %v4694_v63 = vcombine.high %v432_v58, %v440_v59 }
 0x17f   :  { %1969 = vmatmul.mubr.bf16.vlgmr.msra.gmra.mxu0 %v5561_v45  ;;  %1980 = vmatpush1.bf16.msra.mxu1 %v4563_v62  ;;  %v4692_v62 = vcombine.high %v431_v56, %v439_v57  ;;  %v320_v56 = vld [vmem:[#allocation2 + $0x438] sm:$0xff] }
 0x180   :  { %2011 = vmatprep.mubr.bf16.mxu1 %v5558_v44  ;;  %2023 = vmatpush1.bf16.msra.mxu0 %v4565_v2  ;;  %v423_v2 = vld [vmem:[#allocation2 + $0x770] sm:$0xff]  ;;  %v328_v57 = vld [vmem:[#allocation2 + $0x478] sm:$0xff] }
 0x181   :  { %2054 = vmatprep.mubr.bf16.mxu0 %v5558_v44  ;;  %1981 = vmatprep.subr.bf16.mxu1 %v4548_v3  ;;  %v4515_v44 = vcombine.low %v255_v13, %v263_v14  ;;  %v416_v3 = vld [vmem:[#allocation2 + $0x738] sm:$0xff]  ;;  %v4676_v7 = vcombine.high %v415_v1, %v423_v2  ;;  %v4675_v13 = vcombine.low %v415_v1, %v423_v2 }
 0x182   :  { %2024 = vmatprep.subr.bf16.mxu0 %v4550_v6  ;;  %v4693_v6 = vcombine.low %v432_v58, %v440_v59  ;;  %v4678_v8 = vcombine.high %v416_v3, %v424_v4  ;;  %v4677_v14 = vcombine.low %v416_v3, %v424_v4  ;;  %v2100_v59 = vcombine.high %v5584_v50, %v5584_v50  ;;  %v5003_v3 = vld [vmem:[#allocation4 + $0x74] ss:$8 sps:$4 sm:$0xff]  }
 0x183   :  { %1982 = vmatpush1.bf16.msra.mxu1 %v4547_v9  ;;  %v399_v9 = vld [vmem:[#allocation2 + $0x6b0] sm:$0xff]  ;;  %v4581_v2 = vcombine.low %v320_v56, %v328_v57 }
 0x184   :  { %2025 = vmatpush1.bf16.msra.mxu0 %v4549_v10  ;;  %1983 = vmatprep.subr.bf16.mxu1 %v4532_v11  ;;  %v407_v10 = vld [vmem:[#allocation2 + $0x6f0] sm:$0xff]  ;;  %v400_v11 = vld [vmem:[#allocation2 + $0x6b8] sm:$0xff]  ;;  %v2122_v1 = vrot.slane %v2100_v59, %v5549_v23 }
 0x185   :  { %2026 = vmatprep.subr.bf16.mxu0 %v4534_v12  ;;  %v408_v12 = vld [vmem:[#allocation2 + $0x6f8] sm:$0xff]  ;;  %v4660_v15 = vcombine.high %v399_v9, %v407_v10  ;;  %v4659_v21 = vcombine.low %v399_v9, %v407_v10  ;;  %v5012_v9 = vld [vmem:[#allocation4 + $0x164] ss:$8 sps:$4 sm:$0xff]  }
 0x186   :  { %v4662_v16 = vcombine.high %v400_v11, %v408_v12  ;;  %v4661_v22 = vcombine.low %v400_v11, %v408_v12  ;;  %v5006_v4 = vld [vmem:[#allocation4 + $0x174] ss:$8 sps:$4 sm:$0xff]   ;;  %v5007_v12 = vld [vmem:[#allocation4 + $0x60] ss:$8 sps:$4 sm:$0xff]  }
 0x187   :  { %1984 = vmatpush1.bf16.msra.mxu1 %v4531_v17  ;;  %v383_v17 = vld [vmem:[#allocation2 + $0x630] sm:$0xff] }
 0x188   :  { %2027 = vmatpush1.bf16.msra.mxu0 %v4533_v18  ;;  %1985 = vmatprep.subr.bf16.mxu1 %v4516_v19  ;;  %v391_v18 = vld [vmem:[#allocation2 + $0x670] sm:$0xff]  ;;  %v384_v19 = vld [vmem:[#allocation2 + $0x638] sm:$0xff] }
 0x189   :  { %2028 = vmatprep.subr.bf16.mxu0 %v4518_v20  ;;  %v392_v20 = vld [vmem:[#allocation2 + $0x678] sm:$0xff]  ;;  %v4644_v24 = vcombine.high %v383_v17, %v391_v18  ;;  %v4643_v30 = vcombine.low %v383_v17, %v391_v18  ;;  %v5010_v17 = vld [vmem:[#allocation4 + $0x160] ss:$8 sps:$4 sm:$0xff]  }
 0x18a   :  { %v4646_v25 = vcombine.high %v384_v19, %v392_v20  ;;  %v4645_v31 = vcombine.low %v384_v19, %v392_v20  ;;  %v5015_v18 = vld [vmem:[#allocation4 + $0x54] ss:$8 sps:$4 sm:$0xff]  }
 0x18b   :  { %1986 = vmatpush1.bf16.msra.mxu1 %v4515_v44  ;;  %v367_v44 = vld [vmem:[#allocation2 + $0x5b0] sm:$0xff] }
 0x18c   :  { %2029 = vmatpush1.bf16.msra.mxu0 %v4517_v26  ;;  %1987 = vmatprep.subr.bf16.mxu1 %v4500_v27  ;;  %v375_v26 = vld [vmem:[#allocation2 + $0x5f0] sm:$0xff]  ;;  %v368_v27 = vld [vmem:[#allocation2 + $0x5b8] sm:$0xff] }
 0x18d   :  { %2030 = vmatprep.subr.bf16.mxu0 %v4502_v28  ;;  %v376_v28 = vld [vmem:[#allocation2 + $0x5f8] sm:$0xff]  ;;  %v4628_v32 = vcombine.high %v367_v44, %v375_v26  ;;  %v4627_v38 = vcombine.low %v367_v44, %v375_v26 }
 0x18e   :  { %v4630_v33 = vcombine.high %v368_v27, %v376_v28  ;;  %v4629_v39 = vcombine.low %v368_v27, %v376_v28  ;;  %v5018_v19 = vld [vmem:[#allocation4 + $0x154] ss:$8 sps:$4 sm:$0xff]   ;;  %v5016_v26 = vld [vmem:[#allocation4 + $0x150] ss:$8 sps:$4 sm:$0xff]   ;;  %v5021_v27 = vld [vmem:[#allocation4 + $0x44] ss:$8 sps:$4 sm:$0xff]  }
 0x18f   :  { %1988 = vmatpush1.bf16.msra.mxu1 %v4499_v34  ;;  %v351_v34 = vld [vmem:[#allocation2 + $0x530] sm:$0xff] }
 0x190   :  { %2031 = vmatpush1.bf16.msra.mxu0 %v4501_v35  ;;  %1989 = vmatprep.subr.bf16.mxu1 %v4484_v36  ;;  %v359_v35 = vld [vmem:[#allocation2 + $0x570] sm:$0xff]  ;;  %v352_v36 = vld [vmem:[#allocation2 + $0x538] sm:$0xff] }
 0x191   :  { %2032 = vmatprep.subr.bf16.mxu0 %v4486_v37  ;;  %v360_v37 = vld [vmem:[#allocation2 + $0x578] sm:$0xff]  ;;  %v4612_v40 = vcombine.high %v351_v34, %v359_v35  ;;  %v4611_v49 = vcombine.low %v351_v34, %v359_v35  ;;  %v5019_v34 = vld [vmem:[#allocation4 + $0x40] ss:$8 sps:$4 sm:$0xff]  }
 0x192   :  { %v4613_v51 = vcombine.low %v352_v36, %v360_v37  ;;  %v5022_v35 = vld [vmem:[#allocation4 + $0x140] ss:$8 sps:$4 sm:$0xff]   ;;  %v5054_v59 = vld [vmem:[#allocation4 + $0x1f4] ss:$8 sps:$4 sm:$0xff]  }
 0x193   :  { %1990 = vmatpush1.bf16.msra.mxu1 %v4483_v42  ;;  %v4614_v42 = vcombine.high %v352_v36, %v360_v37 }
 0x194   :  { %2033 = vmatpush1.bf16.msra.mxu0 %v4485_v43  ;;  %1991 = vmatprep.subr.bf16.mxu1 %v4468_v46  ;;  %v335_v43 = vld [vmem:[#allocation2 + $0x4b0] sm:$0xff] }
 0x195   :  { %2034 = vmatprep.subr.bf16.mxu0 %v4470_v47  ;;  %v343_v46 = vld [vmem:[#allocation2 + $0x4f0] sm:$0xff]  ;;  %v336_v47 = vld [vmem:[#allocation2 + $0x4b8] sm:$0xff] }
 0x196   :  { %v4595_v58 = vcombine.low %v335_v43, %v343_v46 }
 0x197   :  { %1992 = vmatpush1.bf16.msra.mxu1 %v4467_v52  ;;  %v4596_v52 = vcombine.high %v335_v43, %v343_v46  ;;  %v5033_v43 = vld [vmem:[#allocation4 + $0x24] ss:$8 sps:$4 sm:$0xff]  }
 0x198   :  { %2035 = vmatpush1.bf16.msra.mxu0 %v4469_v53  ;;  %1993 = vmatprep.subr.bf16.mxu1 %v4452_v54  ;;  %v4598_v53 = vcombine.high %v336_v47, %v344_v48  ;;  %v319_v54 = vld [vmem:[#allocation2 + $0x430] sm:$0xff]  ;;  %v5036_v46 = vld [vmem:[#allocation4 + $0x124] ss:$8 sps:$4 sm:$0xff]  }
 0x199   :  { %2036 = vmatprep.subr.bf16.mxu0 %v4454_v55  ;;  %v327_v55 = vld [vmem:[#allocation2 + $0x470] sm:$0xff] }
 0x19b   :  { %1994 = vmatpush1.bf16.msra.mxu1 %v4451_v60  ;;  %v4597_v60 = vcombine.low %v336_v47, %v344_v48  ;;  %v5031_v47 = vld [vmem:[#allocation4 + $0x20] ss:$8 sps:$4 sm:$0xff]  }
 0x19c   :  { %2037 = vmatpush1.bf16.msra.mxu0 %v4453_v61  ;;  %1995 = vmatprep.subr.bf16.mxu1 %v4692_v62  ;;  %v4580_v61 = vcombine.high %v319_v54, %v327_v55  ;;  %v4582_v62 = vcombine.high %v320_v56, %v328_v57  ;;  %v5034_v48 = vld [vmem:[#allocation4 + $0x120] ss:$8 sps:$4 sm:$0xff]  }
 0x19d   :  { %2038 = vmatprep.subr.bf16.mxu0 %v4694_v63  ;;  %v4579_v63 = vcombine.low %v319_v54, %v327_v55  ;;  %v5045_v54 = vld [vmem:[#allocation4 + $0x4] ss:$8 sps:$4 sm:$0xff]   ;;  %v5043_v56 = vld [vmem:[#allocation4] ss:$8 sps:$4 sm:$0xff]  }
 0x19e   :  { %v5048_v55 = vld [vmem:[#allocation4 + $0x104] ss:$8 sps:$4 sm:$0xff]   ;;  %v5046_v57 = vld [vmem:[#allocation4 + $0x100] ss:$8 sps:$4 sm:$0xff]  }
 0x19f   :  { %1996 = vmatpush2.bf16.msra.mxu1 %v4691_v5  ;;  %v5001_v5 = vld [vmem:[#allocation4 + $0x70] ss:$8 sps:$4 sm:$0xff]  }
 0x1a0   :  { %2039 = vmatpush2.bf16.msra.mxu0 %v4693_v6  ;;  %1997 = vmatprep.subr.bf16.mxu1 %v4676_v7  ;;  %v2132_v6 = vcombine.high %v2122_v1, %v2122_v1  ;;  %v5004_v7 = vld [vmem:[#allocation4 + $0x170] ss:$8 sps:$4 sm:$0xff]  }
 0x1a1   :  { %2040 = vmatprep.subr.bf16.mxu0 %v4678_v8  ;;  %v5009_v8 = vld [vmem:[#allocation4 + $0x64] ss:$8 sps:$4 sm:$0xff]  }
 0x1a3   :  { %1998 = vmatpush2.bf16.msra.mxu1 %v4675_v13  ;;  %v2191_v13 = vpack.i.b16 %v2122_v1, %v2122_v1  ;;  %v5055_v1 = vld [vmem:[#allocation4 + $0xe0] ss:$8 sps:$4 sm:$0xff]  }
 0x1a4   :  { %2041 = vmatpush2.bf16.msra.mxu0 %v4677_v14  ;;  %1999 = vmatprep.subr.bf16.mxu1 %v4660_v15  ;;  %v2205_v14 = vpack.i.b16 %v2132_v6, %v2132_v6  ;;  %v5064_v6 = vld [vmem:[#allocation4 + $0x1d0] ss:$8 sps:$4 sm:$0xff]  }
 0x1a5   :  { %2042 = vmatprep.subr.bf16.mxu0 %v4662_v16 }
 0x1a7   :  { %2000 = vmatpush2.bf16.msra.mxu1 %v4659_v21 }
 0x1a8   :  { %2043 = vmatpush2.bf16.msra.mxu0 %v4661_v22  ;;  %2001 = vmatprep.subr.bf16.mxu1 %v4644_v24  ;;  %v2196_v22 = vrot.slane %v2191_v13, %v5553_v29  ;;  %v5013_v24 = vld [vmem:[#allocation4 + $0x50] ss:$8 sps:$4 sm:$0xff]   ;;  %v5075_v13 = vld [vmem:[#allocation4 + $0xb4] ss:$8 sps:$4 sm:$0xff]  }
 0x1a9   :  { %2044 = vmatprep.subr.bf16.mxu0 %v4646_v25 }
 0x1ab   :  { %2002 = vmatpush2.bf16.msra.mxu1 %v4643_v30 }
 0x1ac   :  { %2045 = vmatpush2.bf16.msra.mxu0 %v4645_v31  ;;  %2003 = vmatprep.subr.bf16.mxu1 %v4628_v32  ;;  %v5024_v31 = vld [vmem:[#allocation4 + $0x144] ss:$8 sps:$4 sm:$0xff]  }
 0x1ad   :  { %2046 = vmatprep.subr.bf16.mxu0 %v4630_v33 }
 0x1af   :  { %2004 = vmatpush2.bf16.msra.mxu1 %v4627_v38  ;;  %v5027_v38 = vld [vmem:[#allocation4 + $0x34] ss:$8 sps:$4 sm:$0xff]  }
 0x1b0   :  { %2047 = vmatpush2.bf16.msra.mxu0 %v4629_v39  ;;  %2005 = vmatprep.subr.bf16.mxu1 %v4612_v40  ;;  %v5030_v39 = vld [vmem:[#allocation4 + $0x134] ss:$8 sps:$4 sm:$0xff]   ;;  %v5025_v40 = vld [vmem:[#allocation4 + $0x30] ss:$8 sps:$4 sm:$0xff]  }
 0x1b1   :  { %2048 = vmatprep.subr.bf16.mxu0 %v4614_v42  ;;  %v5028_v42 = vld [vmem:[#allocation4 + $0x130] ss:$8 sps:$4 sm:$0xff]  }
 0x1b3   :  { %2006 = vmatpush2.bf16.msra.mxu1 %v4611_v49  ;;  %v5039_v49 = vld [vmem:[#allocation4 + $0x14] ss:$8 sps:$4 sm:$0xff]  }
 0x1b4   :  { %2049 = vmatpush2.bf16.msra.mxu0 %v4613_v51  ;;  %2007 = vmatprep.subr.bf16.mxu1 %v4596_v52  ;;  %v5042_v51 = vld [vmem:[#allocation4 + $0x114] ss:$8 sps:$4 sm:$0xff]   ;;  %v5037_v52 = vld [vmem:[#allocation4 + $0x10] ss:$8 sps:$4 sm:$0xff]  }
 0x1b5   :  { %2050 = vmatprep.subr.bf16.mxu0 %v4598_v53  ;;  %v5040_v53 = vld [vmem:[#allocation4 + $0x110] ss:$8 sps:$4 sm:$0xff]  }
 0x1b7   :  { %2008 = vmatpush2.bf16.msra.mxu1 %v4595_v58  ;;  %v5051_v58 = vld [vmem:[#allocation4 + $0xf4] ss:$8 sps:$4 sm:$0xff]  }
 0x1b8   :  { %2051 = vmatpush2.bf16.msra.mxu0 %v4597_v60  ;;  %2009 = vmatprep.subr.bf16.mxu1 %v4580_v61  ;;  %v5049_v60 = vld [vmem:[#allocation4 + $0xf0] ss:$8 sps:$4 sm:$0xff]  }
 0x1b9   :  { %2052 = vmatprep.subr.bf16.mxu0 %v4582_v62  ;;  %v5052_v61 = vld [vmem:[#allocation4 + $0x1f0] ss:$8 sps:$4 sm:$0xff]   ;;  %v5057_v62 = vld [vmem:[#allocation4 + $0xe4] ss:$8 sps:$4 sm:$0xff]  }
 0x1bb   :  { %2010 = vmatpush2.bf16.msra.mxu1 %v4579_v63  ;;  %v5060_v63 = vld [vmem:[#allocation4 + $0x1e4] ss:$8 sps:$4 sm:$0xff]  }
 0x1bc   :  { %2053 = vmatpush2.bf16.msra.mxu0 %v4581_v2  ;;  %3863 = vmatprep.subr.bf16.mxu1 %v5003_v3  ;;  %v5058_v2 = vld [vmem:[#allocation4 + $0x1e0] ss:$8 sps:$4 sm:$0xff]   ;;  %v5063_v3 = vld [vmem:[#allocation4 + $0xd4] ss:$8 sps:$4 sm:$0xff]  }
 0x1bd   :  { %3906 = vmatprep.subr.bf16.mxu0 %v5006_v4  ;;  %v5066_v4 = vld [vmem:[#allocation4 + $0x1d4] ss:$8 sps:$4 sm:$0xff]  }
 0x1be   :  { %2012 = vmatmul.mubr.bf16.vlgmr.msra.gmra.mxu1 %v5561_v45  ;;  %v5590_v10 = vpop.f32.mrf.mxu1  ;;  %v5592_v11 = vpop.f32.mrf.mxu0 }
 0x1bf   :  { %2055 = vmatmul.mubr.bf16.vlgmr.msra.gmra.mxu0 %v5561_v45  ;;  %3864 = vmatpush1.bf16.msra.mxu1 %v5001_v5  ;;  %v2210_v45 = vrot.slane %v2205_v14, %v5553_v29  ;;  %v5061_v5 = vld [vmem:[#allocation4 + $0xd0] ss:$8 sps:$4 sm:$0xff]   ;;  %v2108_v14 = vrot.slane %v5584_v50, %v5549_v23 }
 0x1c0   :  { %3907 = vmatpush1.bf16.msra.mxu0 %v5004_v7  ;;  %v1757_v15 = vpop.f32.mrf.mxu1  ;;  %v1800_v16 = vpop.f32.mrf.mxu0  ;;  %3865 = vmatprep.subr.bf16.mxu1 %v5009_v8  ;;  %v5069_v7 = vld [vmem:[#allocation4 + $0xc4] ss:$8 sps:$4 sm:$0xff]  }
 0x1c1   :  { %3908 = vmatprep.subr.bf16.mxu0 %v5012_v9  ;;  %v5072_v8 = vld [vmem:[#allocation4 + $0x1c4] ss:$8 sps:$4 sm:$0xff]   ;;  %v5067_v9 = vld [vmem:[#allocation4 + $0xc0] ss:$8 sps:$4 sm:$0xff]   ;;  %v2184_v50 = vpack.i.b16 %v2108_v14, %v2108_v14 }
 0x1c2   :  { %v5595_v20 = vpop.f32.mrf.mxu1  ;;  %v5597_v21 = vpop.f32.mrf.mxu0 }
 0x1c3   :  { %3866 = vmatpush1.bf16.msra.mxu1 %v5007_v12  ;;  %v5070_v12 = vld [vmem:[#allocation4 + $0x1c0] ss:$8 sps:$4 sm:$0xff]  }
 0x1c4   :  { %3909 = vmatpush1.bf16.msra.mxu0 %v5010_v17  ;;  %v1761_v25 = vpop.f32.mrf.mxu1  ;;  %v1804_v44 = vpop.f32.mrf.mxu0  ;;  %3867 = vmatprep.subr.bf16.mxu1 %v5015_v18  ;;  %v2085_v17 = vcombine.high %v5580_v41, %v5580_v41  ;;  %v5076_v18 = vld [vmem:[#allocation4 + $0x1b0] ss:$8 sps:$4 sm:$0xff]   ;;  %v5090_v41 = vld [vmem:[#allocation4 + $0x194] ss:$8 sps:$4 sm:$0xff]  }
 0x1c5   :  { %v2066_v28 = vpack.c.bf16 %v1761_v25, %v1757_v15  ;;  %v2068_v30 = vpack.c.bf16 %v1804_v44, %v1800_v16  ;;  %3910 = vmatprep.subr.bf16.mxu0 %v5018_v19  ;;  %v5078_v15 = vld [vmem:[#allocation4 + $0x1b4] ss:$8 sps:$4 sm:$0xff]   ;;  %v5073_v16 = vld [vmem:[#allocation4 + $0xb0] ss:$8 sps:$4 sm:$0xff]   ;;  %v5081_v19 = vld [vmem:[#allocation4 + $0xa4] ss:$8 sps:$4 sm:$0xff]  }
 0x1c6   :  { %v5608_v25 = vrot.slane %v2085_v17, %v5549_v23  ;;  %v5082_v44 = vld [vmem:[#allocation4 + $0x1a0] ss:$8 sps:$4 sm:$0xff]  }
 0x1c7   :  { %v2296_v32 = vadd.bf16 %v2196_v22, %v2066_v28  ;;  %v2298_v33 = vadd.bf16 %v2210_v45, %v2068_v30  ;;  %3868 = vmatpush1.bf16.msra.mxu1 %v5013_v24  ;;  %v2130_v22 = vcombine.high %v2108_v14, %v2108_v14  ;;  %v5084_v45 = vld [vmem:[#allocation4 + $0x1a4] ss:$8 sps:$4 sm:$0xff]   ;;  %v5079_v24 = vld [vmem:[#allocation4 + $0xa0] ss:$8 sps:$4 sm:$0xff]   ;;  %v5085_v28 = vld [vmem:[#allocation4 + $0x90] ss:$8 sps:$4 sm:$0xff]  }
 0x1c8   :  { %3911 = vmatpush1.bf16.msra.mxu0 %v5016_v26  ;;  %3869 = vmatprep.subr.bf16.mxu1 %v5021_v27  ;;  %v5087_v26 = vld [vmem:[#allocation4 + $0x94] ss:$8 sps:$4 sm:$0xff]   ;;  %v2101_v30 = vcombine.high %v5608_v25, %v5608_v25 }
 0x1c9   :  { %3912 = vmatprep.subr.bf16.mxu0 %v5024_v31  ;;  %v2312_v36 = vmax.bf16 %v5475_v0, %v2296_v32  ;;  %v2314_v37 = vmax.bf16 %v5475_v0, %v2298_v33  ;;  %v2198_v27 = vpack.i.b16 %v2130_v22, %v2130_v22  ;;  %v2065_v31 = vpack.c.bf16 %v5595_v20, %v5590_v10  ;;  %v5088_v33 = vld [vmem:[#allocation4 + $0x190] ss:$8 sps:$4 sm:$0xff]   ;;  %v5094_v10 = vld [vmem:[#allocation4 + $0x180] ss:$8 sps:$4 sm:$0xff]   ;;  %v5099_v20 = vld [vmem:[#allocation4 + $0x274] ss:$8 sps:$4 sm:$0xff]  }
 0x1ca   :  { %v2189_v32 = vrot.slane %v2184_v50, %v5553_v29  ;;  %v5127_v22 = vld [vmem:[#allocation4 + $0x334] ss:$8 sps:$4 sm:$0xff]   ;;  %v5130_v50 = vld [vmem:[#allocation4 + $0x224] ss:$8 sps:$4 sm:$0xff]  }
 0x1cb   :  { %3870 = vmatpush1.bf16.msra.mxu1 %v5019_v34  ;;  %3895 = vmatprep.mubr.bf16.mxu1 %v2312_v36  ;;  %v5093_v34 = vld [vmem:[#allocation4 + $0x84] ss:$8 sps:$4 sm:$0xff]   ;;  %v2203_v36 = vrot.slane %v2198_v27, %v5553_v29  ;;  %v5131_v27 = vld [vmem:[#allocation4 + $0x320] ss:$8 sps:$4 sm:$0xff]  }
 0x1cc   :  { %3913 = vmatpush1.bf16.msra.mxu0 %v5022_v35  ;;  %3938 = vmatprep.mubr.bf16.mxu0 %v2314_v37  ;;  %v2067_v35 = vpack.c.bf16 %v5597_v21, %v5592_v11  ;;  %v5096_v37 = vld [vmem:[#allocation4 + $0x184] ss:$8 sps:$4 sm:$0xff]   ;;  %v5100_v21 = vld [vmem:[#allocation4 + $0x370] ss:$8 sps:$4 sm:$0xff]  }
 0x1cd   :  { %3871 = vmatprep.subr.bf16.mxu1 %v5027_v38  ;;  %3914 = vmatprep.subr.bf16.mxu0 %v5030_v39  ;;  %v5091_v38 = vld [vmem:[#allocation4 + $0x80] ss:$8 sps:$4 sm:$0xff]   ;;  %v2129_v39 = vrot.slane %v2101_v30, %v5549_v23  ;;  %v5134_v30 = vld [vmem:[#allocation4 + $0x210] ss:$8 sps:$4 sm:$0xff]  }
 0x1cf   :  { %3872 = vmatpush1.bf16.msra.mxu1 %v5025_v40  ;;  %v2295_v40 = vadd.bf16 %v2189_v32, %v2065_v31  ;;  %v5137_v31 = vld [vmem:[#allocation4 + $0x310] ss:$8 sps:$4 sm:$0xff]   ;;  %v5142_v32 = vld [vmem:[#allocation4 + $0x204] ss:$8 sps:$4 sm:$0xff]  }
 0x1d0   :  { %3915 = vmatpush1.bf16.msra.mxu0 %v5028_v42  ;;  %3873 = vmatprep.subr.bf16.mxu1 %v5033_v43  ;;  %v2297_v42 = vadd.bf16 %v2203_v36, %v2067_v35  ;;  %v5102_v43 = vld [vmem:[#allocation4 + $0x374] ss:$8 sps:$4 sm:$0xff]   ;;  %v5143_v35 = vld [vmem:[#allocation4 + $0x300] ss:$8 sps:$4 sm:$0xff]  }
 0x1d1   :  { %3916 = vmatprep.subr.bf16.mxu0 %v5036_v46  ;;  %v5097_v46 = vld [vmem:[#allocation4 + $0x270] ss:$8 sps:$4 sm:$0xff]   ;;  %v2311_v11 = vmax.bf16 %v5475_v0, %v2295_v40  ;;  %v5148_v36 = vld [vmem:[#allocation4 + $0x2f4] ss:$8 sps:$4 sm:$0xff]   ;;  %v5154_v40 = vld [vmem:[#allocation4 + $0x2e4] ss:$8 sps:$4 sm:$0xff]  }
 0x1d3   :  { %3874 = vmatpush1.bf16.msra.mxu1 %v5031_v47  ;;  %v2133_v47 = vcombine.high %v2129_v39, %v2129_v39 }
 0x1d4   :  { %3917 = vmatpush1.bf16.msra.mxu0 %v5034_v48  ;;  %3875 = vmatprep.subr.bf16.mxu1 %v5039_v49  ;;  %v5106_v48 = vld [vmem:[#allocation4 + $0x264] ss:$8 sps:$4 sm:$0xff]   ;;  %v2313_v49 = vmax.bf16 %v5475_v0, %v2297_v42  ;;  %v5155_v42 = vld [vmem:[#allocation4 + $0x3e0] ss:$8 sps:$4 sm:$0xff]  }
 0x1d5   :  { %3918 = vmatprep.subr.bf16.mxu0 %v5042_v51  ;;  %v5109_v51 = vld [vmem:[#allocation4 + $0x364] ss:$8 sps:$4 sm:$0xff]  }
 0x1d7   :  { %3876 = vmatpush1.bf16.msra.mxu1 %v5037_v52 }
 0x1d8   :  { %3919 = vmatpush1.bf16.msra.mxu0 %v5040_v53  ;;  %3877 = vmatprep.subr.bf16.mxu1 %v5045_v54  ;;  %v5104_v54 = vld [vmem:[#allocation4 + $0x260] ss:$8 sps:$4 sm:$0xff]  }
 0x1d9   :  { %3920 = vmatprep.subr.bf16.mxu0 %v5048_v55  ;;  %v2219_v55 = vpack.i.b16 %v2129_v39, %v2129_v39  ;;  %v5149_v39 = vld [vmem:[#allocation4 + $0x3f0] ss:$8 sps:$4 sm:$0xff]  }
 0x1db   :  { %3878 = vmatpush1.bf16.msra.mxu1 %v5043_v56  ;;  %v2233_v56 = vpack.i.b16 %v2133_v47, %v2133_v47  ;;  %v5158_v47 = vld [vmem:[#allocation4 + $0x2d0] ss:$8 sps:$4 sm:$0xff]  }
 0x1dc   :  { %3921 = vmatpush1.bf16.msra.mxu0 %v5046_v57  ;;  %3879 = vmatprep.subr.bf16.mxu1 %v5051_v58 }
 0x1dd   :  { %3922 = vmatprep.subr.bf16.mxu0 %v5054_v59  ;;  %v5107_v59 = vld [vmem:[#allocation4 + $0x360] ss:$8 sps:$4 sm:$0xff]  }
 0x1df   :  { %3880 = vmatpush2.bf16.msra.mxu1 %v5049_v60  ;;  %v5112_v60 = vld [vmem:[#allocation4 + $0x254] ss:$8 sps:$4 sm:$0xff]  }
 0x1e0   :  { %3923 = vmatpush2.bf16.msra.mxu0 %v5052_v61  ;;  %3881 = vmatprep.subr.bf16.mxu1 %v5057_v62  ;;  %v5115_v61 = vld [vmem:[#allocation4 + $0x354] ss:$8 sps:$4 sm:$0xff]  }
 0x1e1   :  { %3924 = vmatprep.subr.bf16.mxu0 %v5060_v63 }
 0x1e3   :  { %3882 = vmatpush2.bf16.msra.mxu1 %v5055_v1  ;;  %v2224_v1 = vrot.slane %v2219_v55, %v5553_v29  ;;  %v2115_v55 = vrot.slane %v5608_v25, %v5549_v23  ;;  %v5179_v25 = vld [vmem:[#allocation4 + $0x3a0] ss:$8 sps:$4 sm:$0xff]  }
 0x1e4   :  { %3925 = vmatpush2.bf16.msra.mxu0 %v5058_v2  ;;  %3883 = vmatprep.subr.bf16.mxu1 %v5063_v3  ;;  %v2238_v2 = vrot.slane %v2233_v56, %v5553_v29  ;;  %v5110_v3 = vld [vmem:[#allocation4 + $0x250] ss:$8 sps:$4 sm:$0xff]   ;;  %v5175_v56 = vld [vmem:[#allocation4 + $0x3b4] ss:$8 sps:$4 sm:$0xff]  }
 0x1e5   :  { %3926 = vmatprep.subr.bf16.mxu0 %v5066_v4 }
 0x1e7   :  { %3884 = vmatpush2.bf16.msra.mxu1 %v5061_v5 }
 0x1e8   :  { %3927 = vmatpush2.bf16.msra.mxu0 %v5064_v6  ;;  %3885 = vmatprep.subr.bf16.mxu1 %v5069_v7  ;;  %v5113_v6 = vld [vmem:[#allocation4 + $0x350] ss:$8 sps:$4 sm:$0xff]   ;;  %v5118_v7 = vld [vmem:[#allocation4 + $0x244] ss:$8 sps:$4 sm:$0xff]  }
 0x1e9   :  { %3928 = vmatprep.subr.bf16.mxu0 %v5072_v8 }
 0x1eb   :  { %3886 = vmatpush2.bf16.msra.mxu1 %v5067_v9 }
 0x1ec   :  { %3929 = vmatpush2.bf16.msra.mxu0 %v5070_v12  ;;  %3887 = vmatprep.subr.bf16.mxu1 %v5075_v13  ;;  %v5121_v12 = vld [vmem:[#allocation4 + $0x344] ss:$8 sps:$4 sm:$0xff]  }
 0x1ed   :  { %3930 = vmatprep.subr.bf16.mxu0 %v5078_v15  ;;  %v5116_v15 = vld [vmem:[#allocation4 + $0x240] ss:$8 sps:$4 sm:$0xff]  }
 0x1ef   :  { %3888 = vmatpush2.bf16.msra.mxu1 %v5073_v16  ;;  %v5119_v16 = vld [vmem:[#allocation4 + $0x340] ss:$8 sps:$4 sm:$0xff]  }
 0x1f0   :  { %3931 = vmatpush2.bf16.msra.mxu0 %v5076_v18  ;;  %3889 = vmatprep.subr.bf16.mxu1 %v5081_v19  ;;  %v5124_v19 = vld [vmem:[#allocation4 + $0x234] ss:$8 sps:$4 sm:$0xff]  }
 0x1f1   :  { %3932 = vmatprep.subr.bf16.mxu0 %v5084_v45  ;;  %v5122_v45 = vld [vmem:[#allocation4 + $0x230] ss:$8 sps:$4 sm:$0xff]  }
 0x1f3   :  { %3890 = vmatpush2.bf16.msra.mxu1 %v5079_v24  ;;  %v5125_v24 = vld [vmem:[#allocation4 + $0x330] ss:$8 sps:$4 sm:$0xff]  }
 0x1f4   :  { %3933 = vmatpush2.bf16.msra.mxu0 %v5082_v44  ;;  %3891 = vmatprep.subr.bf16.mxu1 %v5087_v26  ;;  %v5133_v44 = vld [vmem:[#allocation4 + $0x324] ss:$8 sps:$4 sm:$0xff]   ;;  %v5128_v26 = vld [vmem:[#allocation4 + $0x220] ss:$8 sps:$4 sm:$0xff]  }
 0x1f5   :  { %3934 = vmatprep.subr.bf16.mxu0 %v5090_v41  ;;  %v5136_v41 = vld [vmem:[#allocation4 + $0x214] ss:$8 sps:$4 sm:$0xff]  }
 0x1f7   :  { %3892 = vmatpush2.bf16.msra.mxu1 %v5085_v28  ;;  %v5139_v28 = vld [vmem:[#allocation4 + $0x314] ss:$8 sps:$4 sm:$0xff]  }
 0x1f8   :  { %3935 = vmatpush2.bf16.msra.mxu0 %v5088_v33  ;;  %3893 = vmatprep.subr.bf16.mxu1 %v5093_v34  ;;  %v5145_v33 = vld [vmem:[#allocation4 + $0x304] ss:$8 sps:$4 sm:$0xff]   ;;  %v5140_v34 = vld [vmem:[#allocation4 + $0x200] ss:$8 sps:$4 sm:$0xff]  }
 0x1f9   :  { %3936 = vmatprep.subr.bf16.mxu0 %v5096_v37  ;;  %v5151_v37 = vld [vmem:[#allocation4 + $0x3f4] ss:$8 sps:$4 sm:$0xff]  }
 0x1fb   :  { %3894 = vmatpush2.bf16.msra.mxu1 %v5091_v38  ;;  %v5146_v38 = vld [vmem:[#allocation4 + $0x2f0] ss:$8 sps:$4 sm:$0xff]  }
 0x1fc   :  { %3937 = vmatpush2.bf16.msra.mxu0 %v5094_v10  ;;  %3949 = vmatprep.subr.bf16.mxu1 %v5099_v20  ;;  %v5157_v10 = vld [vmem:[#allocation4 + $0x3e4] ss:$8 sps:$4 sm:$0xff]   ;;  %v5152_v20 = vld [vmem:[#allocation4 + $0x2e0] ss:$8 sps:$4 sm:$0xff]  }
 0x1fd   :  { %3992 = vmatprep.subr.bf16.mxu0 %v5102_v43  ;;  %v5160_v43 = vld [vmem:[#allocation4 + $0x2d4] ss:$8 sps:$4 sm:$0xff]  }
 0x1fe   :  { %v5621_v52 = vpop.f32.mrf.mxu1  ;;  %v5623_v53 = vpop.f32.mrf.mxu0  ;;  %3896 = vmatmul.mubr.bf16.vlgmr.msra.gmra.mxu1 %v2311_v11  ;;  %v5161_v11 = vld [vmem:[#allocation4 + $0x3d0] ss:$8 sps:$4 sm:$0xff]  }
 0x1ff   :  { %3939 = vmatmul.mubr.bf16.vlgmr.msra.gmra.mxu0 %v2313_v49  ;;  %3950 = vmatpush1.bf16.msra.mxu1 %v5097_v46  ;;  %v5163_v46 = vld [vmem:[#allocation4 + $0x3d4] ss:$8 sps:$4 sm:$0xff]   ;;  %v5164_v49 = vld [vmem:[#allocation4 + $0x2c0] ss:$8 sps:$4 sm:$0xff]  }
 0x200   :  { %3993 = vmatpush1.bf16.msra.mxu0 %v5100_v21  ;;  %v1843_v57 = vpop.f32.mrf.mxu1  ;;  %v1886_v58 = vpop.f32.mrf.mxu0  ;;  %3951 = vmatprep.subr.bf16.mxu1 %v5106_v48  ;;  %v5166_v21 = vld [vmem:[#allocation4 + $0x2c4] ss:$8 sps:$4 sm:$0xff]  }
 0x201   :  { %3994 = vmatprep.subr.bf16.mxu0 %v5109_v51  ;;  %v5169_v48 = vld [vmem:[#allocation4 + $0x3c4] ss:$8 sps:$4 sm:$0xff]   ;;  %v5167_v51 = vld [vmem:[#allocation4 + $0x3c0] ss:$8 sps:$4 sm:$0xff]  }
 0x202   :  { %v5625_v62 = vpop.f32.mrf.mxu1  ;;  %v5627_v63 = vpop.f32.mrf.mxu0 }
 0x203   :  { %3952 = vmatpush1.bf16.msra.mxu1 %v5104_v54  ;;  %v5172_v54 = vld [vmem:[#allocation4 + $0x2b4] ss:$8 sps:$4 sm:$0xff]  }
 0x204   :  { %3995 = vmatpush1.bf16.msra.mxu0 %v5107_v59  ;;  %v1847_v4 = vpop.f32.mrf.mxu1  ;;  %v1890_v5 = vpop.f32.mrf.mxu0  ;;  %3953 = vmatprep.subr.bf16.mxu1 %v5112_v60  ;;  %v5178_v59 = vld [vmem:[#allocation4 + $0x2a4] ss:$8 sps:$4 sm:$0xff]   ;;  %v2131_v60 = vcombine.high %v2115_v55, %v2115_v55 }
 0x205   :  { %v2070_v8 = vpack.c.bf16 %v1847_v4, %v1843_v57  ;;  %v2072_v9 = vpack.c.bf16 %v1890_v5, %v1886_v58  ;;  %3996 = vmatprep.subr.bf16.mxu0 %v5115_v61  ;;  %v5170_v57 = vld [vmem:[#allocation4 + $0x2b0] ss:$8 sps:$4 sm:$0xff]   ;;  %v5181_v61 = vld [vmem:[#allocation4 + $0x3a4] ss:$8 sps:$4 sm:$0xff]   ;;  %v5184_v4 = vld [vmem:[#allocation4 + $0x294] ss:$8 sps:$4 sm:$0xff]  }
 0x206   :  { %v5173_v58 = vld [vmem:[#allocation4 + $0x3b0] ss:$8 sps:$4 sm:$0xff]  }
 0x207   :  { %v2300_v13 = vadd.bf16 %v2224_v1, %v2070_v8  ;;  %v2302_v14 = vadd.bf16 %v2238_v2, %v2072_v9  ;;  %3954 = vmatpush1.bf16.msra.mxu1 %v5110_v3  ;;  %v5638_v1 = vld [vmem:[%s5729_s4 + $0x8] sm:$0xff]  ;;  %v2212_v3 = vpack.i.b16 %v2115_v55, %v2115_v55  ;;  %v5182_v8 = vld [vmem:[#allocation4 + $0x290] ss:$8 sps:$4 sm:$0xff]   ;;  %v2069_v9 = vpack.c.bf16 %v5625_v62, %v5621_v52  ;;  %v5196_v62 = vld [vmem:[#allocation4 + $0x474] ss:$8 sps:$4 sm:$0xff]  }
 0x208   :  { %3997 = vmatpush1.bf16.msra.mxu0 %v5113_v6  ;;  %3955 = vmatprep.subr.bf16.mxu1 %v5118_v7  ;;  %v5176_v2 = vld [vmem:[#allocation4 + $0x2a0] ss:$8 sps:$4 sm:$0xff]   ;;  %v5642_v5 = vrot.slane %v5638_v1, %v5549_v23  ;;  %v2226_v6 = vpack.i.b16 %v2131_v60, %v2131_v60  ;;  %v5187_v7 = vld [vmem:[#allocation4 + $0x394] ss:$8 sps:$4 sm:$0xff]  }
 0x209   :  { %3998 = vmatprep.subr.bf16.mxu0 %v5121_v12  ;;  %v2316_v17 = vmax.bf16 %v5475_v0, %v2300_v13  ;;  %v2318_v18 = vmax.bf16 %v5475_v0, %v2302_v14  ;;  %v2217_v12 = vrot.slane %v2212_v3, %v5553_v29  ;;  %v5185_v13 = vld [vmem:[#allocation4 + $0x390] ss:$8 sps:$4 sm:$0xff]   ;;  %v5190_v14 = vld [vmem:[#allocation4 + $0x284] ss:$8 sps:$4 sm:$0xff]   ;;  %v5191_v52 = vld [vmem:[#allocation4 + $0x380] ss:$8 sps:$4 sm:$0xff]  }
 0x20a   :  { %v5212_v55 = vld [vmem:[#allocation4 + $0x440] ss:$8 sps:$4 sm:$0xff]   ;;  %v5223_v60 = vld [vmem:[#allocation4 + $0x534] ss:$8 sps:$4 sm:$0xff]   ;;  %v5221_v3 = vld [vmem:[#allocation4 + $0x530] ss:$8 sps:$4 sm:$0xff]  }
 0x20b   :  { %3956 = vmatpush1.bf16.msra.mxu1 %v5116_v15  ;;  %3981 = vmatprep.mubr.bf16.mxu1 %v2316_v17  ;;  %v2149_v15 = vcombine.high %v5642_v5, %v5642_v5  ;;  %v2231_v17 = vrot.slane %v2226_v6, %v5553_v29  ;;  %v5224_v6 = vld [vmem:[#allocation4 + $0x420] ss:$8 sps:$4 sm:$0xff]  }
 0x20c   :  { %3999 = vmatpush1.bf16.msra.mxu0 %v5119_v16  ;;  %4024 = vmatprep.mubr.bf16.mxu0 %v2318_v18  ;;  %v2071_v16 = vpack.c.bf16 %v5627_v63, %v5623_v53  ;;  %v5193_v18 = vld [vmem:[#allocation4 + $0x384] ss:$8 sps:$4 sm:$0xff]   ;;  %v5197_v63 = vld [vmem:[#allocation4 + $0x570] ss:$8 sps:$4 sm:$0xff]  }
 0x20d   :  { %3957 = vmatprep.subr.bf16.mxu1 %v5124_v19  ;;  %4000 = vmatprep.subr.bf16.mxu0 %v5127_v22  ;;  %v5188_v19 = vld [vmem:[#allocation4 + $0x280] ss:$8 sps:$4 sm:$0xff]   ;;  %v2299_v22 = vadd.bf16 %v2217_v12, %v2069_v9  ;;  %v5235_v9 = vld [vmem:[#allocation4 + $0x514] ss:$8 sps:$4 sm:$0xff]   ;;  %v5230_v12 = vld [vmem:[#allocation4 + $0x410] ss:$8 sps:$4 sm:$0xff]  }
 0x20f   :  { %3958 = vmatpush1.bf16.msra.mxu1 %v5122_v45  ;;  %v2171_v45 = vrot.slane %v2149_v15, %v5549_v23  ;;  %v2315_v53 = vmax.bf16 %v5475_v0, %v2299_v22  ;;  %v5241_v15 = vld [vmem:[#allocation4 + $0x504] ss:$8 sps:$4 sm:$0xff]   ;;  %v5242_v22 = vld [vmem:[#allocation4 + $0x4f0] ss:$8 sps:$4 sm:$0xff]  }
 0x210   :  { %4001 = vmatpush1.bf16.msra.mxu0 %v5125_v24  ;;  %3959 = vmatprep.subr.bf16.mxu1 %v5130_v50  ;;  %v2301_v24 = vadd.bf16 %v2231_v17, %v2071_v16  ;;  %v5199_v50 = vld [vmem:[#allocation4 + $0x574] ss:$8 sps:$4 sm:$0xff]   ;;  %v5236_v16 = vld [vmem:[#allocation4 + $0x400] ss:$8 sps:$4 sm:$0xff]  }
 0x211   :  { %4002 = vmatprep.subr.bf16.mxu0 %v5133_v44  ;;  %v5194_v44 = vld [vmem:[#allocation4 + $0x470] ss:$8 sps:$4 sm:$0xff]   ;;  %v5239_v17 = vld [vmem:[#allocation4 + $0x500] ss:$8 sps:$4 sm:$0xff]  }
 0x213   :  { %3960 = vmatpush1.bf16.msra.mxu1 %v5128_v26  ;;  %v5202_v26 = vld [vmem:[#allocation4 + $0x464] ss:$8 sps:$4 sm:$0xff]  }
 0x214   :  { %4003 = vmatpush1.bf16.msra.mxu0 %v5131_v27  ;;  %3961 = vmatprep.subr.bf16.mxu1 %v5136_v41  ;;  %v2181_v27 = vcombine.high %v2171_v45, %v2171_v45  ;;  %v2317_v41 = vmax.bf16 %v5475_v0, %v2301_v24  ;;  %v5248_v24 = vld [vmem:[#allocation4 + $0x4e0] ss:$8 sps:$4 sm:$0xff]  }
 0x215   :  { %4004 = vmatprep.subr.bf16.mxu0 %v5139_v28  ;;  %v5205_v28 = vld [vmem:[#allocation4 + $0x564] ss:$8 sps:$4 sm:$0xff]  }
 0x217   :  { %3962 = vmatpush1.bf16.msra.mxu1 %v5134_v30 }
 0x218   :  { %4005 = vmatpush1.bf16.msra.mxu0 %v5137_v31  ;;  %3963 = vmatprep.subr.bf16.mxu1 %v5142_v32  ;;  %v5200_v32 = vld [vmem:[#allocation4 + $0x460] ss:$8 sps:$4 sm:$0xff]  }
 0x219   :  { %4006 = vmatprep.subr.bf16.mxu0 %v5145_v33  ;;  %v2247_v33 = vpack.i.b16 %v2171_v45, %v2171_v45  ;;  %v5253_v45 = vld [vmem:[#allocation4 + $0x5e4] ss:$8 sps:$4 sm:$0xff]  }
 0x21b   :  { %3964 = vmatpush1.bf16.msra.mxu1 %v5140_v34 }
 0x21c   :  { %4007 = vmatpush1.bf16.msra.mxu0 %v5143_v35  ;;  %3965 = vmatprep.subr.bf16.mxu1 %v5148_v36  ;;  %v5203_v35 = vld [vmem:[#allocation4 + $0x560] ss:$8 sps:$4 sm:$0xff]   ;;  %v2261_v36 = vpack.i.b16 %v2181_v27, %v2181_v27  ;;  %v5262_v27 = vld [vmem:[#allocation4 + $0x4c4] ss:$8 sps:$4 sm:$0xff]  }
 0x21d   :  { %4008 = vmatprep.subr.bf16.mxu0 %v5151_v37  ;;  %v5208_v37 = vld [vmem:[#allocation4 + $0x454] ss:$8 sps:$4 sm:$0xff]  }
 0x21f   :  { %3966 = vmatpush2.bf16.msra.mxu1 %v5146_v38 }
 0x220   :  { %4009 = vmatpush2.bf16.msra.mxu0 %v5149_v39  ;;  %3967 = vmatprep.subr.bf16.mxu1 %v5154_v40  ;;  %v5211_v39 = vld [vmem:[#allocation4 + $0x554] ss:$8 sps:$4 sm:$0xff]  }
 0x221   :  { %4010 = vmatprep.subr.bf16.mxu0 %v5157_v10 }
 0x223   :  { %3968 = vmatpush2.bf16.msra.mxu1 %v5152_v20  ;;  %v2252_v20 = vrot.slane %v2247_v33, %v5553_v29  ;;  %v5268_v33 = vld [vmem:[#allocation4 + $0x4b4] ss:$8 sps:$4 sm:$0xff]  }
 0x224   :  { %4011 = vmatpush2.bf16.msra.mxu0 %v5155_v42  ;;  %3969 = vmatprep.subr.bf16.mxu1 %v5160_v43  ;;  %v5206_v42 = vld [vmem:[#allocation4 + $0x450] ss:$8 sps:$4 sm:$0xff]  }
 0x225   :  { %4012 = vmatprep.subr.bf16.mxu0 %v5163_v46  ;;  %v2266_v46 = vrot.slane %v2261_v36, %v5553_v29  ;;  %v5266_v36 = vld [vmem:[#allocation4 + $0x4b0] ss:$8 sps:$4 sm:$0xff]  }
 0x227   :  { %3970 = vmatpush2.bf16.msra.mxu1 %v5158_v47  ;;  %v5209_v47 = vld [vmem:[#allocation4 + $0x550] ss:$8 sps:$4 sm:$0xff]  }
 0x228   :  { %4013 = vmatpush2.bf16.msra.mxu0 %v5161_v11  ;;  %3971 = vmatprep.subr.bf16.mxu1 %v5166_v21  ;;  %v5214_v11 = vld [vmem:[#allocation4 + $0x444] ss:$8 sps:$4 sm:$0xff]  }
 0x229   :  { %4014 = vmatprep.subr.bf16.mxu0 %v5169_v48 }
 0x22b   :  { %3972 = vmatpush2.bf16.msra.mxu1 %v5164_v49  ;;  %v5217_v49 = vld [vmem:[#allocation4 + $0x544] ss:$8 sps:$4 sm:$0xff]  }
 0x22c   :  { %4015 = vmatpush2.bf16.msra.mxu0 %v5167_v51  ;;  %3973 = vmatprep.subr.bf16.mxu1 %v5172_v54 }
 0x22d   :  { %4016 = vmatprep.subr.bf16.mxu0 %v5175_v56 }
 0x22f   :  { %3974 = vmatpush2.bf16.msra.mxu1 %v5170_v57  ;;  %v5215_v57 = vld [vmem:[#allocation4 + $0x540] ss:$8 sps:$4 sm:$0xff]  }
 0x230   :  { %4017 = vmatpush2.bf16.msra.mxu0 %v5173_v58  ;;  %3975 = vmatprep.subr.bf16.mxu1 %v5178_v59  ;;  %v5220_v59 = vld [vmem:[#allocation4 + $0x434] ss:$8 sps:$4 sm:$0xff]  }
 0x231   :  { %4018 = vmatprep.subr.bf16.mxu0 %v5181_v61 }
 0x233   :  { %3976 = vmatpush2.bf16.msra.mxu1 %v5176_v2  ;;  %v5218_v2 = vld [vmem:[#allocation4 + $0x430] ss:$8 sps:$4 sm:$0xff]  }
 0x234   :  { %4019 = vmatpush2.bf16.msra.mxu0 %v5179_v25  ;;  %3977 = vmatprep.subr.bf16.mxu1 %v5184_v4  ;;  %v5226_v25 = vld [vmem:[#allocation4 + $0x424] ss:$8 sps:$4 sm:$0xff]  }
 0x235   :  { %4020 = vmatprep.subr.bf16.mxu0 %v5187_v7  ;;  %v5229_v4 = vld [vmem:[#allocation4 + $0x524] ss:$8 sps:$4 sm:$0xff]   ;;  %v5227_v7 = vld [vmem:[#allocation4 + $0x520] ss:$8 sps:$4 sm:$0xff]  }
 0x237   :  { %3978 = vmatpush2.bf16.msra.mxu1 %v5182_v8  ;;  %v5232_v8 = vld [vmem:[#allocation4 + $0x414] ss:$8 sps:$4 sm:$0xff]  }
 0x238   :  { %4021 = vmatpush2.bf16.msra.mxu0 %v5185_v13  ;;  %3979 = vmatprep.subr.bf16.mxu1 %v5190_v14  ;;  %v5233_v13 = vld [vmem:[#allocation4 + $0x510] ss:$8 sps:$4 sm:$0xff]   ;;  %v5238_v14 = vld [vmem:[#allocation4 + $0x404] ss:$8 sps:$4 sm:$0xff]  }
 0x239   :  { %4022 = vmatprep.subr.bf16.mxu0 %v5193_v18  ;;  %v5244_v18 = vld [vmem:[#allocation4 + $0x4f4] ss:$8 sps:$4 sm:$0xff]  }
 0x23b   :  { %3980 = vmatpush2.bf16.msra.mxu1 %v5188_v19  ;;  %v5247_v19 = vld [vmem:[#allocation4 + $0x5f4] ss:$8 sps:$4 sm:$0xff]  }
 0x23c   :  { %4023 = vmatpush2.bf16.msra.mxu0 %v5191_v52  ;;  %4035 = vmatprep.subr.bf16.mxu1 %v5196_v62  ;;  %v5245_v52 = vld [vmem:[#allocation4 + $0x5f0] ss:$8 sps:$4 sm:$0xff]   ;;  %v5250_v62 = vld [vmem:[#allocation4 + $0x4e4] ss:$8 sps:$4 sm:$0xff]  }
 0x23d   :  { %4078 = vmatprep.subr.bf16.mxu0 %v5199_v50  ;;  %v5251_v50 = vld [vmem:[#allocation4 + $0x5e0] ss:$8 sps:$4 sm:$0xff]  }
 0x23e   :  { %v5655_v30 = vpop.f32.mrf.mxu1  ;;  %3982 = vmatmul.mubr.bf16.vlgmr.msra.gmra.mxu1 %v2315_v53  ;;  %v5259_v53 = vld [vmem:[#allocation4 + $0x5d4] ss:$8 sps:$4 sm:$0xff]  }
 0x23f   :  { %v5657_v31 = vpop.f32.mrf.mxu0  ;;  %4025 = vmatmul.mubr.bf16.vlgmr.msra.gmra.mxu0 %v2317_v41  ;;  %4036 = vmatpush1.bf16.msra.mxu1 %v5194_v44  ;;  %v5256_v44 = vld [vmem:[#allocation4 + $0x4d4] ss:$8 sps:$4 sm:$0xff]   ;;  %v5265_v41 = vld [vmem:[#allocation4 + $0x5c4] ss:$8 sps:$4 sm:$0xff]  }
 0x240   :  { %4079 = vmatpush1.bf16.msra.mxu0 %v5197_v63  ;;  %v1929_v34 = vpop.f32.mrf.mxu1  ;;  %4037 = vmatprep.subr.bf16.mxu1 %v5202_v26  ;;  %v5254_v63 = vld [vmem:[#allocation4 + $0x4d0] ss:$8 sps:$4 sm:$0xff]  }
 0x241   :  { %v1972_v38 = vpop.f32.mrf.mxu0  ;;  %4080 = vmatprep.subr.bf16.mxu0 %v5205_v28  ;;  %v5257_v26 = vld [vmem:[#allocation4 + $0x5d0] ss:$8 sps:$4 sm:$0xff]   ;;  %v5260_v28 = vld [vmem:[#allocation4 + $0x4c0] ss:$8 sps:$4 sm:$0xff]  }
 0x242   :  { %v5659_v40 = vpop.f32.mrf.mxu1 }
 0x243   :  { %v5661_v10 = vpop.f32.mrf.mxu0  ;;  %4038 = vmatpush1.bf16.msra.mxu1 %v5200_v32  ;;  %v5263_v32 = vld [vmem:[#allocation4 + $0x5c0] ss:$8 sps:$4 sm:$0xff]  }
 0x244   :  { %4081 = vmatpush1.bf16.msra.mxu0 %v5203_v35  ;;  %v1933_v43 = vpop.f32.mrf.mxu1  ;;  %4039 = vmatprep.subr.bf16.mxu1 %v5208_v37  ;;  %v5271_v35 = vld [vmem:[#allocation4 + $0x5b4] ss:$8 sps:$4 sm:$0xff]   ;;  %v5269_v37 = vld [vmem:[#allocation4 + $0x5b0] ss:$8 sps:$4 sm:$0xff]  }
 0x245   :  { %v2074_v21 = vpack.c.bf16 %v1933_v43, %v1929_v34  ;;  %v1976_v48 = vpop.f32.mrf.mxu0  ;;  %4082 = vmatprep.subr.bf16.mxu0 %v5211_v39  ;;  %v2157_v34 = vrot.slane %v5642_v5, %v5549_v23  ;;  %v2134_v39 = vcombine.high %v5638_v1, %v5638_v1  ;;  %v5272_v43 = vld [vmem:[#allocation4 + $0x4a0] ss:$8 sps:$4 sm:$0xff]   ;;  %v2073_v1 = vpack.c.bf16 %v5659_v40, %v5655_v30  ;;  %v5292_v40 = vld [vmem:[#allocation4 + $0x674] ss:$8 sps:$4 sm:$0xff]  }
 0x246   :  { %v2076_v51 = vpack.c.bf16 %v1976_v48, %v1972_v38  ;;  %v5274_v38 = vld [vmem:[#allocation4 + $0x4a4] ss:$8 sps:$4 sm:$0xff]   ;;  %v5275_v5 = vld [vmem:[#allocation4 + $0x5a0] ss:$8 sps:$4 sm:$0xff]   ;;  %v5283_v48 = vld [vmem:[#allocation4 + $0x594] ss:$8 sps:$4 sm:$0xff]  }
 0x247   :  { %v2304_v54 = vadd.bf16 %v2252_v20, %v2074_v21  ;;  %4040 = vmatpush1.bf16.msra.mxu1 %v5206_v42  ;;  %v2179_v20 = vcombine.high %v2157_v34, %v2157_v34  ;;  %v5277_v42 = vld [vmem:[#allocation4 + $0x5a4] ss:$8 sps:$4 sm:$0xff]   ;;  %v5287_v30 = vld [vmem:[#allocation4 + $0x580] ss:$8 sps:$4 sm:$0xff]  }
 0x248   :  { %v2306_v56 = vadd.bf16 %v2266_v46, %v2076_v51  ;;  %4083 = vmatpush1.bf16.msra.mxu0 %v5209_v47  ;;  %4041 = vmatprep.subr.bf16.mxu1 %v5214_v11  ;;  %v2240_v46 = vpack.i.b16 %v2157_v34, %v2157_v34  ;;  %v5280_v47 = vld [vmem:[#allocation4 + $0x494] ss:$8 sps:$4 sm:$0xff]   ;;  %v5672_v11 = vrot.slane %v2134_v39, %v5549_v23  ;;  %v5309_v34 = vld [vmem:[#allocation4 + $0x640] ss:$8 sps:$4 sm:$0xff]  }
 0x249   :  { %4084 = vmatprep.subr.bf16.mxu0 %v5217_v49  ;;  %v2320_v58 = vmax.bf16 %v5475_v0, %v2304_v54  ;;  %v2254_v21 = vpack.i.b16 %v2179_v20, %v2179_v20  ;;  %v5278_v49 = vld [vmem:[#allocation4 + $0x490] ss:$8 sps:$4 sm:$0xff]   ;;  %v5320_v39 = vld [vmem:[#allocation4 + $0x734] ss:$8 sps:$4 sm:$0xff]  }
 0x24a   :  { %v2322_v61 = vmax.bf16 %v5475_v0, %v2306_v56  ;;  %v2245_v51 = vrot.slane %v2240_v46, %v5553_v29  ;;  %v5281_v54 = vld [vmem:[#allocation4 + $0x590] ss:$8 sps:$4 sm:$0xff]   ;;  %v2150_v56 = vcombine.high %v5672_v11, %v5672_v11  ;;  %v5323_v46 = vld [vmem:[#allocation4 + $0x624] ss:$8 sps:$4 sm:$0xff]  }
 0x24b   :  { %4042 = vmatpush1.bf16.msra.mxu1 %v5212_v55  ;;  %4067 = vmatprep.mubr.bf16.mxu1 %v2320_v58  ;;  %v5286_v55 = vld [vmem:[#allocation4 + $0x484] ss:$8 sps:$4 sm:$0xff]   ;;  %v2259_v58 = vrot.slane %v2254_v21, %v5553_v29  ;;  %v5324_v21 = vld [vmem:[#allocation4 + $0x720] ss:$8 sps:$4 sm:$0xff]  }
 0x24c   :  { %4085 = vmatpush1.bf16.msra.mxu0 %v5215_v57  ;;  %4110 = vmatprep.mubr.bf16.mxu0 %v2322_v61  ;;  %v2075_v57 = vpack.c.bf16 %v5661_v10, %v5657_v31  ;;  %v2303_v61 = vadd.bf16 %v2245_v51, %v2073_v1  ;;  %v5293_v10 = vld [vmem:[#allocation4 + $0x770] ss:$8 sps:$4 sm:$0xff]  }
 0x24d   :  { %4043 = vmatprep.subr.bf16.mxu1 %v5220_v59  ;;  %4086 = vmatprep.subr.bf16.mxu0 %v5223_v60  ;;  %v5289_v59 = vld [vmem:[#allocation4 + $0x584] ss:$8 sps:$4 sm:$0xff]   ;;  %v5284_v60 = vld [vmem:[#allocation4 + $0x480] ss:$8 sps:$4 sm:$0xff]   ;;  %v5327_v1 = vld [vmem:[#allocation4 + $0x610] ss:$8 sps:$4 sm:$0xff]  }
 0x24e   :  { %v2319_v31 = vmax.bf16 %v5475_v0, %v2303_v61  ;;  %v5330_v51 = vld [vmem:[#allocation4 + $0x710] ss:$8 sps:$4 sm:$0xff]  }
 0x24f   :  { %4044 = vmatpush1.bf16.msra.mxu1 %v5218_v2  ;;  %v2178_v2 = vrot.slane %v2150_v56, %v5549_v23  ;;  %v5333_v56 = vld [vmem:[#allocation4 + $0x600] ss:$8 sps:$4 sm:$0xff]   ;;  %v5342_v61 = vld [vmem:[#allocation4 + $0x7f0] ss:$8 sps:$4 sm:$0xff]  }
 0x250   :  { %4087 = vmatpush1.bf16.msra.mxu0 %v5221_v3  ;;  %4045 = vmatprep.subr.bf16.mxu1 %v5226_v25  ;;  %v2305_v3 = vadd.bf16 %v2259_v58, %v2075_v57  ;;  %v5295_v25 = vld [vmem:[#allocation4 + $0x774] ss:$8 sps:$4 sm:$0xff]   ;;  %v5336_v57 = vld [vmem:[#allocation4 + $0x700] ss:$8 sps:$4 sm:$0xff]  }
 0x251   :  { %4088 = vmatprep.subr.bf16.mxu0 %v5229_v4  ;;  %v5290_v4 = vld [vmem:[#allocation4 + $0x670] ss:$8 sps:$4 sm:$0xff]   ;;  %v5341_v58 = vld [vmem:[#allocation4 + $0x6f4] ss:$8 sps:$4 sm:$0xff]  }
 0x253   :  { %4046 = vmatpush1.bf16.msra.mxu1 %v5224_v6  ;;  %v5299_v6 = vld [vmem:[#allocation4 + $0x664] ss:$8 sps:$4 sm:$0xff]  }
 0x254   :  { %4089 = vmatpush1.bf16.msra.mxu0 %v5227_v7  ;;  %4047 = vmatprep.subr.bf16.mxu1 %v5232_v8  ;;  %v2182_v7 = vcombine.high %v2178_v2, %v2178_v2  ;;  %v2321_v8 = vmax.bf16 %v5475_v0, %v2305_v3  ;;  %v5348_v3 = vld [vmem:[#allocation4 + $0x7e0] ss:$8 sps:$4 sm:$0xff]  }
 0x255   :  { %4090 = vmatprep.subr.bf16.mxu0 %v5235_v9  ;;  %v5302_v9 = vld [vmem:[#allocation4 + $0x764] ss:$8 sps:$4 sm:$0xff]  }
 0x257   :  { %4048 = vmatpush1.bf16.msra.mxu1 %v5230_v12 }
 0x258   :  { %4091 = vmatpush1.bf16.msra.mxu0 %v5233_v13  ;;  %4049 = vmatprep.subr.bf16.mxu1 %v5238_v14  ;;  %v5297_v14 = vld [vmem:[#allocation4 + $0x660] ss:$8 sps:$4 sm:$0xff]  }
 0x259   :  { %4092 = vmatprep.subr.bf16.mxu0 %v5241_v15  ;;  %v2275_v15 = vpack.i.b16 %v2178_v2, %v2178_v2  ;;  %v5345_v2 = vld [vmem:[#allocation4 + $0x6e0] ss:$8 sps:$4 sm:$0xff]  }
 0x25b   :  { %4050 = vmatpush1.bf16.msra.mxu1 %v5236_v16 }
 0x25c   :  { %4093 = vmatpush1.bf16.msra.mxu0 %v5239_v17  ;;  %4051 = vmatprep.subr.bf16.mxu1 %v5244_v18  ;;  %v5300_v17 = vld [vmem:[#allocation4 + $0x760] ss:$8 sps:$4 sm:$0xff]   ;;  %v2289_v18 = vpack.i.b16 %v2182_v7, %v2182_v7  ;;  %v5362_v7 = vld [vmem:[#allocation4 + $0x7c4] ss:$8 sps:$4 sm:$0xff]  }
 0x25d   :  { %4094 = vmatprep.subr.bf16.mxu0 %v5247_v19  ;;  %v5305_v19 = vld [vmem:[#allocation4 + $0x654] ss:$8 sps:$4 sm:$0xff]  }
 0x25f   :  { %4052 = vmatpush2.bf16.msra.mxu1 %v5242_v22 }
 0x260   :  { %4095 = vmatpush2.bf16.msra.mxu0 %v5245_v52  ;;  %4053 = vmatprep.subr.bf16.mxu1 %v5250_v62  ;;  %v5308_v52 = vld [vmem:[#allocation4 + $0x754] ss:$8 sps:$4 sm:$0xff]  }
 0x261   :  { %4096 = vmatprep.subr.bf16.mxu0 %v5253_v45 }
 0x263   :  { %4054 = vmatpush2.bf16.msra.mxu1 %v5248_v24  ;;  %v2280_v24 = vrot.slane %v2275_v15, %v5553_v29  ;;  %v2164_v15 = vrot.slane %v5672_v11, %v5549_v23  ;;  %v5380_v11 = vld [vmem:[#allocation4 + $0x794] ss:$8 sps:$4 sm:$0xff]  }
 0x264   :  { %4097 = vmatpush2.bf16.msra.mxu0 %v5251_v50  ;;  %4055 = vmatprep.subr.bf16.mxu1 %v5256_v44  ;;  %v5303_v50 = vld [vmem:[#allocation4 + $0x650] ss:$8 sps:$4 sm:$0xff]  }
 0x265   :  { %4098 = vmatprep.subr.bf16.mxu0 %v5259_v53  ;;  %v2294_v53 = vrot.slane %v2289_v18, %v5553_v29  ;;  %v5366_v18 = vld [vmem:[#allocation4 + $0x7b0] ss:$8 sps:$4 sm:$0xff]  }
 0x267   :  { %4056 = vmatpush2.bf16.msra.mxu1 %v5254_v63  ;;  %v5306_v63 = vld [vmem:[#allocation4 + $0x750] ss:$8 sps:$4 sm:$0xff]  }
 0x268   :  { %4099 = vmatpush2.bf16.msra.mxu0 %v5257_v26  ;;  %4057 = vmatprep.subr.bf16.mxu1 %v5262_v27  ;;  %v5311_v26 = vld [vmem:[#allocation4 + $0x644] ss:$8 sps:$4 sm:$0xff]  }
 0x269   :  { %4100 = vmatprep.subr.bf16.mxu0 %v5265_v41 }
 0x26b   :  { %4058 = vmatpush2.bf16.msra.mxu1 %v5260_v28  ;;  %v5314_v28 = vld [vmem:[#allocation4 + $0x744] ss:$8 sps:$4 sm:$0xff]  }
 0x26c   :  { %4101 = vmatpush2.bf16.msra.mxu0 %v5263_v32  ;;  %4059 = vmatprep.subr.bf16.mxu1 %v5268_v33 }
 0x26d   :  { %4102 = vmatprep.subr.bf16.mxu0 %v5271_v35 }
 0x26f   :  { %4060 = vmatpush2.bf16.msra.mxu1 %v5266_v36  ;;  %v5312_v36 = vld [vmem:[#allocation4 + $0x740] ss:$8 sps:$4 sm:$0xff]  }
 0x270   :  { %4103 = vmatpush2.bf16.msra.mxu0 %v5269_v37  ;;  %4061 = vmatprep.subr.bf16.mxu1 %v5274_v38  ;;  %v5317_v38 = vld [vmem:[#allocation4 + $0x634] ss:$8 sps:$4 sm:$0xff]  }
 0x271   :  { %4104 = vmatprep.subr.bf16.mxu0 %v5277_v42  ;;  %v5315_v42 = vld [vmem:[#allocation4 + $0x630] ss:$8 sps:$4 sm:$0xff]  }
 0x273   :  { %4062 = vmatpush2.bf16.msra.mxu1 %v5272_v43  ;;  %v5318_v43 = vld [vmem:[#allocation4 + $0x730] ss:$8 sps:$4 sm:$0xff]  }
 0x274   :  { %4105 = vmatpush2.bf16.msra.mxu0 %v5275_v5  ;;  %4063 = vmatprep.subr.bf16.mxu1 %v5280_v47  ;;  %v5326_v5 = vld [vmem:[#allocation4 + $0x724] ss:$8 sps:$4 sm:$0xff]   ;;  %v5321_v47 = vld [vmem:[#allocation4 + $0x620] ss:$8 sps:$4 sm:$0xff]  }
 0x275   :  { %4106 = vmatprep.subr.bf16.mxu0 %v5283_v48  ;;  %v5329_v48 = vld [vmem:[#allocation4 + $0x614] ss:$8 sps:$4 sm:$0xff]  }
 0x277   :  { %4064 = vmatpush2.bf16.msra.mxu1 %v5278_v49  ;;  %v5332_v49 = vld [vmem:[#allocation4 + $0x714] ss:$8 sps:$4 sm:$0xff]  }
 0x278   :  { %4107 = vmatpush2.bf16.msra.mxu0 %v5281_v54  ;;  %4065 = vmatprep.subr.bf16.mxu1 %v5286_v55  ;;  %v5335_v54 = vld [vmem:[#allocation4 + $0x604] ss:$8 sps:$4 sm:$0xff]  }
 0x279   :  { %4108 = vmatprep.subr.bf16.mxu0 %v5289_v59  ;;  %v5338_v55 = vld [vmem:[#allocation4 + $0x704] ss:$8 sps:$4 sm:$0xff]   ;;  %v5344_v59 = vld [vmem:[#allocation4 + $0x7f4] ss:$8 sps:$4 sm:$0xff]  }
 0x27b   :  { %4066 = vmatpush2.bf16.msra.mxu1 %v5284_v60  ;;  %v5339_v60 = vld [vmem:[#allocation4 + $0x6f0] ss:$8 sps:$4 sm:$0xff]  }
 0x27c   :  { %4109 = vmatpush2.bf16.msra.mxu0 %v5287_v30  ;;  %4121 = vmatprep.subr.bf16.mxu1 %v5292_v40  ;;  %v5347_v30 = vld [vmem:[#allocation4 + $0x6e4] ss:$8 sps:$4 sm:$0xff]  }
 0x27d   :  { %4164 = vmatprep.subr.bf16.mxu0 %v5295_v25  ;;  %v5350_v40 = vld [vmem:[#allocation4 + $0x7e4] ss:$8 sps:$4 sm:$0xff]   ;;  %v5353_v25 = vld [vmem:[#allocation4 + $0x6d4] ss:$8 sps:$4 sm:$0xff]  }
 0x27e   :  { %v5685_v12 = vpop.f32.mrf.mxu1  ;;  %4068 = vmatmul.mubr.bf16.vlgmr.msra.gmra.mxu1 %v2319_v31  ;;  %v5351_v31 = vld [vmem:[#allocation4 + $0x6d0] ss:$8 sps:$4 sm:$0xff]  }
 0x27f   :  { %v5687_v13 = vpop.f32.mrf.mxu0  ;;  %4111 = vmatmul.mubr.bf16.vlgmr.msra.gmra.mxu0 %v2321_v8  ;;  %4122 = vmatpush1.bf16.msra.mxu1 %v5290_v4  ;;  %v5356_v4 = vld [vmem:[#allocation4 + $0x7d4] ss:$8 sps:$4 sm:$0xff]   ;;  %v5357_v8 = vld [vmem:[#allocation4 + $0x6c0] ss:$8 sps:$4 sm:$0xff]  }
 0x280   :  { %4165 = vmatpush1.bf16.msra.mxu0 %v5293_v10  ;;  %v2015_v16 = vpop.f32.mrf.mxu1  ;;  %4123 = vmatprep.subr.bf16.mxu1 %v5299_v6  ;;  %v5354_v10 = vld [vmem:[#allocation4 + $0x7d0] ss:$8 sps:$4 sm:$0xff]   ;;  %v5359_v6 = vld [vmem:[#allocation4 + $0x6c4] ss:$8 sps:$4 sm:$0xff]  }
 0x281   :  { %v2058_v22 = vpop.f32.mrf.mxu0  ;;  %4166 = vmatprep.subr.bf16.mxu0 %v5302_v9  ;;  %v5360_v9 = vld [vmem:[#allocation4 + $0x7c0] ss:$8 sps:$4 sm:$0xff]  }
 0x282   :  { %v5689_v62 = vpop.f32.mrf.mxu1 }
 0x283   :  { %v5691_v45 = vpop.f32.mrf.mxu0  ;;  %4124 = vmatpush1.bf16.msra.mxu1 %v5297_v14  ;;  %v5365_v14 = vld [vmem:[#allocation4 + $0x6b4] ss:$8 sps:$4 sm:$0xff]  }
 0x284   :  { %4167 = vmatpush1.bf16.msra.mxu0 %v5300_v17  ;;  %v2019_v44 = vpop.f32.mrf.mxu1  ;;  %4125 = vmatprep.subr.bf16.mxu1 %v5305_v19  ;;  %v5363_v17 = vld [vmem:[#allocation4 + $0x6b0] ss:$8 sps:$4 sm:$0xff]   ;;  %v5371_v19 = vld [vmem:[#allocation4 + $0x6a4] ss:$8 sps:$4 sm:$0xff]  }
 0x285   :  { %v2078_v27 = vpack.c.bf16 %v2019_v44, %v2015_v16  ;;  %v2062_v41 = vpop.f32.mrf.mxu0  ;;  %4168 = vmatprep.subr.bf16.mxu0 %v5308_v52  ;;  %v5368_v16 = vld [vmem:[#allocation4 + $0x7b4] ss:$8 sps:$4 sm:$0xff]   ;;  %v5374_v52 = vld [vmem:[#allocation4 + $0x7a4] ss:$8 sps:$4 sm:$0xff]   ;;  %v5372_v44 = vld [vmem:[#allocation4 + $0x7a0] ss:$8 sps:$4 sm:$0xff]  }
 0x286   :  { %v2080_v32 = vpack.c.bf16 %v2062_v41, %v2058_v22  ;;  %v2180_v22 = vcombine.high %v2164_v15, %v2164_v15 }
 0x287   :  { %v2308_v33 = vadd.bf16 %v2280_v24, %v2078_v27  ;;  %4126 = vmatpush1.bf16.msra.mxu1 %v5303_v50  ;;  %v5369_v24 = vld [vmem:[#allocation4 + $0x6a0] ss:$8 sps:$4 sm:$0xff]   ;;  %v2268_v50 = vpack.i.b16 %v2164_v15, %v2164_v15  ;;  %v2077_v27 = vpack.c.bf16 %v5689_v62, %v5685_v12 }
 0x288   :  { %v2310_v35 = vadd.bf16 %v2294_v53, %v2080_v32  ;;  %4169 = vmatpush1.bf16.msra.mxu0 %v5306_v63  ;;  %4127 = vmatprep.subr.bf16.mxu1 %v5311_v26  ;;  %v5377_v53 = vld [vmem:[#allocation4 + $0x694] ss:$8 sps:$4 sm:$0xff]   ;;  %v2282_v63 = vpack.i.b16 %v2180_v22, %v2180_v22  ;;  %v5375_v26 = vld [vmem:[#allocation4 + $0x690] ss:$8 sps:$4 sm:$0xff]   ;;  %v5383_v32 = vld [vmem:[#allocation4 + $0x684] ss:$8 sps:$4 sm:$0xff]  }
 0x289   :  { %4170 = vmatprep.subr.bf16.mxu0 %v5314_v28  ;;  %v2324_v37 = vmax.bf16 %v5475_v0, %v2308_v33  ;;  %v2273_v41 = vrot.slane %v2268_v50, %v5553_v29  ;;  %v5378_v28 = vld [vmem:[#allocation4 + $0x790] ss:$8 sps:$4 sm:$0xff]   ;;  %v2079_v33 = vpack.c.bf16 %v5691_v45, %v5687_v13 }
 0x28a   :  { %v2326_v20 = vmax.bf16 %v5475_v0, %v2310_v35  ;;  %v5386_v35 = vld [vmem:[#allocation4 + $0x784] ss:$8 sps:$4 sm:$0xff]   ;;  %v5387_v13 = vld [vmem:[#allocation6 + $0x78] sm:$0xff]  }
 0x28b   :  { %4128 = vmatpush1.bf16.msra.mxu1 %v5309_v34  ;;  %4153 = vmatprep.mubr.bf16.mxu1 %v2324_v37  ;;  %v2287_v34 = vrot.slane %v2282_v63, %v5553_v29  ;;  %v2307_v37 = vadd.bf16 %v2273_v41, %v2077_v27  ;;  %v5388_v45 = vld [vmem:[#allocation6 + $0x38] sm:$0xff]  }
 0x28c   :  { %4171 = vmatpush1.bf16.msra.mxu0 %v5312_v36  ;;  %4196 = vmatprep.mubr.bf16.mxu0 %v2326_v20  ;;  %v5381_v36 = vld [vmem:[#allocation4 + $0x680] ss:$8 sps:$4 sm:$0xff]   ;;  %v5389_v20 = vld [vmem:[#allocation6 + $0x70] sm:$0xff]  }
 0x28d   :  { %4129 = vmatprep.subr.bf16.mxu1 %v5317_v38  ;;  %4172 = vmatprep.subr.bf16.mxu0 %v5320_v39  ;;  %v5384_v38 = vld [vmem:[#allocation4 + $0x780] ss:$8 sps:$4 sm:$0xff]   ;;  %v2309_v12 = vadd.bf16 %v2287_v34, %v2079_v33  ;;  %v2323_v62 = vmax.bf16 %v5475_v0, %v2307_v37 }
 0x28f   :  { %4130 = vmatpush1.bf16.msra.mxu1 %v5315_v42  ;;  %v2325_v39 = vmax.bf16 %v5475_v0, %v2309_v12  ;;  %v5390_v42 = vld [vmem:[#allocation6 + $0x30] sm:$0xff]  }
 0x290   :  { %4173 = vmatpush1.bf16.msra.mxu0 %v5318_v43  ;;  %4131 = vmatprep.subr.bf16.mxu1 %v5323_v46  ;;  %v5391_v43 = vld [vmem:[#allocation6 + $0x68] sm:$0xff]  }
 0x291   :  { %4174 = vmatprep.subr.bf16.mxu0 %v5326_v5  ;;  %v5392_v46 = vld [vmem:[#allocation6 + $0x28] sm:$0xff]   ;;  %v5393_v5 = vld [vmem:[#allocation6 + $0x60] sm:$0xff]  }
 0x293   :  { %4132 = vmatpush1.bf16.msra.mxu1 %v5321_v47  ;;  %v5394_v47 = vld [vmem:[#allocation6 + $0x20] sm:$0xff]  }
 0x294   :  { %4175 = vmatpush1.bf16.msra.mxu0 %v5324_v21  ;;  %4133 = vmatprep.subr.bf16.mxu1 %v5329_v48  ;;  %v5395_v21 = vld [vmem:[#allocation6 + $0x58] sm:$0xff]  }
 0x295   :  { %4176 = vmatprep.subr.bf16.mxu0 %v5332_v49  ;;  %v5396_v48 = vld [vmem:[#allocation6 + $0x18] sm:$0xff]   ;;  %v5397_v49 = vld [vmem:[#allocation6 + $0x50] sm:$0xff]  }
 0x297   :  { %4134 = vmatpush1.bf16.msra.mxu1 %v5327_v1  ;;  %v5398_v1 = vld [vmem:[#allocation6 + $0x10] sm:$0xff]  }
 0x298   :  { %4177 = vmatpush1.bf16.msra.mxu0 %v5330_v51  ;;  %4135 = vmatprep.subr.bf16.mxu1 %v5335_v54  ;;  %v5399_v51 = vld [vmem:[#allocation6 + $0x48] sm:$0xff]  }
 0x299   :  { %4178 = vmatprep.subr.bf16.mxu0 %v5338_v55  ;;  %v5400_v54 = vld [vmem:[#allocation6 + $0x8] sm:$0xff]   ;;  %v5401_v55 = vld [vmem:[#allocation6 + $0x40] sm:$0xff]  }
 0x29b   :  { %4136 = vmatpush1.bf16.msra.mxu1 %v5333_v56  ;;  %v5402_v56 = vld [vmem:[#allocation6] sm:$0xff]  }
 0x29c   :  { %4179 = vmatpush1.bf16.msra.mxu0 %v5336_v57  ;;  %4137 = vmatprep.subr.bf16.mxu1 %v5341_v58 }
 0x29d   :  { %4180 = vmatprep.subr.bf16.mxu0 %v5344_v59 }
 0x29f   :  { %4138 = vmatpush2.bf16.msra.mxu1 %v5339_v60 }
 0x2a0   :  { %4181 = vmatpush2.bf16.msra.mxu0 %v5342_v61  ;;  %4139 = vmatprep.subr.bf16.mxu1 %v5347_v30 }
 0x2a1   :  { %4182 = vmatprep.subr.bf16.mxu0 %v5350_v40 }
 0x2a3   :  { %4140 = vmatpush2.bf16.msra.mxu1 %v5345_v2 }
 0x2a4   :  { %4183 = vmatpush2.bf16.msra.mxu0 %v5348_v3  ;;  %4141 = vmatprep.subr.bf16.mxu1 %v5353_v25 }
 0x2a5   :  { %4184 = vmatprep.subr.bf16.mxu0 %v5356_v4 }
 0x2a7   :  { %4142 = vmatpush2.bf16.msra.mxu1 %v5351_v31 }
 0x2a8   :  { %4185 = vmatpush2.bf16.msra.mxu0 %v5354_v10  ;;  %4143 = vmatprep.subr.bf16.mxu1 %v5359_v6 }
 0x2a9   :  { %4186 = vmatprep.subr.bf16.mxu0 %v5362_v7 }
 0x2ab   :  { %4144 = vmatpush2.bf16.msra.mxu1 %v5357_v8 }
 0x2ac   :  { %4187 = vmatpush2.bf16.msra.mxu0 %v5360_v9  ;;  %4145 = vmatprep.subr.bf16.mxu1 %v5365_v14 }
 0x2ad   :  { %4188 = vmatprep.subr.bf16.mxu0 %v5368_v16 }
 0x2af   :  { %4146 = vmatpush2.bf16.msra.mxu1 %v5363_v17 }
 0x2b0   :  { %4189 = vmatpush2.bf16.msra.mxu0 %v5366_v18  ;;  %4147 = vmatprep.subr.bf16.mxu1 %v5371_v19 }
 0x2b1   :  { %4190 = vmatprep.subr.bf16.mxu0 %v5374_v52 }
 0x2b3   :  { %4148 = vmatpush2.bf16.msra.mxu1 %v5369_v24 }
 0x2b4   :  { %4191 = vmatpush2.bf16.msra.mxu0 %v5372_v44  ;;  %4149 = vmatprep.subr.bf16.mxu1 %v5377_v53  ;;  %v4951_v53 = vld.sshfl [vmem:[%s5731_s6] sm:$0x11 pattern:$0x75316420] }
 0x2b5   :  { %4192 = vmatprep.subr.bf16.mxu0 %v5380_v11  ;;  %v4225_v12 = vrot.slane %v4951_v53, %v5549_v23 }
 0x2b7   :  { %4150 = vmatpush2.bf16.msra.mxu1 %v5375_v26 }
 0x2b8   :  { %4193 = vmatpush2.bf16.msra.mxu0 %v5378_v28  ;;  %4151 = vmatprep.subr.bf16.mxu1 %v5383_v32  ;;  %v4218_v32 = vcombine.high %v4951_v53, %v4951_v53 }
 0x2b9   :  { %4194 = vmatprep.subr.bf16.mxu0 %v5386_v35 }
 0x2bb   :  { %4152 = vmatpush2.bf16.msra.mxu1 %v5381_v36 }
 0x2bc   :  { %4195 = vmatpush2.bf16.msra.mxu0 %v5384_v38  ;;  %4969 = vmatprep.subr.bf16.mxu1 %v5387_v13 }
 0x2be   :  { %4154 = vmatmul.mubr.bf16.vlgmr.msra.gmra.mxu1 %v2323_v62  ;;  %v3897_v57 = vpop.f32.mrf.mxu1 }
 0x2bf   :  { %4197 = vmatmul.mubr.bf16.vlgmr.msra.gmra.mxu0 %v2325_v39  ;;  %4970 = vmatpush3.bf16.msra.mxu1 %v5388_v45  ;;  %v3940_v58 = vpop.f32.mrf.mxu0  ;;  %v4232_v45 = vrot.slane %v4218_v32, %v5549_v23 }
 0x2c0   :  { %4971 = vmatprep.subr.bf16.mxu1 %v5389_v20  ;;  %v3899_v59 = vpop.f32.mrf.mxu1  ;;  %v3941_v15 = vadd.f32 %v3940_v58, %v3897_v57 }
 0x2c1   :  { %v3942_v60 = vpop.f32.mrf.mxu0 }
 0x2c2   :  { %v3901_v61 = vpop.f32.mrf.mxu1  ;;  %v3943_v17 = vadd.f32 %v3942_v60, %v3899_v59 }
 0x2c3   :  { %4972 = vmatpush3.bf16.msra.mxu1 %v5390_v42  ;;  %v3944_v30 = vpop.f32.mrf.mxu0 }
 0x2c4   :  { %4973 = vmatprep.subr.bf16.mxu1 %v5391_v43  ;;  %v3903_v40 = vpop.f32.mrf.mxu1  ;;  %v3945_v18 = vadd.f32 %v3944_v30, %v3901_v61 }
 0x2c5   :  { %v3946_v2 = vpop.f32.mrf.mxu0 }
 0x2c6   :  { %v3947_v52 = vadd.f32 %v3946_v2, %v3903_v40 }
 0x2c7   :  { %4974 = vmatpush3.bf16.msra.mxu1 %v5392_v46 }
 0x2c8   :  { %4975 = vmatprep.subr.bf16.mxu1 %v5393_v5 }
 0x2cb   :  { %4976 = vmatpush3.bf16.msra.mxu1 %v5394_v47 }
 0x2cc   :  { %4977 = vmatprep.subr.bf16.mxu1 %v5395_v21  ;;  %v4234_v21 = vpack.i.b16 %v4225_v12, %v4225_v12 }
 0x2ce   :  { %v4239_v59 = vrot.slane %v4234_v21, %v5553_v29 }
 0x2cf   :  { %4978 = vmatpush3.bf16.msra.mxu1 %v5396_v48 }
 0x2d0   :  { %4979 = vmatprep.subr.bf16.mxu1 %v5397_v49 }
 0x2d3   :  { %4980 = vmatpush3.bf16.msra.mxu1 %v5398_v1 }
 0x2d4   :  { %4981 = vmatprep.subr.bf16.mxu1 %v5399_v51 }
 0x2d7   :  { %4982 = vmatpush3.bf16.msra.mxu1 %v5400_v54  ;;  %v4241_v54 = vpack.i.b16 %v4232_v45, %v4232_v45 }
 0x2d8   :  { %4983 = vmatprep.subr.bf16.mxu1 %v5401_v55 }
 0x2d9   :  { %v4246_v40 = vrot.slane %v4241_v54, %v5553_v29 }
 0x2db   :  { %4984 = vmatpush3.bf16.msra.mxu1 %v5402_v56 }
 0x2fe   :  { %v3983_v3 = vpop.f32.mrf.mxu1 }
 0x2ff   :  { %v4026_v25 = vpop.f32.mrf.mxu0  ;;  %v3984_v19 = vadd.f32 %v3983_v3, %v3941_v15 }
 0x300   :  { %v3985_v4 = vpop.f32.mrf.mxu1 }
 0x301   :  { %v4028_v31 = vpop.f32.mrf.mxu0  ;;  %v3986_v24 = vadd.f32 %v3985_v4, %v3943_v17  ;;  %v4027_v63 = vadd.f32 %v4026_v25, %v3984_v19 }
 0x302   :  { %v3987_v10 = vpop.f32.mrf.mxu1 }
 0x303   :  { %v4030_v6 = vpop.f32.mrf.mxu0  ;;  %v3988_v50 = vadd.f32 %v3987_v10, %v3945_v18  ;;  %v4029_v27 = vadd.f32 %v4028_v31, %v3986_v24 }
 0x304   :  { %v3989_v7 = vpop.f32.mrf.mxu1 }
 0x305   :  { %v4032_v8 = vpop.f32.mrf.mxu0  ;;  %v3990_v11 = vadd.f32 %v3989_v7, %v3947_v52  ;;  %v4031_v41 = vadd.f32 %v4030_v6, %v3988_v50  ;;  %v4952_v6 = vld [vmem:[%s5733_s8] ss:$0 sm:$0xff] }
 0x307   :  { %v4033_v34 = vadd.f32 %v4032_v8, %v3990_v11 }
 0x33e   :  { %v4069_v9 = vpop.f32.mrf.mxu1 }
 0x33f   :  { %v4112_v14 = vpop.f32.mrf.mxu0  ;;  %v4070_v28 = vadd.f32 %v4069_v9, %v4027_v63 }
 0x340   :  { %v4071_v16 = vpop.f32.mrf.mxu1 }
 0x341   :  { %v4114_v22 = vpop.f32.mrf.mxu0  ;;  %v4072_v35 = vadd.f32 %v4071_v16, %v4029_v27  ;;  %v4113_v62 = vadd.f32 %v4112_v14, %v4070_v28 }
 0x342   :  { %v4073_v44 = vpop.f32.mrf.mxu1 }
 0x343   :  { %v4116_v26 = vpop.f32.mrf.mxu0  ;;  %v4074_v36 = vadd.f32 %v4073_v44, %v4031_v41  ;;  %v4115_v42 = vadd.f32 %v4114_v22, %v4072_v35 }
 0x344   :  { %v4075_v33 = vpop.f32.mrf.mxu1 }
 0x345   :  { %v4118_v37 = vpop.f32.mrf.mxu0  ;;  %v4076_v39 = vadd.f32 %v4075_v33, %v4033_v34  ;;  %v4117_v43 = vadd.f32 %v4116_v26, %v4074_v36 }
 0x347   :  { %v4119_v48 = vadd.f32 %v4118_v37, %v4076_v39 }
 0x37e   :  { %v4155_v38 = vpop.f32.mrf.mxu1 }
 0x37f   :  { %v4198_v13 = vpop.f32.mrf.mxu0  ;;  %v4156_v46 = vadd.f32 %v4155_v38, %v4113_v62 }
 0x380   :  { %v4157_v20 = vpop.f32.mrf.mxu1 }
 0x381   :  { %v4200_v5 = vpop.f32.mrf.mxu0  ;;  %v4158_v49 = vadd.f32 %v4157_v20, %v4115_v42  ;;  %v4199_v56 = vadd.f32 %v4198_v13, %v4156_v46 }
 0x382   :  { %v4159_v47 = vpop.f32.mrf.mxu1 }
 0x383   :  { %v4160_v1 = vadd.f32 %v4159_v47, %v4117_v43  ;;  %v4202_v51 = vpop.f32.mrf.mxu0  ;;  %v4201_v23 = vadd.f32 %v4200_v5, %v4158_v49 }
 0x384   :  { %v4161_v55 = vpop.f32.mrf.mxu1 }
 0x385   :  { %v4203_v57 = vadd.f32 %v4202_v51, %v4160_v1  ;;  %v4162_v58 = vadd.f32 %v4161_v55, %v4119_v48  ;;  %v4204_v60 = vpop.f32.mrf.mxu0 }
 0x387   :  { %v4207_v61 = vpack.c.bf16 %v4203_v57, %v4199_v56  ;;  %v4205_v30 = vadd.f32 %v4204_v60, %v4162_v58 }
 0x389   :  { %v4208_v2 = vpack.c.bf16 %v4205_v30, %v4201_v23  ;;  %v4247_v3 = vadd.bf16 %v4239_v59, %v4207_v61 }
 0x38b   :  { %v4248_v25 = vadd.bf16 %v4246_v40, %v4208_v2  ;;  %v4249_v31 = vmax.bf16 %v5475_v0, %v4247_v3 }
 0x38d   :  { %v4250_v4 = vmax.bf16 %v5475_v0, %v4248_v25 }
 0x38f   :  { %4418 = vmatprep.mubr.bf16.mxu1 %v4250_v4 }
 0x390   :  { %4419 = vmatmul.mubr.bf16.vlgmr.msra.gmra.mxu1 %v4249_v31 }
 0x450   :  { %v4985_v10 = vpop.f32.mrf.mxu1 }
 0x452   :  { %v4986_v7 = vpop.f32.mrf.mxu1 }
 0x453   :  { %v4987_v8 = vadd.f32 %v4986_v7, %v4985_v10 }
 0x454   :  { %v4988_v9 = vpop.f32.mrf.mxu1 }
 0x455   :  { %v4421_v14 = vadd.f32 %v4987_v8, %v4952_v6 }
 0x456   :  { %v4989_v15 = vpop.f32.mrf.mxu1 }
 0x457   :  { %4427 = vst [vmem:[%s5734_s9] sm:$0xff] %v4421_v14  ;;  %v4990_v29 = vadd.f32 %v4989_v15, %v4988_v9 }
 0x459   :  { %v4424_v16 = vadd.f32 %v4990_v29, %v4952_v6 }
 0x45b   :  { %4428 = vst [vmem:[%s5734_s9 + $0x8] sm:$0xff] %v4424_v16 }
 0x45c   :  { %4433 = vsyncpa [#allocation3], 1 }
 0x45d   :  { %4434 = vsyncpa [#allocation5], 1 }

</bundles_post_ra>
